<compile_context>
chip_gen: v5e
topology: v5e:2x2
jax: 0.10.0
libtpu: 0.0.40
codegen_flags: <defaults>
</compile_context>

<pallas_src>
import math

import jax
import jax.numpy as jnp
from jax.experimental import pallas as pl
from jax.experimental.pallas import tpu as pltpu


def _sigmoid(x):
    # Explicit formulation (exp on the EUP) used by both kernel and reference.
    return 1.0 / (1.0 + jnp.exp(-x))


def lstm_encoder_kernel(ids_ref, table_ref, h0_ref, c0_ref,
                        wih1_ref, wih2_ref, whh_ref, b_ref, out_ref):
    """One batch row per grid step: embedding lookup + 2-layer bi-LSTM."""
    f32 = jnp.float32
    S = out_ref.shape[1]
    Hd = h0_ref.shape[2]          # per-direction hidden size
    V = table_ref.shape[0]

    # ---- Embedding lookup as a one-hot MXU gather (no dynamic indexing). ----
    onehot = (ids_ref[0] == jax.lax.broadcasted_iota(jnp.int32, (S, V), 1)).astype(f32)
    x0 = jnp.dot(onehot, table_ref[...], preferred_element_type=f32)      # (S, E)

    def run_cell(gx, cell, reverse):
        """One LSTM direction. gx: (S, 4*Hd) = input projection + bias."""
        whh_t = whh_ref[cell]                                   # (Hd, 4*Hd)
        h = h0_ref[0, cell:cell + 1, :].astype(f32)             # (1, Hd)
        c = c0_ref[0, cell:cell + 1, :].astype(f32)             # (1, Hd)
        hs = [None] * S
        order = range(S - 1, -1, -1) if reverse else range(S)
        for t in order:                   # S is small & static -> full unroll
            g = gx[t:t + 1, :] + jnp.dot(h, whh_t, preferred_element_type=f32)
            i_g = _sigmoid(g[:, 0 * Hd:1 * Hd])                 # gate order: i, f, g, o
            f_g = _sigmoid(g[:, 1 * Hd:2 * Hd])
            g_g = jnp.tanh(g[:, 2 * Hd:3 * Hd])
            o_g = _sigmoid(g[:, 3 * Hd:4 * Hd])
            c = f_g * c + i_g * g_g
            h = o_g * jnp.tanh(c)
            hs[t] = h
        return jnp.concatenate(hs, axis=0)                      # (S, Hd), time-ordered

    # ---- Layer 1 (input: embeddings).  One hoisted projection per direction. --
    gx1f = jnp.dot(x0, wih1_ref[0], preferred_element_type=f32) + b_ref[0]
    gx1b = jnp.dot(x0, wih1_ref[1], preferred_element_type=f32) + b_ref[1]
    y1f = run_cell(gx1f, 0, reverse=False)
    y1b = run_cell(gx1b, 1, reverse=True)
    # TODO(synk): inter-layer dropout (p=0.1) is train-mode only; eval forward is identity.

    # ---- Layer 2: split W_ih^T by direction half instead of concatenating y1. --
    def in_proj2(d, cell):
        return (jnp.dot(y1f, wih2_ref[d, 0:Hd, :], preferred_element_type=f32)
                + jnp.dot(y1b, wih2_ref[d, Hd:2 * Hd, :], preferred_element_type=f32)
                + b_ref[cell])

    y2f = run_cell(in_proj2(0, 2), 2, reverse=False)
    y2b = run_cell(in_proj2(1, 3), 3, reverse=True)

    # Write each direction's half straight into its lane range (no lane concat).
    out_ref[0, :, 0:Hd] = y2f.astype(out_ref.dtype)
    out_ref[0, :, Hd:2 * Hd] = y2b.astype(out_ref.dtype)


def lstm_encoder(word_ids, embed_table, h0, c0, wih1_t, wih2_t, whh_t, bias):
    """word_ids: (B, S) int32; embed_table: (V, E);
       h0, c0: (B, 4, Hd) with cells ordered L1-fwd, L1-bwd, L2-fwd, L2-bwd;
       wih1_t: (2, E, 4Hd), wih2_t: (2, 2Hd, 4Hd), whh_t: (4, Hd, 4Hd);
       bias: (4, 1, 4Hd) with b_ih + b_hh pre-combined."""
    B, S = word_ids.shape
    V, E = embed_table.shape
    Hd = h0.shape[-1]
    H = 2 * Hd
    G = 4 * Hd

    grid_spec = pltpu.PrefetchScalarGridSpec(
        num_scalar_prefetch=0,
        grid=(B,),                                              # one sequence per step
        in_specs=[
            pl.BlockSpec((1, S, 1), lambda b: (b, 0, 0)),       # token ids (this row)
            pl.BlockSpec((V, E), lambda b: (0, 0)),             # embedding table
            pl.BlockSpec((1, 4, Hd), lambda b: (b, 0, 0)),      # h0 for this row
            pl.BlockSpec((1, 4, Hd), lambda b: (b, 0, 0)),      # c0 for this row
            pl.BlockSpec((2, E, G), lambda b: (0, 0, 0)),       # layer-1 W_ih^T
            pl.BlockSpec((2, H, G), lambda b: (0, 0, 0)),       # layer-2 W_ih^T
            pl.BlockSpec((4, Hd, G), lambda b: (0, 0, 0)),      # W_hh^T (4 cells)
            pl.BlockSpec((4, 1, G), lambda b: (0, 0, 0)),       # combined biases
        ],
        out_specs=pl.BlockSpec((1, S, H), lambda b: (b, 0, 0)),
    )
    return pl.pallas_call(
        lstm_encoder_kernel,
        out_shape=jax.ShapeDtypeStruct((B, S, H), jnp.float32),
        grid_spec=grid_spec,
        compiler_params=pltpu.CompilerParams(
            dimension_semantics=("parallel",)),                 # v7x: shard batch over 2 TCs
    )(word_ids.reshape(B, S, 1).astype(jnp.int32),
      embed_table, h0, c0, wih1_t, wih2_t, whh_t, bias)


def _reference(word_ids, embed_table, h0, c0, wih1_t, wih2_t, whh_t, bias):
    """Pure-JAX reference mirroring the PyTorch module (eval mode)."""
    Hd = h0.shape[-1]
    hp = jax.lax.Precision.HIGHEST
    x0 = embed_table[word_ids]                                   # (B, S, E)

    def cell(x_seq, h, c, wih_t_c, whh_t_c, b_c, reverse):
        gx = jnp.dot(x_seq, wih_t_c, precision=hp) + b_c          # (S, 4Hd)
        steps = gx[::-1] if reverse else gx

        def step(carry, g_row):
            hh, cc = carry
            g = g_row + jnp.dot(hh, whh_t_c, precision=hp)
            i = _sigmoid(g[:Hd]); f = _sigmoid(g[Hd:2 * Hd])
            gg = jnp.tanh(g[2 * Hd:3 * Hd]); o = _sigmoid(g[3 * Hd:])
            cc = f * cc + i * gg
            hh = o * jnp.tanh(cc)
            return (hh, cc), hh

        _, hs = jax.lax.scan(step, (h, c), steps)
        return hs[::-1] if reverse else hs                        # (S, Hd)

    def encode_one(x_seq, h0_b, c0_b):
        y1 = jnp.concatenate(
            [cell(x_seq, h0_b[0], c0_b[0], wih1_t[0], whh_t[0], bias[0, 0], False),
             cell(x_seq, h0_b[1], c0_b[1], wih1_t[1], whh_t[1], bias[1, 0], True)],
            axis=-1)
        y2 = jnp.concatenate(
            [cell(y1, h0_b[2], c0_b[2], wih2_t[0], whh_t[2], bias[2, 0], False),
             cell(y1, h0_b[3], c0_b[3], wih2_t[1], whh_t[3], bias[3, 0], True)],
            axis=-1)
        return y2

    return jax.vmap(encode_one)(x0, h0, c0)


def _xavier_uniform(key, shape):
    fan_out, fan_in = shape
    bound = math.sqrt(6.0 / (fan_in + fan_out))
    return jax.random.uniform(key, shape, jnp.float32, -bound, bound)


if __name__ == "__main__":
    # Small shapes consistent with the module: batch=2, seq=8, hidden_size=32
    # (2 directions of Hd=16), embed_size=32, 2 LSTM layers, vocab=50.
    B, S = 2, 8
    V, E = 50, 32
    hidden_size = 32
    Hd = hidden_size // 2
    H = hidden_size
    G = 4 * Hd

    key = jax.random.PRNGKey(0)
    keys = jax.random.split(key, 20)

    word_ids = jax.random.randint(keys[0], (B, S), 0, V, dtype=jnp.int32)
    embed_table = jax.random.normal(keys[1], (V, E), jnp.float32)   # nn.Embedding ~ N(0,1)

    # init_hidden(): torch.randn initial states -> deterministic jax.random here,
    # laid out (B, n_layers*n_dir, Hd), cells ordered L1-fwd, L1-bwd, L2-fwd, L2-bwd.
    h0 = jax.random.normal(keys[2], (B, 4, Hd), jnp.float32)
    c0 = jax.random.normal(keys[3], (B, 4, Hd), jnp.float32)

    # nn.LSTM parameters per cell: W_ih (4Hd, in), W_hh (4Hd, Hd), b_ih/b_hh (4Hd,),
    # gate order (i, f, g, o).  init_weight(): xavier_uniform on weight matrices;
    # PyTorch-default U(-1/sqrt(Hd), 1/sqrt(Hd)) biases.
    in_dims = (E, E, H, H)                 # L1-fwd, L1-bwd, L2-fwd, L2-bwd
    bbound = 1.0 / math.sqrt(Hd)
    wih, whh, bias_c = [], [], []
    k = 4
    for d_in in in_dims:
        wih.append(_xavier_uniform(keys[k], (G, d_in))); k += 1
        whh.append(_xavier_uniform(keys[k], (G, Hd))); k += 1
        b_ih = jax.random.uniform(keys[k], (G,), jnp.float32, -bbound, bbound); k += 1
        b_hh = jax.random.uniform(keys[k], (G,), jnp.float32, -bbound, bbound); k += 1
        bias_c.append(b_ih + b_hh)         # combined once (hoisted out of the call path)

    # One-time parameter prep (hoisted per the perf review): transpose to x @ W^T
    # layout and stack per layer / cell so the kernel sees a few dense slabs.
    wih1_t = jnp.stack([wih[0].T, wih[1].T])               # (2, E, 4Hd)
    wih2_t = jnp.stack([wih[2].T, wih[3].T])               # (2, 2Hd, 4Hd)
    whh_t = jnp.stack([w.T for w in whh])                  # (4, Hd, 4Hd)
    bias = jnp.stack(bias_c)[:, None, :]                   # (4, 1, 4Hd)

    out = lstm_encoder(word_ids, embed_table, h0, c0, wih1_t, wih2_t, whh_t, bias)
    out = jax.block_until_ready(out)

    ref = _reference(word_ids, embed_table, h0, c0, wih1_t, wih2_t, whh_t, bias)
    assert out.shape == (B, S, H), out.shape
    assert bool(jnp.all(jnp.isfinite(out)))
    assert jnp.allclose(out, ref, atol=2e-3, rtol=2e-3), (
        "Pallas kernel mismatch vs reference; max abs err = "
        + str(float(jnp.max(jnp.abs(out - ref)))))
    print("KERNEL_OK")
</pallas_src>

<mosaic_0001>
module attributes {stable_mosaic.version = 11 : i64} {
  func.func @lstm_encoder_kernel(%arg0: i32, %arg1: memref<1x8x1xi32, #tpu.memory_space<vmem>>, %arg2: memref<50x32xf32, #tpu.memory_space<vmem>>, %arg3: memref<1x4x16xf32, #tpu.memory_space<vmem>>, %arg4: memref<1x4x16xf32, #tpu.memory_space<vmem>>, %arg5: memref<2x32x64xf32, #tpu.memory_space<vmem>>, %arg6: memref<2x32x64xf32, #tpu.memory_space<vmem>>, %arg7: memref<4x16x64xf32, #tpu.memory_space<vmem>>, %arg8: memref<4x1x64xf32, #tpu.memory_space<vmem>>, %arg9: memref<1x8x32xf32, #tpu.memory_space<vmem>>) attributes {dimension_semantics = [#tpu.dimension_semantics<parallel>], iteration_bounds = array<i64: 2>, scalar_prefetch = 0 : i64, scratch_operands = 0 : i64, tpu.core_type = #tpu.core_type<tc>, window_params = [{transform_indices = @transform_0, window_bounds = array<i64: 1, 8, 1>}, {pipeline_mode = #tpu.pipeline_mode<synchronous>, transform_indices = @transform_1, window_bounds = array<i64: 50, 32>}, {transform_indices = @transform_2, window_bounds = array<i64: 1, 4, 16>}, {transform_indices = @transform_3, window_bounds = array<i64: 1, 4, 16>}, {pipeline_mode = #tpu.pipeline_mode<synchronous>, transform_indices = @transform_4, window_bounds = array<i64: 2, 32, 64>}, {pipeline_mode = #tpu.pipeline_mode<synchronous>, transform_indices = @transform_5, window_bounds = array<i64: 2, 32, 64>}, {pipeline_mode = #tpu.pipeline_mode<synchronous>, transform_indices = @transform_6, window_bounds = array<i64: 4, 16, 64>}, {pipeline_mode = #tpu.pipeline_mode<synchronous>, transform_indices = @transform_7, window_bounds = array<i64: 4, 1, 64>}, {transform_indices = @transform_8, window_bounds = array<i64: 1, 8, 32>}]} {
    %c0 = arith.constant 0 : index
    %c0_0 = arith.constant 0 : index
    %c0_1 = arith.constant 0 : index
    %0 = vector.load %arg1[%c0, %c0_0, %c0_1] : memref<1x8x1xi32, #tpu.memory_space<vmem>>, vector<1x8x1xi32>
    %1 = vector.shape_cast %0 : vector<1x8x1xi32> to vector<8x1xi32>
    %2 = tpu.iota {dimensions = array<i32: 1>} : vector<8x50xi32>
    %3 = vector.broadcast %1 : vector<8x1xi32> to vector<8x50xi32>
    %4 = arith.cmpi eq, %3, %2 : vector<8x50xi32>
    %5 = arith.extui %4 : vector<8x50xi1> to vector<8x50xi32>
    %6 = arith.sitofp %5 : vector<8x50xi32> to vector<8x50xf32>
    %c0_2 = arith.constant 0 : index
    %c0_3 = arith.constant 0 : index
    %7 = vector.load %arg2[%c0_2, %c0_3] : memref<50x32xf32, #tpu.memory_space<vmem>>, vector<50x32xf32>
    %cst = arith.constant dense<0.000000e+00> : vector<8x32xf32>
    %8 = tpu.matmul %6, %7, %cst {dimension_numbers = #tpu.dot_dimension_numbers<[1], [0], [0], [1], [0, 0, 1, 1], [], []>} : vector<8x50xf32>, vector<50x32xf32>, vector<8x32xf32> -> vector<8x32xf32>
    %c0_4 = arith.constant 0 : index
    %c0_5 = arith.constant 0 : index
    %c0_6 = arith.constant 0 : index
    %9 = vector.load %arg5[%c0_4, %c0_5, %c0_6] : memref<2x32x64xf32, #tpu.memory_space<vmem>>, vector<1x32x64xf32>
    %10 = vector.shape_cast %9 : vector<1x32x64xf32> to vector<32x64xf32>
    %cst_7 = arith.constant dense<0.000000e+00> : vector<8x64xf32>
    %11 = tpu.matmul %8, %10, %cst_7 {dimension_numbers = #tpu.dot_dimension_numbers<[1], [0], [0], [1], [0, 0, 1, 1], [], []>} : vector<8x32xf32>, vector<32x64xf32>, vector<8x64xf32> -> vector<8x64xf32>
    %c0_8 = arith.constant 0 : index
    %c0_9 = arith.constant 0 : index
    %c0_10 = arith.constant 0 : index
    %12 = vector.load %arg8[%c0_8, %c0_9, %c0_10] : memref<4x1x64xf32, #tpu.memory_space<vmem>>, vector<1x1x64xf32>
    %13 = vector.shape_cast %12 : vector<1x1x64xf32> to vector<1x64xf32>
    %14 = vector.broadcast %13 : vector<1x64xf32> to vector<8x64xf32>
    %15 = arith.addf %11, %14 : vector<8x64xf32>
    %c1 = arith.constant 1 : index
    %c0_11 = arith.constant 0 : index
    %c0_12 = arith.constant 0 : index
    %16 = vector.load %arg5[%c1, %c0_11, %c0_12] : memref<2x32x64xf32, #tpu.memory_space<vmem>>, vector<1x32x64xf32>
    %17 = vector.shape_cast %16 : vector<1x32x64xf32> to vector<32x64xf32>
    %cst_13 = arith.constant dense<0.000000e+00> : vector<8x64xf32>
    %18 = tpu.matmul %8, %17, %cst_13 {dimension_numbers = #tpu.dot_dimension_numbers<[1], [0], [0], [1], [0, 0, 1, 1], [], []>} : vector<8x32xf32>, vector<32x64xf32>, vector<8x64xf32> -> vector<8x64xf32>
    %c1_14 = arith.constant 1 : index
    %c0_15 = arith.constant 0 : index
    %c0_16 = arith.constant 0 : index
    %19 = vector.load %arg8[%c1_14, %c0_15, %c0_16] : memref<4x1x64xf32, #tpu.memory_space<vmem>>, vector<1x1x64xf32>
    %20 = vector.shape_cast %19 : vector<1x1x64xf32> to vector<1x64xf32>
    %21 = vector.broadcast %20 : vector<1x64xf32> to vector<8x64xf32>
    %22 = arith.addf %18, %21 : vector<8x64xf32>
    %c0_17 = arith.constant 0 : index
    %c0_18 = arith.constant 0 : index
    %c0_19 = arith.constant 0 : index
    %23 = vector.load %arg7[%c0_17, %c0_18, %c0_19] : memref<4x16x64xf32, #tpu.memory_space<vmem>>, vector<1x16x64xf32>
    %24 = vector.shape_cast %23 : vector<1x16x64xf32> to vector<16x64xf32>
    %c0_20 = arith.constant 0 : index
    %c0_21 = arith.constant 0 : index
    %c0_22 = arith.constant 0 : index
    %25 = vector.load %arg3[%c0_20, %c0_21, %c0_22] : memref<1x4x16xf32, #tpu.memory_space<vmem>>, vector<1x1x16xf32>
    %26 = vector.shape_cast %25 : vector<1x1x16xf32> to vector<1x16xf32>
    %c0_23 = arith.constant 0 : index
    %c0_24 = arith.constant 0 : index
    %c0_25 = arith.constant 0 : index
    %27 = vector.load %arg4[%c0_23, %c0_24, %c0_25] : memref<1x4x16xf32, #tpu.memory_space<vmem>>, vector<1x1x16xf32>
    %28 = vector.shape_cast %27 : vector<1x1x16xf32> to vector<1x16xf32>
    %29 = vector.extract_strided_slice %15 {offsets = [0, 0], sizes = [1, 64], strides = [1, 1]} : vector<8x64xf32> to vector<1x64xf32>
    %cst_26 = arith.constant dense<0.000000e+00> : vector<1x64xf32>
    %30 = tpu.matmul %26, %24, %cst_26 {dimension_numbers = #tpu.dot_dimension_numbers<[1], [0], [0], [1], [0, 0, 1, 1], [], []>} : vector<1x16xf32>, vector<16x64xf32>, vector<1x64xf32> -> vector<1x64xf32>
    %31 = arith.addf %29, %30 : vector<1x64xf32>
    %32 = vector.extract_strided_slice %31 {offsets = [0, 0], sizes = [1, 16], strides = [1, 1]} : vector<1x64xf32> to vector<1x16xf32>
    %cst_27 = arith.constant 0.000000e+00 : f32
    %33 = vector.broadcast %cst_27 : f32 to vector<1x16xf32>
    %34 = arith.subf %33, %32 : vector<1x16xf32>
    %35 = math.exp %34 : vector<1x16xf32>
    %cst_28 = arith.constant 1.000000e+00 : f32
    %36 = vector.broadcast %cst_28 : f32 to vector<1x16xf32>
    %37 = arith.addf %36, %35 : vector<1x16xf32>
    %cst_29 = arith.constant 1.000000e+00 : f32
    %38 = vector.broadcast %cst_29 : f32 to vector<1x16xf32>
    %39 = arith.divf %38, %37 : vector<1x16xf32>
    %40 = vector.extract_strided_slice %31 {offsets = [0, 16], sizes = [1, 16], strides = [1, 1]} : vector<1x64xf32> to vector<1x16xf32>
    %cst_30 = arith.constant 0.000000e+00 : f32
    %41 = vector.broadcast %cst_30 : f32 to vector<1x16xf32>
    %42 = arith.subf %41, %40 : vector<1x16xf32>
    %43 = math.exp %42 : vector<1x16xf32>
    %cst_31 = arith.constant 1.000000e+00 : f32
    %44 = vector.broadcast %cst_31 : f32 to vector<1x16xf32>
    %45 = arith.addf %44, %43 : vector<1x16xf32>
    %cst_32 = arith.constant 1.000000e+00 : f32
    %46 = vector.broadcast %cst_32 : f32 to vector<1x16xf32>
    %47 = arith.divf %46, %45 : vector<1x16xf32>
    %48 = vector.extract_strided_slice %31 {offsets = [0, 32], sizes = [1, 16], strides = [1, 1]} : vector<1x64xf32> to vector<1x16xf32>
    %49 = math.tanh %48 : vector<1x16xf32>
    %50 = vector.extract_strided_slice %31 {offsets = [0, 48], sizes = [1, 16], strides = [1, 1]} : vector<1x64xf32> to vector<1x16xf32>
    %cst_33 = arith.constant 0.000000e+00 : f32
    %51 = vector.broadcast %cst_33 : f32 to vector<1x16xf32>
    %52 = arith.subf %51, %50 : vector<1x16xf32>
    %53 = math.exp %52 : vector<1x16xf32>
    %cst_34 = arith.constant 1.000000e+00 : f32
    %54 = vector.broadcast %cst_34 : f32 to vector<1x16xf32>
    %55 = arith.addf %54, %53 : vector<1x16xf32>
    %cst_35 = arith.constant 1.000000e+00 : f32
    %56 = vector.broadcast %cst_35 : f32 to vector<1x16xf32>
    %57 = arith.divf %56, %55 : vector<1x16xf32>
    %58 = arith.mulf %47, %28 : vector<1x16xf32>
    %59 = arith.mulf %39, %49 : vector<1x16xf32>
    %60 = arith.addf %58, %59 : vector<1x16xf32>
    %61 = math.tanh %60 : vector<1x16xf32>
    %62 = arith.mulf %57, %61 : vector<1x16xf32>
    %63 = vector.extract_strided_slice %15 {offsets = [1, 0], sizes = [1, 64], strides = [1, 1]} : vector<8x64xf32> to vector<1x64xf32>
    %cst_36 = arith.constant dense<0.000000e+00> : vector<1x64xf32>
    %64 = tpu.matmul %62, %24, %cst_36 {dimension_numbers = #tpu.dot_dimension_numbers<[1], [0], [0], [1], [0, 0, 1, 1], [], []>} : vector<1x16xf32>, vector<16x64xf32>, vector<1x64xf32> -> vector<1x64xf32>
    %65 = arith.addf %63, %64 : vector<1x64xf32>
    %66 = vector.extract_strided_slice %65 {offsets = [0, 0], sizes = [1, 16], strides = [1, 1]} : vector<1x64xf32> to vector<1x16xf32>
    %cst_37 = arith.constant 0.000000e+00 : f32
    %67 = vector.broadcast %cst_37 : f32 to vector<1x16xf32>
    %68 = arith.subf %67, %66 : vector<1x16xf32>
    %69 = math.exp %68 : vector<1x16xf32>
    %cst_38 = arith.constant 1.000000e+00 : f32
    %70 = vector.broadcast %cst_38 : f32 to vector<1x16xf32>
    %71 = arith.addf %70, %69 : vector<1x16xf32>
    %cst_39 = arith.constant 1.000000e+00 : f32
    %72 = vector.broadcast %cst_39 : f32 to vector<1x16xf32>
    %73 = arith.divf %72, %71 : vector<1x16xf32>
    %74 = vector.extract_strided_slice %65 {offsets = [0, 16], sizes = [1, 16], strides = [1, 1]} : vector<1x64xf32> to vector<1x16xf32>
    %cst_40 = arith.constant 0.000000e+00 : f32
    %75 = vector.broadcast %cst_40 : f32 to vector<1x16xf32>
    %76 = arith.subf %75, %74 : vector<1x16xf32>
    %77 = math.exp %76 : vector<1x16xf32>
    %cst_41 = arith.constant 1.000000e+00 : f32
    %78 = vector.broadcast %cst_41 : f32 to vector<1x16xf32>
    %79 = arith.addf %78, %77 : vector<1x16xf32>
    %cst_42 = arith.constant 1.000000e+00 : f32
    %80 = vector.broadcast %cst_42 : f32 to vector<1x16xf32>
    %81 = arith.divf %80, %79 : vector<1x16xf32>
    %82 = vector.extract_strided_slice %65 {offsets = [0, 32], sizes = [1, 16], strides = [1, 1]} : vector<1x64xf32> to vector<1x16xf32>
    %83 = math.tanh %82 : vector<1x16xf32>
    %84 = vector.extract_strided_slice %65 {offsets = [0, 48], sizes = [1, 16], strides = [1, 1]} : vector<1x64xf32> to vector<1x16xf32>
    %cst_43 = arith.constant 0.000000e+00 : f32
    %85 = vector.broadcast %cst_43 : f32 to vector<1x16xf32>
    %86 = arith.subf %85, %84 : vector<1x16xf32>
    %87 = math.exp %86 : vector<1x16xf32>
    %cst_44 = arith.constant 1.000000e+00 : f32
    %88 = vector.broadcast %cst_44 : f32 to vector<1x16xf32>
    %89 = arith.addf %88, %87 : vector<1x16xf32>
    %cst_45 = arith.constant 1.000000e+00 : f32
    %90 = vector.broadcast %cst_45 : f32 to vector<1x16xf32>
    %91 = arith.divf %90, %89 : vector<1x16xf32>
    %92 = arith.mulf %81, %60 : vector<1x16xf32>
    %93 = arith.mulf %73, %83 : vector<1x16xf32>
    %94 = arith.addf %92, %93 : vector<1x16xf32>
    %95 = math.tanh %94 : vector<1x16xf32>
    %96 = arith.mulf %91, %95 : vector<1x16xf32>
    %97 = vector.extract_strided_slice %15 {offsets = [2, 0], sizes = [1, 64], strides = [1, 1]} : vector<8x64xf32> to vector<1x64xf32>
    %cst_46 = arith.constant dense<0.000000e+00> : vector<1x64xf32>
    %98 = tpu.matmul %96, %24, %cst_46 {dimension_numbers = #tpu.dot_dimension_numbers<[1], [0], [0], [1], [0, 0, 1, 1], [], []>} : vector<1x16xf32>, vector<16x64xf32>, vector<1x64xf32> -> vector<1x64xf32>
    %99 = arith.addf %97, %98 : vector<1x64xf32>
    %100 = vector.extract_strided_slice %99 {offsets = [0, 0], sizes = [1, 16], strides = [1, 1]} : vector<1x64xf32> to vector<1x16xf32>
    %cst_47 = arith.constant 0.000000e+00 : f32
    %101 = vector.broadcast %cst_47 : f32 to vector<1x16xf32>
    %102 = arith.subf %101, %100 : vector<1x16xf32>
    %103 = math.exp %102 : vector<1x16xf32>
    %cst_48 = arith.constant 1.000000e+00 : f32
    %104 = vector.broadcast %cst_48 : f32 to vector<1x16xf32>
    %105 = arith.addf %104, %103 : vector<1x16xf32>
    %cst_49 = arith.constant 1.000000e+00 : f32
    %106 = vector.broadcast %cst_49 : f32 to vector<1x16xf32>
    %107 = arith.divf %106, %105 : vector<1x16xf32>
    %108 = vector.extract_strided_slice %99 {offsets = [0, 16], sizes = [1, 16], strides = [1, 1]} : vector<1x64xf32> to vector<1x16xf32>
    %cst_50 = arith.constant 0.000000e+00 : f32
    %109 = vector.broadcast %cst_50 : f32 to vector<1x16xf32>
    %110 = arith.subf %109, %108 : vector<1x16xf32>
    %111 = math.exp %110 : vector<1x16xf32>
    %cst_51 = arith.constant 1.000000e+00 : f32
    %112 = vector.broadcast %cst_51 : f32 to vector<1x16xf32>
    %113 = arith.addf %112, %111 : vector<1x16xf32>
    %cst_52 = arith.constant 1.000000e+00 : f32
    %114 = vector.broadcast %cst_52 : f32 to vector<1x16xf32>
    %115 = arith.divf %114, %113 : vector<1x16xf32>
    %116 = vector.extract_strided_slice %99 {offsets = [0, 32], sizes = [1, 16], strides = [1, 1]} : vector<1x64xf32> to vector<1x16xf32>
    %117 = math.tanh %116 : vector<1x16xf32>
    %118 = vector.extract_strided_slice %99 {offsets = [0, 48], sizes = [1, 16], strides = [1, 1]} : vector<1x64xf32> to vector<1x16xf32>
    %cst_53 = arith.constant 0.000000e+00 : f32
    %119 = vector.broadcast %cst_53 : f32 to vector<1x16xf32>
    %120 = arith.subf %119, %118 : vector<1x16xf32>
    %121 = math.exp %120 : vector<1x16xf32>
    %cst_54 = arith.constant 1.000000e+00 : f32
    %122 = vector.broadcast %cst_54 : f32 to vector<1x16xf32>
    %123 = arith.addf %122, %121 : vector<1x16xf32>
    %cst_55 = arith.constant 1.000000e+00 : f32
    %124 = vector.broadcast %cst_55 : f32 to vector<1x16xf32>
    %125 = arith.divf %124, %123 : vector<1x16xf32>
    %126 = arith.mulf %115, %94 : vector<1x16xf32>
    %127 = arith.mulf %107, %117 : vector<1x16xf32>
    %128 = arith.addf %126, %127 : vector<1x16xf32>
    %129 = math.tanh %128 : vector<1x16xf32>
    %130 = arith.mulf %125, %129 : vector<1x16xf32>
    %131 = vector.extract_strided_slice %15 {offsets = [3, 0], sizes = [1, 64], strides = [1, 1]} : vector<8x64xf32> to vector<1x64xf32>
    %cst_56 = arith.constant dense<0.000000e+00> : vector<1x64xf32>
    %132 = tpu.matmul %130, %24, %cst_56 {dimension_numbers = #tpu.dot_dimension_numbers<[1], [0], [0], [1], [0, 0, 1, 1], [], []>} : vector<1x16xf32>, vector<16x64xf32>, vector<1x64xf32> -> vector<1x64xf32>
    %133 = arith.addf %131, %132 : vector<1x64xf32>
    %134 = vector.extract_strided_slice %133 {offsets = [0, 0], sizes = [1, 16], strides = [1, 1]} : vector<1x64xf32> to vector<1x16xf32>
    %cst_57 = arith.constant 0.000000e+00 : f32
    %135 = vector.broadcast %cst_57 : f32 to vector<1x16xf32>
    %136 = arith.subf %135, %134 : vector<1x16xf32>
    %137 = math.exp %136 : vector<1x16xf32>
    %cst_58 = arith.constant 1.000000e+00 : f32
    %138 = vector.broadcast %cst_58 : f32 to vector<1x16xf32>
    %139 = arith.addf %138, %137 : vector<1x16xf32>
    %cst_59 = arith.constant 1.000000e+00 : f32
    %140 = vector.broadcast %cst_59 : f32 to vector<1x16xf32>
    %141 = arith.divf %140, %139 : vector<1x16xf32>
    %142 = vector.extract_strided_slice %133 {offsets = [0, 16], sizes = [1, 16], strides = [1, 1]} : vector<1x64xf32> to vector<1x16xf32>
    %cst_60 = arith.constant 0.000000e+00 : f32
    %143 = vector.broadcast %cst_60 : f32 to vector<1x16xf32>
    %144 = arith.subf %143, %142 : vector<1x16xf32>
    %145 = math.exp %144 : vector<1x16xf32>
    %cst_61 = arith.constant 1.000000e+00 : f32
    %146 = vector.broadcast %cst_61 : f32 to vector<1x16xf32>
    %147 = arith.addf %146, %145 : vector<1x16xf32>
    %cst_62 = arith.constant 1.000000e+00 : f32
    %148 = vector.broadcast %cst_62 : f32 to vector<1x16xf32>
    %149 = arith.divf %148, %147 : vector<1x16xf32>
    %150 = vector.extract_strided_slice %133 {offsets = [0, 32], sizes = [1, 16], strides = [1, 1]} : vector<1x64xf32> to vector<1x16xf32>
    %151 = math.tanh %150 : vector<1x16xf32>
    %152 = vector.extract_strided_slice %133 {offsets = [0, 48], sizes = [1, 16], strides = [1, 1]} : vector<1x64xf32> to vector<1x16xf32>
    %cst_63 = arith.constant 0.000000e+00 : f32
    %153 = vector.broadcast %cst_63 : f32 to vector<1x16xf32>
    %154 = arith.subf %153, %152 : vector<1x16xf32>
    %155 = math.exp %154 : vector<1x16xf32>
    %cst_64 = arith.constant 1.000000e+00 : f32
    %156 = vector.broadcast %cst_64 : f32 to vector<1x16xf32>
    %157 = arith.addf %156, %155 : vector<1x16xf32>
    %cst_65 = arith.constant 1.000000e+00 : f32
    %158 = vector.broadcast %cst_65 : f32 to vector<1x16xf32>
    %159 = arith.divf %158, %157 : vector<1x16xf32>
    %160 = arith.mulf %149, %128 : vector<1x16xf32>
    %161 = arith.mulf %141, %151 : vector<1x16xf32>
    %162 = arith.addf %160, %161 : vector<1x16xf32>
    %163 = math.tanh %162 : vector<1x16xf32>
    %164 = arith.mulf %159, %163 : vector<1x16xf32>
    %165 = vector.extract_strided_slice %15 {offsets = [4, 0], sizes = [1, 64], strides = [1, 1]} : vector<8x64xf32> to vector<1x64xf32>
    %cst_66 = arith.constant dense<0.000000e+00> : vector<1x64xf32>
    %166 = tpu.matmul %164, %24, %cst_66 {dimension_numbers = #tpu.dot_dimension_numbers<[1], [0], [0], [1], [0, 0, 1, 1], [], []>} : vector<1x16xf32>, vector<16x64xf32>, vector<1x64xf32> -> vector<1x64xf32>
    %167 = arith.addf %165, %166 : vector<1x64xf32>
    %168 = vector.extract_strided_slice %167 {offsets = [0, 0], sizes = [1, 16], strides = [1, 1]} : vector<1x64xf32> to vector<1x16xf32>
    %cst_67 = arith.constant 0.000000e+00 : f32
    %169 = vector.broadcast %cst_67 : f32 to vector<1x16xf32>
    %170 = arith.subf %169, %168 : vector<1x16xf32>
    %171 = math.exp %170 : vector<1x16xf32>
    %cst_68 = arith.constant 1.000000e+00 : f32
    %172 = vector.broadcast %cst_68 : f32 to vector<1x16xf32>
    %173 = arith.addf %172, %171 : vector<1x16xf32>
    %cst_69 = arith.constant 1.000000e+00 : f32
    %174 = vector.broadcast %cst_69 : f32 to vector<1x16xf32>
    %175 = arith.divf %174, %173 : vector<1x16xf32>
    %176 = vector.extract_strided_slice %167 {offsets = [0, 16], sizes = [1, 16], strides = [1, 1]} : vector<1x64xf32> to vector<1x16xf32>
    %cst_70 = arith.constant 0.000000e+00 : f32
    %177 = vector.broadcast %cst_70 : f32 to vector<1x16xf32>
    %178 = arith.subf %177, %176 : vector<1x16xf32>
    %179 = math.exp %178 : vector<1x16xf32>
    %cst_71 = arith.constant 1.000000e+00 : f32
    %180 = vector.broadcast %cst_71 : f32 to vector<1x16xf32>
    %181 = arith.addf %180, %179 : vector<1x16xf32>
    %cst_72 = arith.constant 1.000000e+00 : f32
    %182 = vector.broadcast %cst_72 : f32 to vector<1x16xf32>
    %183 = arith.divf %182, %181 : vector<1x16xf32>
    %184 = vector.extract_strided_slice %167 {offsets = [0, 32], sizes = [1, 16], strides = [1, 1]} : vector<1x64xf32> to vector<1x16xf32>
    %185 = math.tanh %184 : vector<1x16xf32>
    %186 = vector.extract_strided_slice %167 {offsets = [0, 48], sizes = [1, 16], strides = [1, 1]} : vector<1x64xf32> to vector<1x16xf32>
    %cst_73 = arith.constant 0.000000e+00 : f32
    %187 = vector.broadcast %cst_73 : f32 to vector<1x16xf32>
    %188 = arith.subf %187, %186 : vector<1x16xf32>
    %189 = math.exp %188 : vector<1x16xf32>
    %cst_74 = arith.constant 1.000000e+00 : f32
    %190 = vector.broadcast %cst_74 : f32 to vector<1x16xf32>
    %191 = arith.addf %190, %189 : vector<1x16xf32>
    %cst_75 = arith.constant 1.000000e+00 : f32
    %192 = vector.broadcast %cst_75 : f32 to vector<1x16xf32>
    %193 = arith.divf %192, %191 : vector<1x16xf32>
    %194 = arith.mulf %183, %162 : vector<1x16xf32>
    %195 = arith.mulf %175, %185 : vector<1x16xf32>
    %196 = arith.addf %194, %195 : vector<1x16xf32>
    %197 = math.tanh %196 : vector<1x16xf32>
    %198 = arith.mulf %193, %197 : vector<1x16xf32>
    %199 = vector.extract_strided_slice %15 {offsets = [5, 0], sizes = [1, 64], strides = [1, 1]} : vector<8x64xf32> to vector<1x64xf32>
    %cst_76 = arith.constant dense<0.000000e+00> : vector<1x64xf32>
    %200 = tpu.matmul %198, %24, %cst_76 {dimension_numbers = #tpu.dot_dimension_numbers<[1], [0], [0], [1], [0, 0, 1, 1], [], []>} : vector<1x16xf32>, vector<16x64xf32>, vector<1x64xf32> -> vector<1x64xf32>
    %201 = arith.addf %199, %200 : vector<1x64xf32>
    %202 = vector.extract_strided_slice %201 {offsets = [0, 0], sizes = [1, 16], strides = [1, 1]} : vector<1x64xf32> to vector<1x16xf32>
    %cst_77 = arith.constant 0.000000e+00 : f32
    %203 = vector.broadcast %cst_77 : f32 to vector<1x16xf32>
    %204 = arith.subf %203, %202 : vector<1x16xf32>
    %205 = math.exp %204 : vector<1x16xf32>
    %cst_78 = arith.constant 1.000000e+00 : f32
    %206 = vector.broadcast %cst_78 : f32 to vector<1x16xf32>
    %207 = arith.addf %206, %205 : vector<1x16xf32>
    %cst_79 = arith.constant 1.000000e+00 : f32
    %208 = vector.broadcast %cst_79 : f32 to vector<1x16xf32>
    %209 = arith.divf %208, %207 : vector<1x16xf32>
    %210 = vector.extract_strided_slice %201 {offsets = [0, 16], sizes = [1, 16], strides = [1, 1]} : vector<1x64xf32> to vector<1x16xf32>
    %cst_80 = arith.constant 0.000000e+00 : f32
    %211 = vector.broadcast %cst_80 : f32 to vector<1x16xf32>
    %212 = arith.subf %211, %210 : vector<1x16xf32>
    %213 = math.exp %212 : vector<1x16xf32>
    %cst_81 = arith.constant 1.000000e+00 : f32
    %214 = vector.broadcast %cst_81 : f32 to vector<1x16xf32>
    %215 = arith.addf %214, %213 : vector<1x16xf32>
    %cst_82 = arith.constant 1.000000e+00 : f32
    %216 = vector.broadcast %cst_82 : f32 to vector<1x16xf32>
    %217 = arith.divf %216, %215 : vector<1x16xf32>
    %218 = vector.extract_strided_slice %201 {offsets = [0, 32], sizes = [1, 16], strides = [1, 1]} : vector<1x64xf32> to vector<1x16xf32>
    %219 = math.tanh %218 : vector<1x16xf32>
    %220 = vector.extract_strided_slice %201 {offsets = [0, 48], sizes = [1, 16], strides = [1, 1]} : vector<1x64xf32> to vector<1x16xf32>
    %cst_83 = arith.constant 0.000000e+00 : f32
    %221 = vector.broadcast %cst_83 : f32 to vector<1x16xf32>
    %222 = arith.subf %221, %220 : vector<1x16xf32>
    %223 = math.exp %222 : vector<1x16xf32>
    %cst_84 = arith.constant 1.000000e+00 : f32
    %224 = vector.broadcast %cst_84 : f32 to vector<1x16xf32>
    %225 = arith.addf %224, %223 : vector<1x16xf32>
    %cst_85 = arith.constant 1.000000e+00 : f32
    %226 = vector.broadcast %cst_85 : f32 to vector<1x16xf32>
    %227 = arith.divf %226, %225 : vector<1x16xf32>
    %228 = arith.mulf %217, %196 : vector<1x16xf32>
    %229 = arith.mulf %209, %219 : vector<1x16xf32>
    %230 = arith.addf %228, %229 : vector<1x16xf32>
    %231 = math.tanh %230 : vector<1x16xf32>
    %232 = arith.mulf %227, %231 : vector<1x16xf32>
    %233 = vector.extract_strided_slice %15 {offsets = [6, 0], sizes = [1, 64], strides = [1, 1]} : vector<8x64xf32> to vector<1x64xf32>
    %cst_86 = arith.constant dense<0.000000e+00> : vector<1x64xf32>
    %234 = tpu.matmul %232, %24, %cst_86 {dimension_numbers = #tpu.dot_dimension_numbers<[1], [0], [0], [1], [0, 0, 1, 1], [], []>} : vector<1x16xf32>, vector<16x64xf32>, vector<1x64xf32> -> vector<1x64xf32>
    %235 = arith.addf %233, %234 : vector<1x64xf32>
    %236 = vector.extract_strided_slice %235 {offsets = [0, 0], sizes = [1, 16], strides = [1, 1]} : vector<1x64xf32> to vector<1x16xf32>
    %cst_87 = arith.constant 0.000000e+00 : f32
    %237 = vector.broadcast %cst_87 : f32 to vector<1x16xf32>
    %238 = arith.subf %237, %236 : vector<1x16xf32>
    %239 = math.exp %238 : vector<1x16xf32>
    %cst_88 = arith.constant 1.000000e+00 : f32
    %240 = vector.broadcast %cst_88 : f32 to vector<1x16xf32>
    %241 = arith.addf %240, %239 : vector<1x16xf32>
    %cst_89 = arith.constant 1.000000e+00 : f32
    %242 = vector.broadcast %cst_89 : f32 to vector<1x16xf32>
    %243 = arith.divf %242, %241 : vector<1x16xf32>
    %244 = vector.extract_strided_slice %235 {offsets = [0, 16], sizes = [1, 16], strides = [1, 1]} : vector<1x64xf32> to vector<1x16xf32>
    %cst_90 = arith.constant 0.000000e+00 : f32
    %245 = vector.broadcast %cst_90 : f32 to vector<1x16xf32>
    %246 = arith.subf %245, %244 : vector<1x16xf32>
    %247 = math.exp %246 : vector<1x16xf32>
    %cst_91 = arith.constant 1.000000e+00 : f32
    %248 = vector.broadcast %cst_91 : f32 to vector<1x16xf32>
    %249 = arith.addf %248, %247 : vector<1x16xf32>
    %cst_92 = arith.constant 1.000000e+00 : f32
    %250 = vector.broadcast %cst_92 : f32 to vector<1x16xf32>
    %251 = arith.divf %250, %249 : vector<1x16xf32>
    %252 = vector.extract_strided_slice %235 {offsets = [0, 32], sizes = [1, 16], strides = [1, 1]} : vector<1x64xf32> to vector<1x16xf32>
    %253 = math.tanh %252 : vector<1x16xf32>
    %254 = vector.extract_strided_slice %235 {offsets = [0, 48], sizes = [1, 16], strides = [1, 1]} : vector<1x64xf32> to vector<1x16xf32>
    %cst_93 = arith.constant 0.000000e+00 : f32
    %255 = vector.broadcast %cst_93 : f32 to vector<1x16xf32>
    %256 = arith.subf %255, %254 : vector<1x16xf32>
    %257 = math.exp %256 : vector<1x16xf32>
    %cst_94 = arith.constant 1.000000e+00 : f32
    %258 = vector.broadcast %cst_94 : f32 to vector<1x16xf32>
    %259 = arith.addf %258, %257 : vector<1x16xf32>
    %cst_95 = arith.constant 1.000000e+00 : f32
    %260 = vector.broadcast %cst_95 : f32 to vector<1x16xf32>
    %261 = arith.divf %260, %259 : vector<1x16xf32>
    %262 = arith.mulf %251, %230 : vector<1x16xf32>
    %263 = arith.mulf %243, %253 : vector<1x16xf32>
    %264 = arith.addf %262, %263 : vector<1x16xf32>
    %265 = math.tanh %264 : vector<1x16xf32>
    %266 = arith.mulf %261, %265 : vector<1x16xf32>
    %267 = vector.extract_strided_slice %15 {offsets = [7, 0], sizes = [1, 64], strides = [1, 1]} : vector<8x64xf32> to vector<1x64xf32>
    %cst_96 = arith.constant dense<0.000000e+00> : vector<1x64xf32>
    %268 = tpu.matmul %266, %24, %cst_96 {dimension_numbers = #tpu.dot_dimension_numbers<[1], [0], [0], [1], [0, 0, 1, 1], [], []>} : vector<1x16xf32>, vector<16x64xf32>, vector<1x64xf32> -> vector<1x64xf32>
    %269 = arith.addf %267, %268 : vector<1x64xf32>
    %270 = vector.extract_strided_slice %269 {offsets = [0, 0], sizes = [1, 16], strides = [1, 1]} : vector<1x64xf32> to vector<1x16xf32>
    %cst_97 = arith.constant 0.000000e+00 : f32
    %271 = vector.broadcast %cst_97 : f32 to vector<1x16xf32>
    %272 = arith.subf %271, %270 : vector<1x16xf32>
    %273 = math.exp %272 : vector<1x16xf32>
    %cst_98 = arith.constant 1.000000e+00 : f32
    %274 = vector.broadcast %cst_98 : f32 to vector<1x16xf32>
    %275 = arith.addf %274, %273 : vector<1x16xf32>
    %cst_99 = arith.constant 1.000000e+00 : f32
    %276 = vector.broadcast %cst_99 : f32 to vector<1x16xf32>
    %277 = arith.divf %276, %275 : vector<1x16xf32>
    %278 = vector.extract_strided_slice %269 {offsets = [0, 16], sizes = [1, 16], strides = [1, 1]} : vector<1x64xf32> to vector<1x16xf32>
    %cst_100 = arith.constant 0.000000e+00 : f32
    %279 = vector.broadcast %cst_100 : f32 to vector<1x16xf32>
    %280 = arith.subf %279, %278 : vector<1x16xf32>
    %281 = math.exp %280 : vector<1x16xf32>
    %cst_101 = arith.constant 1.000000e+00 : f32
    %282 = vector.broadcast %cst_101 : f32 to vector<1x16xf32>
    %283 = arith.addf %282, %281 : vector<1x16xf32>
    %cst_102 = arith.constant 1.000000e+00 : f32
    %284 = vector.broadcast %cst_102 : f32 to vector<1x16xf32>
    %285 = arith.divf %284, %283 : vector<1x16xf32>
    %286 = vector.extract_strided_slice %269 {offsets = [0, 32], sizes = [1, 16], strides = [1, 1]} : vector<1x64xf32> to vector<1x16xf32>
    %287 = math.tanh %286 : vector<1x16xf32>
    %288 = vector.extract_strided_slice %269 {offsets = [0, 48], sizes = [1, 16], strides = [1, 1]} : vector<1x64xf32> to vector<1x16xf32>
    %cst_103 = arith.constant 0.000000e+00 : f32
    %289 = vector.broadcast %cst_103 : f32 to vector<1x16xf32>
    %290 = arith.subf %289, %288 : vector<1x16xf32>
    %291 = math.exp %290 : vector<1x16xf32>
    %cst_104 = arith.constant 1.000000e+00 : f32
    %292 = vector.broadcast %cst_104 : f32 to vector<1x16xf32>
    %293 = arith.addf %292, %291 : vector<1x16xf32>
    %cst_105 = arith.constant 1.000000e+00 : f32
    %294 = vector.broadcast %cst_105 : f32 to vector<1x16xf32>
    %295 = arith.divf %294, %293 : vector<1x16xf32>
    %296 = arith.mulf %285, %264 : vector<1x16xf32>
    %297 = arith.mulf %277, %287 : vector<1x16xf32>
    %298 = arith.addf %296, %297 : vector<1x16xf32>
    %299 = math.tanh %298 : vector<1x16xf32>
    %300 = arith.mulf %295, %299 : vector<1x16xf32>
    %301 = tpu.concatenate %62, %96, %130, %164, %198, %232, %266, %300 in 0 : vector<1x16xf32>, vector<1x16xf32>, vector<1x16xf32>, vector<1x16xf32>, vector<1x16xf32>, vector<1x16xf32>, vector<1x16xf32>, vector<1x16xf32> -> vector<8x16xf32>
    %c1_106 = arith.constant 1 : index
    %c0_107 = arith.constant 0 : index
    %c0_108 = arith.constant 0 : index
    %302 = vector.load %arg7[%c1_106, %c0_107, %c0_108] : memref<4x16x64xf32, #tpu.memory_space<vmem>>, vector<1x16x64xf32>
    %303 = vector.shape_cast %302 : vector<1x16x64xf32> to vector<16x64xf32>
    %c0_109 = arith.constant 0 : index
    %c1_110 = arith.constant 1 : index
    %c0_111 = arith.constant 0 : index
    %304 = vector.load %arg3[%c0_109, %c1_110, %c0_111] : memref<1x4x16xf32, #tpu.memory_space<vmem>>, vector<1x1x16xf32>
    %305 = vector.shape_cast %304 : vector<1x1x16xf32> to vector<1x16xf32>
    %c0_112 = arith.constant 0 : index
    %c1_113 = arith.constant 1 : index
    %c0_114 = arith.constant 0 : index
    %306 = vector.load %arg4[%c0_112, %c1_113, %c0_114] : memref<1x4x16xf32, #tpu.memory_space<vmem>>, vector<1x1x16xf32>
    %307 = vector.shape_cast %306 : vector<1x1x16xf32> to vector<1x16xf32>
    %308 = vector.extract_strided_slice %22 {offsets = [7, 0], sizes = [1, 64], strides = [1, 1]} : vector<8x64xf32> to vector<1x64xf32>
    %cst_115 = arith.constant dense<0.000000e+00> : vector<1x64xf32>
    %309 = tpu.matmul %305, %303, %cst_115 {dimension_numbers = #tpu.dot_dimension_numbers<[1], [0], [0], [1], [0, 0, 1, 1], [], []>} : vector<1x16xf32>, vector<16x64xf32>, vector<1x64xf32> -> vector<1x64xf32>
    %310 = arith.addf %308, %309 : vector<1x64xf32>
    %311 = vector.extract_strided_slice %310 {offsets = [0, 0], sizes = [1, 16], strides = [1, 1]} : vector<1x64xf32> to vector<1x16xf32>
    %cst_116 = arith.constant 0.000000e+00 : f32
    %312 = vector.broadcast %cst_116 : f32 to vector<1x16xf32>
    %313 = arith.subf %312, %311 : vector<1x16xf32>
    %314 = math.exp %313 : vector<1x16xf32>
    %cst_117 = arith.constant 1.000000e+00 : f32
    %315 = vector.broadcast %cst_117 : f32 to vector<1x16xf32>
    %316 = arith.addf %315, %314 : vector<1x16xf32>
    %cst_118 = arith.constant 1.000000e+00 : f32
    %317 = vector.broadcast %cst_118 : f32 to vector<1x16xf32>
    %318 = arith.divf %317, %316 : vector<1x16xf32>
    %319 = vector.extract_strided_slice %310 {offsets = [0, 16], sizes = [1, 16], strides = [1, 1]} : vector<1x64xf32> to vector<1x16xf32>
    %cst_119 = arith.constant 0.000000e+00 : f32
    %320 = vector.broadcast %cst_119 : f32 to vector<1x16xf32>
    %321 = arith.subf %320, %319 : vector<1x16xf32>
    %322 = math.exp %321 : vector<1x16xf32>
    %cst_120 = arith.constant 1.000000e+00 : f32
    %323 = vector.broadcast %cst_120 : f32 to vector<1x16xf32>
    %324 = arith.addf %323, %322 : vector<1x16xf32>
    %cst_121 = arith.constant 1.000000e+00 : f32
    %325 = vector.broadcast %cst_121 : f32 to vector<1x16xf32>
    %326 = arith.divf %325, %324 : vector<1x16xf32>
    %327 = vector.extract_strided_slice %310 {offsets = [0, 32], sizes = [1, 16], strides = [1, 1]} : vector<1x64xf32> to vector<1x16xf32>
    %328 = math.tanh %327 : vector<1x16xf32>
    %329 = vector.extract_strided_slice %310 {offsets = [0, 48], sizes = [1, 16], strides = [1, 1]} : vector<1x64xf32> to vector<1x16xf32>
    %cst_122 = arith.constant 0.000000e+00 : f32
    %330 = vector.broadcast %cst_122 : f32 to vector<1x16xf32>
    %331 = arith.subf %330, %329 : vector<1x16xf32>
    %332 = math.exp %331 : vector<1x16xf32>
    %cst_123 = arith.constant 1.000000e+00 : f32
    %333 = vector.broadcast %cst_123 : f32 to vector<1x16xf32>
    %334 = arith.addf %333, %332 : vector<1x16xf32>
    %cst_124 = arith.constant 1.000000e+00 : f32
    %335 = vector.broadcast %cst_124 : f32 to vector<1x16xf32>
    %336 = arith.divf %335, %334 : vector<1x16xf32>
    %337 = arith.mulf %326, %307 : vector<1x16xf32>
    %338 = arith.mulf %318, %328 : vector<1x16xf32>
    %339 = arith.addf %337, %338 : vector<1x16xf32>
    %340 = math.tanh %339 : vector<1x16xf32>
    %341 = arith.mulf %336, %340 : vector<1x16xf32>
    %342 = vector.extract_strided_slice %22 {offsets = [6, 0], sizes = [1, 64], strides = [1, 1]} : vector<8x64xf32> to vector<1x64xf32>
    %cst_125 = arith.constant dense<0.000000e+00> : vector<1x64xf32>
    %343 = tpu.matmul %341, %303, %cst_125 {dimension_numbers = #tpu.dot_dimension_numbers<[1], [0], [0], [1], [0, 0, 1, 1], [], []>} : vector<1x16xf32>, vector<16x64xf32>, vector<1x64xf32> -> vector<1x64xf32>
    %344 = arith.addf %342, %343 : vector<1x64xf32>
    %345 = vector.extract_strided_slice %344 {offsets = [0, 0], sizes = [1, 16], strides = [1, 1]} : vector<1x64xf32> to vector<1x16xf32>
    %cst_126 = arith.constant 0.000000e+00 : f32
    %346 = vector.broadcast %cst_126 : f32 to vector<1x16xf32>
    %347 = arith.subf %346, %345 : vector<1x16xf32>
    %348 = math.exp %347 : vector<1x16xf32>
    %cst_127 = arith.constant 1.000000e+00 : f32
    %349 = vector.broadcast %cst_127 : f32 to vector<1x16xf32>
    %350 = arith.addf %349, %348 : vector<1x16xf32>
    %cst_128 = arith.constant 1.000000e+00 : f32
    %351 = vector.broadcast %cst_128 : f32 to vector<1x16xf32>
    %352 = arith.divf %351, %350 : vector<1x16xf32>
    %353 = vector.extract_strided_slice %344 {offsets = [0, 16], sizes = [1, 16], strides = [1, 1]} : vector<1x64xf32> to vector<1x16xf32>
    %cst_129 = arith.constant 0.000000e+00 : f32
    %354 = vector.broadcast %cst_129 : f32 to vector<1x16xf32>
    %355 = arith.subf %354, %353 : vector<1x16xf32>
    %356 = math.exp %355 : vector<1x16xf32>
    %cst_130 = arith.constant 1.000000e+00 : f32
    %357 = vector.broadcast %cst_130 : f32 to vector<1x16xf32>
    %358 = arith.addf %357, %356 : vector<1x16xf32>
    %cst_131 = arith.constant 1.000000e+00 : f32
    %359 = vector.broadcast %cst_131 : f32 to vector<1x16xf32>
    %360 = arith.divf %359, %358 : vector<1x16xf32>
    %361 = vector.extract_strided_slice %344 {offsets = [0, 32], sizes = [1, 16], strides = [1, 1]} : vector<1x64xf32> to vector<1x16xf32>
    %362 = math.tanh %361 : vector<1x16xf32>
    %363 = vector.extract_strided_slice %344 {offsets = [0, 48], sizes = [1, 16], strides = [1, 1]} : vector<1x64xf32> to vector<1x16xf32>
    %cst_132 = arith.constant 0.000000e+00 : f32
    %364 = vector.broadcast %cst_132 : f32 to vector<1x16xf32>
    %365 = arith.subf %364, %363 : vector<1x16xf32>
    %366 = math.exp %365 : vector<1x16xf32>
    %cst_133 = arith.constant 1.000000e+00 : f32
    %367 = vector.broadcast %cst_133 : f32 to vector<1x16xf32>
    %368 = arith.addf %367, %366 : vector<1x16xf32>
    %cst_134 = arith.constant 1.000000e+00 : f32
    %369 = vector.broadcast %cst_134 : f32 to vector<1x16xf32>
    %370 = arith.divf %369, %368 : vector<1x16xf32>
    %371 = arith.mulf %360, %339 : vector<1x16xf32>
    %372 = arith.mulf %352, %362 : vector<1x16xf32>
    %373 = arith.addf %371, %372 : vector<1x16xf32>
    %374 = math.tanh %373 : vector<1x16xf32>
    %375 = arith.mulf %370, %374 : vector<1x16xf32>
    %376 = vector.extract_strided_slice %22 {offsets = [5, 0], sizes = [1, 64], strides = [1, 1]} : vector<8x64xf32> to vector<1x64xf32>
    %cst_135 = arith.constant dense<0.000000e+00> : vector<1x64xf32>
    %377 = tpu.matmul %375, %303, %cst_135 {dimension_numbers = #tpu.dot_dimension_numbers<[1], [0], [0], [1], [0, 0, 1, 1], [], []>} : vector<1x16xf32>, vector<16x64xf32>, vector<1x64xf32> -> vector<1x64xf32>
    %378 = arith.addf %376, %377 : vector<1x64xf32>
    %379 = vector.extract_strided_slice %378 {offsets = [0, 0], sizes = [1, 16], strides = [1, 1]} : vector<1x64xf32> to vector<1x16xf32>
    %cst_136 = arith.constant 0.000000e+00 : f32
    %380 = vector.broadcast %cst_136 : f32 to vector<1x16xf32>
    %381 = arith.subf %380, %379 : vector<1x16xf32>
    %382 = math.exp %381 : vector<1x16xf32>
    %cst_137 = arith.constant 1.000000e+00 : f32
    %383 = vector.broadcast %cst_137 : f32 to vector<1x16xf32>
    %384 = arith.addf %383, %382 : vector<1x16xf32>
    %cst_138 = arith.constant 1.000000e+00 : f32
    %385 = vector.broadcast %cst_138 : f32 to vector<1x16xf32>
    %386 = arith.divf %385, %384 : vector<1x16xf32>
    %387 = vector.extract_strided_slice %378 {offsets = [0, 16], sizes = [1, 16], strides = [1, 1]} : vector<1x64xf32> to vector<1x16xf32>
    %cst_139 = arith.constant 0.000000e+00 : f32
    %388 = vector.broadcast %cst_139 : f32 to vector<1x16xf32>
    %389 = arith.subf %388, %387 : vector<1x16xf32>
    %390 = math.exp %389 : vector<1x16xf32>
    %cst_140 = arith.constant 1.000000e+00 : f32
    %391 = vector.broadcast %cst_140 : f32 to vector<1x16xf32>
    %392 = arith.addf %391, %390 : vector<1x16xf32>
    %cst_141 = arith.constant 1.000000e+00 : f32
    %393 = vector.broadcast %cst_141 : f32 to vector<1x16xf32>
    %394 = arith.divf %393, %392 : vector<1x16xf32>
    %395 = vector.extract_strided_slice %378 {offsets = [0, 32], sizes = [1, 16], strides = [1, 1]} : vector<1x64xf32> to vector<1x16xf32>
    %396 = math.tanh %395 : vector<1x16xf32>
    %397 = vector.extract_strided_slice %378 {offsets = [0, 48], sizes = [1, 16], strides = [1, 1]} : vector<1x64xf32> to vector<1x16xf32>
    %cst_142 = arith.constant 0.000000e+00 : f32
    %398 = vector.broadcast %cst_142 : f32 to vector<1x16xf32>
    %399 = arith.subf %398, %397 : vector<1x16xf32>
    %400 = math.exp %399 : vector<1x16xf32>
    %cst_143 = arith.constant 1.000000e+00 : f32
    %401 = vector.broadcast %cst_143 : f32 to vector<1x16xf32>
    %402 = arith.addf %401, %400 : vector<1x16xf32>
    %cst_144 = arith.constant 1.000000e+00 : f32
    %403 = vector.broadcast %cst_144 : f32 to vector<1x16xf32>
    %404 = arith.divf %403, %402 : vector<1x16xf32>
    %405 = arith.mulf %394, %373 : vector<1x16xf32>
    %406 = arith.mulf %386, %396 : vector<1x16xf32>
    %407 = arith.addf %405, %406 : vector<1x16xf32>
    %408 = math.tanh %407 : vector<1x16xf32>
    %409 = arith.mulf %404, %408 : vector<1x16xf32>
    %410 = vector.extract_strided_slice %22 {offsets = [4, 0], sizes = [1, 64], strides = [1, 1]} : vector<8x64xf32> to vector<1x64xf32>
    %cst_145 = arith.constant dense<0.000000e+00> : vector<1x64xf32>
    %411 = tpu.matmul %409, %303, %cst_145 {dimension_numbers = #tpu.dot_dimension_numbers<[1], [0], [0], [1], [0, 0, 1, 1], [], []>} : vector<1x16xf32>, vector<16x64xf32>, vector<1x64xf32> -> vector<1x64xf32>
    %412 = arith.addf %410, %411 : vector<1x64xf32>
    %413 = vector.extract_strided_slice %412 {offsets = [0, 0], sizes = [1, 16], strides = [1, 1]} : vector<1x64xf32> to vector<1x16xf32>
    %cst_146 = arith.constant 0.000000e+00 : f32
    %414 = vector.broadcast %cst_146 : f32 to vector<1x16xf32>
    %415 = arith.subf %414, %413 : vector<1x16xf32>
    %416 = math.exp %415 : vector<1x16xf32>
    %cst_147 = arith.constant 1.000000e+00 : f32
    %417 = vector.broadcast %cst_147 : f32 to vector<1x16xf32>
    %418 = arith.addf %417, %416 : vector<1x16xf32>
    %cst_148 = arith.constant 1.000000e+00 : f32
    %419 = vector.broadcast %cst_148 : f32 to vector<1x16xf32>
    %420 = arith.divf %419, %418 : vector<1x16xf32>
    %421 = vector.extract_strided_slice %412 {offsets = [0, 16], sizes = [1, 16], strides = [1, 1]} : vector<1x64xf32> to vector<1x16xf32>
    %cst_149 = arith.constant 0.000000e+00 : f32
    %422 = vector.broadcast %cst_149 : f32 to vector<1x16xf32>
    %423 = arith.subf %422, %421 : vector<1x16xf32>
    %424 = math.exp %423 : vector<1x16xf32>
    %cst_150 = arith.constant 1.000000e+00 : f32
    %425 = vector.broadcast %cst_150 : f32 to vector<1x16xf32>
    %426 = arith.addf %425, %424 : vector<1x16xf32>
    %cst_151 = arith.constant 1.000000e+00 : f32
    %427 = vector.broadcast %cst_151 : f32 to vector<1x16xf32>
    %428 = arith.divf %427, %426 : vector<1x16xf32>
    %429 = vector.extract_strided_slice %412 {offsets = [0, 32], sizes = [1, 16], strides = [1, 1]} : vector<1x64xf32> to vector<1x16xf32>
    %430 = math.tanh %429 : vector<1x16xf32>
    %431 = vector.extract_strided_slice %412 {offsets = [0, 48], sizes = [1, 16], strides = [1, 1]} : vector<1x64xf32> to vector<1x16xf32>
    %cst_152 = arith.constant 0.000000e+00 : f32
    %432 = vector.broadcast %cst_152 : f32 to vector<1x16xf32>
    %433 = arith.subf %432, %431 : vector<1x16xf32>
    %434 = math.exp %433 : vector<1x16xf32>
    %cst_153 = arith.constant 1.000000e+00 : f32
    %435 = vector.broadcast %cst_153 : f32 to vector<1x16xf32>
    %436 = arith.addf %435, %434 : vector<1x16xf32>
    %cst_154 = arith.constant 1.000000e+00 : f32
    %437 = vector.broadcast %cst_154 : f32 to vector<1x16xf32>
    %438 = arith.divf %437, %436 : vector<1x16xf32>
    %439 = arith.mulf %428, %407 : vector<1x16xf32>
    %440 = arith.mulf %420, %430 : vector<1x16xf32>
    %441 = arith.addf %439, %440 : vector<1x16xf32>
    %442 = math.tanh %441 : vector<1x16xf32>
    %443 = arith.mulf %438, %442 : vector<1x16xf32>
    %444 = vector.extract_strided_slice %22 {offsets = [3, 0], sizes = [1, 64], strides = [1, 1]} : vector<8x64xf32> to vector<1x64xf32>
    %cst_155 = arith.constant dense<0.000000e+00> : vector<1x64xf32>
    %445 = tpu.matmul %443, %303, %cst_155 {dimension_numbers = #tpu.dot_dimension_numbers<[1], [0], [0], [1], [0, 0, 1, 1], [], []>} : vector<1x16xf32>, vector<16x64xf32>, vector<1x64xf32> -> vector<1x64xf32>
    %446 = arith.addf %444, %445 : vector<1x64xf32>
    %447 = vector.extract_strided_slice %446 {offsets = [0, 0], sizes = [1, 16], strides = [1, 1]} : vector<1x64xf32> to vector<1x16xf32>
    %cst_156 = arith.constant 0.000000e+00 : f32
    %448 = vector.broadcast %cst_156 : f32 to vector<1x16xf32>
    %449 = arith.subf %448, %447 : vector<1x16xf32>
    %450 = math.exp %449 : vector<1x16xf32>
    %cst_157 = arith.constant 1.000000e+00 : f32
    %451 = vector.broadcast %cst_157 : f32 to vector<1x16xf32>
    %452 = arith.addf %451, %450 : vector<1x16xf32>
    %cst_158 = arith.constant 1.000000e+00 : f32
    %453 = vector.broadcast %cst_158 : f32 to vector<1x16xf32>
    %454 = arith.divf %453, %452 : vector<1x16xf32>
    %455 = vector.extract_strided_slice %446 {offsets = [0, 16], sizes = [1, 16], strides = [1, 1]} : vector<1x64xf32> to vector<1x16xf32>
    %cst_159 = arith.constant 0.000000e+00 : f32
    %456 = vector.broadcast %cst_159 : f32 to vector<1x16xf32>
    %457 = arith.subf %456, %455 : vector<1x16xf32>
    %458 = math.exp %457 : vector<1x16xf32>
    %cst_160 = arith.constant 1.000000e+00 : f32
    %459 = vector.broadcast %cst_160 : f32 to vector<1x16xf32>
    %460 = arith.addf %459, %458 : vector<1x16xf32>
    %cst_161 = arith.constant 1.000000e+00 : f32
    %461 = vector.broadcast %cst_161 : f32 to vector<1x16xf32>
    %462 = arith.divf %461, %460 : vector<1x16xf32>
    %463 = vector.extract_strided_slice %446 {offsets = [0, 32], sizes = [1, 16], strides = [1, 1]} : vector<1x64xf32> to vector<1x16xf32>
    %464 = math.tanh %463 : vector<1x16xf32>
    %465 = vector.extract_strided_slice %446 {offsets = [0, 48], sizes = [1, 16], strides = [1, 1]} : vector<1x64xf32> to vector<1x16xf32>
    %cst_162 = arith.constant 0.000000e+00 : f32
    %466 = vector.broadcast %cst_162 : f32 to vector<1x16xf32>
    %467 = arith.subf %466, %465 : vector<1x16xf32>
    %468 = math.exp %467 : vector<1x16xf32>
    %cst_163 = arith.constant 1.000000e+00 : f32
    %469 = vector.broadcast %cst_163 : f32 to vector<1x16xf32>
    %470 = arith.addf %469, %468 : vector<1x16xf32>
    %cst_164 = arith.constant 1.000000e+00 : f32
    %471 = vector.broadcast %cst_164 : f32 to vector<1x16xf32>
    %472 = arith.divf %471, %470 : vector<1x16xf32>
    %473 = arith.mulf %462, %441 : vector<1x16xf32>
    %474 = arith.mulf %454, %464 : vector<1x16xf32>
    %475 = arith.addf %473, %474 : vector<1x16xf32>
    %476 = math.tanh %475 : vector<1x16xf32>
    %477 = arith.mulf %472, %476 : vector<1x16xf32>
    %478 = vector.extract_strided_slice %22 {offsets = [2, 0], sizes = [1, 64], strides = [1, 1]} : vector<8x64xf32> to vector<1x64xf32>
    %cst_165 = arith.constant dense<0.000000e+00> : vector<1x64xf32>
    %479 = tpu.matmul %477, %303, %cst_165 {dimension_numbers = #tpu.dot_dimension_numbers<[1], [0], [0], [1], [0, 0, 1, 1], [], []>} : vector<1x16xf32>, vector<16x64xf32>, vector<1x64xf32> -> vector<1x64xf32>
    %480 = arith.addf %478, %479 : vector<1x64xf32>
    %481 = vector.extract_strided_slice %480 {offsets = [0, 0], sizes = [1, 16], strides = [1, 1]} : vector<1x64xf32> to vector<1x16xf32>
    %cst_166 = arith.constant 0.000000e+00 : f32
    %482 = vector.broadcast %cst_166 : f32 to vector<1x16xf32>
    %483 = arith.subf %482, %481 : vector<1x16xf32>
    %484 = math.exp %483 : vector<1x16xf32>
    %cst_167 = arith.constant 1.000000e+00 : f32
    %485 = vector.broadcast %cst_167 : f32 to vector<1x16xf32>
    %486 = arith.addf %485, %484 : vector<1x16xf32>
    %cst_168 = arith.constant 1.000000e+00 : f32
    %487 = vector.broadcast %cst_168 : f32 to vector<1x16xf32>
    %488 = arith.divf %487, %486 : vector<1x16xf32>
    %489 = vector.extract_strided_slice %480 {offsets = [0, 16], sizes = [1, 16], strides = [1, 1]} : vector<1x64xf32> to vector<1x16xf32>
    %cst_169 = arith.constant 0.000000e+00 : f32
    %490 = vector.broadcast %cst_169 : f32 to vector<1x16xf32>
    %491 = arith.subf %490, %489 : vector<1x16xf32>
    %492 = math.exp %491 : vector<1x16xf32>
    %cst_170 = arith.constant 1.000000e+00 : f32
    %493 = vector.broadcast %cst_170 : f32 to vector<1x16xf32>
    %494 = arith.addf %493, %492 : vector<1x16xf32>
    %cst_171 = arith.constant 1.000000e+00 : f32
    %495 = vector.broadcast %cst_171 : f32 to vector<1x16xf32>
    %496 = arith.divf %495, %494 : vector<1x16xf32>
    %497 = vector.extract_strided_slice %480 {offsets = [0, 32], sizes = [1, 16], strides = [1, 1]} : vector<1x64xf32> to vector<1x16xf32>
    %498 = math.tanh %497 : vector<1x16xf32>
    %499 = vector.extract_strided_slice %480 {offsets = [0, 48], sizes = [1, 16], strides = [1, 1]} : vector<1x64xf32> to vector<1x16xf32>
    %cst_172 = arith.constant 0.000000e+00 : f32
    %500 = vector.broadcast %cst_172 : f32 to vector<1x16xf32>
    %501 = arith.subf %500, %499 : vector<1x16xf32>
    %502 = math.exp %501 : vector<1x16xf32>
    %cst_173 = arith.constant 1.000000e+00 : f32
    %503 = vector.broadcast %cst_173 : f32 to vector<1x16xf32>
    %504 = arith.addf %503, %502 : vector<1x16xf32>
    %cst_174 = arith.constant 1.000000e+00 : f32
    %505 = vector.broadcast %cst_174 : f32 to vector<1x16xf32>
    %506 = arith.divf %505, %504 : vector<1x16xf32>
    %507 = arith.mulf %496, %475 : vector<1x16xf32>
    %508 = arith.mulf %488, %498 : vector<1x16xf32>
    %509 = arith.addf %507, %508 : vector<1x16xf32>
    %510 = math.tanh %509 : vector<1x16xf32>
    %511 = arith.mulf %506, %510 : vector<1x16xf32>
    %512 = vector.extract_strided_slice %22 {offsets = [1, 0], sizes = [1, 64], strides = [1, 1]} : vector<8x64xf32> to vector<1x64xf32>
    %cst_175 = arith.constant dense<0.000000e+00> : vector<1x64xf32>
    %513 = tpu.matmul %511, %303, %cst_175 {dimension_numbers = #tpu.dot_dimension_numbers<[1], [0], [0], [1], [0, 0, 1, 1], [], []>} : vector<1x16xf32>, vector<16x64xf32>, vector<1x64xf32> -> vector<1x64xf32>
    %514 = arith.addf %512, %513 : vector<1x64xf32>
    %515 = vector.extract_strided_slice %514 {offsets = [0, 0], sizes = [1, 16], strides = [1, 1]} : vector<1x64xf32> to vector<1x16xf32>
    %cst_176 = arith.constant 0.000000e+00 : f32
    %516 = vector.broadcast %cst_176 : f32 to vector<1x16xf32>
    %517 = arith.subf %516, %515 : vector<1x16xf32>
    %518 = math.exp %517 : vector<1x16xf32>
    %cst_177 = arith.constant 1.000000e+00 : f32
    %519 = vector.broadcast %cst_177 : f32 to vector<1x16xf32>
    %520 = arith.addf %519, %518 : vector<1x16xf32>
    %cst_178 = arith.constant 1.000000e+00 : f32
    %521 = vector.broadcast %cst_178 : f32 to vector<1x16xf32>
    %522 = arith.divf %521, %520 : vector<1x16xf32>
    %523 = vector.extract_strided_slice %514 {offsets = [0, 16], sizes = [1, 16], strides = [1, 1]} : vector<1x64xf32> to vector<1x16xf32>
    %cst_179 = arith.constant 0.000000e+00 : f32
    %524 = vector.broadcast %cst_179 : f32 to vector<1x16xf32>
    %525 = arith.subf %524, %523 : vector<1x16xf32>
    %526 = math.exp %525 : vector<1x16xf32>
    %cst_180 = arith.constant 1.000000e+00 : f32
    %527 = vector.broadcast %cst_180 : f32 to vector<1x16xf32>
    %528 = arith.addf %527, %526 : vector<1x16xf32>
    %cst_181 = arith.constant 1.000000e+00 : f32
    %529 = vector.broadcast %cst_181 : f32 to vector<1x16xf32>
    %530 = arith.divf %529, %528 : vector<1x16xf32>
    %531 = vector.extract_strided_slice %514 {offsets = [0, 32], sizes = [1, 16], strides = [1, 1]} : vector<1x64xf32> to vector<1x16xf32>
    %532 = math.tanh %531 : vector<1x16xf32>
    %533 = vector.extract_strided_slice %514 {offsets = [0, 48], sizes = [1, 16], strides = [1, 1]} : vector<1x64xf32> to vector<1x16xf32>
    %cst_182 = arith.constant 0.000000e+00 : f32
    %534 = vector.broadcast %cst_182 : f32 to vector<1x16xf32>
    %535 = arith.subf %534, %533 : vector<1x16xf32>
    %536 = math.exp %535 : vector<1x16xf32>
    %cst_183 = arith.constant 1.000000e+00 : f32
    %537 = vector.broadcast %cst_183 : f32 to vector<1x16xf32>
    %538 = arith.addf %537, %536 : vector<1x16xf32>
    %cst_184 = arith.constant 1.000000e+00 : f32
    %539 = vector.broadcast %cst_184 : f32 to vector<1x16xf32>
    %540 = arith.divf %539, %538 : vector<1x16xf32>
    %541 = arith.mulf %530, %509 : vector<1x16xf32>
    %542 = arith.mulf %522, %532 : vector<1x16xf32>
    %543 = arith.addf %541, %542 : vector<1x16xf32>
    %544 = math.tanh %543 : vector<1x16xf32>
    %545 = arith.mulf %540, %544 : vector<1x16xf32>
    %546 = vector.extract_strided_slice %22 {offsets = [0, 0], sizes = [1, 64], strides = [1, 1]} : vector<8x64xf32> to vector<1x64xf32>
    %cst_185 = arith.constant dense<0.000000e+00> : vector<1x64xf32>
    %547 = tpu.matmul %545, %303, %cst_185 {dimension_numbers = #tpu.dot_dimension_numbers<[1], [0], [0], [1], [0, 0, 1, 1], [], []>} : vector<1x16xf32>, vector<16x64xf32>, vector<1x64xf32> -> vector<1x64xf32>
    %548 = arith.addf %546, %547 : vector<1x64xf32>
    %549 = vector.extract_strided_slice %548 {offsets = [0, 0], sizes = [1, 16], strides = [1, 1]} : vector<1x64xf32> to vector<1x16xf32>
    %cst_186 = arith.constant 0.000000e+00 : f32
    %550 = vector.broadcast %cst_186 : f32 to vector<1x16xf32>
    %551 = arith.subf %550, %549 : vector<1x16xf32>
    %552 = math.exp %551 : vector<1x16xf32>
    %cst_187 = arith.constant 1.000000e+00 : f32
    %553 = vector.broadcast %cst_187 : f32 to vector<1x16xf32>
    %554 = arith.addf %553, %552 : vector<1x16xf32>
    %cst_188 = arith.constant 1.000000e+00 : f32
    %555 = vector.broadcast %cst_188 : f32 to vector<1x16xf32>
    %556 = arith.divf %555, %554 : vector<1x16xf32>
    %557 = vector.extract_strided_slice %548 {offsets = [0, 16], sizes = [1, 16], strides = [1, 1]} : vector<1x64xf32> to vector<1x16xf32>
    %cst_189 = arith.constant 0.000000e+00 : f32
    %558 = vector.broadcast %cst_189 : f32 to vector<1x16xf32>
    %559 = arith.subf %558, %557 : vector<1x16xf32>
    %560 = math.exp %559 : vector<1x16xf32>
    %cst_190 = arith.constant 1.000000e+00 : f32
    %561 = vector.broadcast %cst_190 : f32 to vector<1x16xf32>
    %562 = arith.addf %561, %560 : vector<1x16xf32>
    %cst_191 = arith.constant 1.000000e+00 : f32
    %563 = vector.broadcast %cst_191 : f32 to vector<1x16xf32>
    %564 = arith.divf %563, %562 : vector<1x16xf32>
    %565 = vector.extract_strided_slice %548 {offsets = [0, 32], sizes = [1, 16], strides = [1, 1]} : vector<1x64xf32> to vector<1x16xf32>
    %566 = math.tanh %565 : vector<1x16xf32>
    %567 = vector.extract_strided_slice %548 {offsets = [0, 48], sizes = [1, 16], strides = [1, 1]} : vector<1x64xf32> to vector<1x16xf32>
    %cst_192 = arith.constant 0.000000e+00 : f32
    %568 = vector.broadcast %cst_192 : f32 to vector<1x16xf32>
    %569 = arith.subf %568, %567 : vector<1x16xf32>
    %570 = math.exp %569 : vector<1x16xf32>
    %cst_193 = arith.constant 1.000000e+00 : f32
    %571 = vector.broadcast %cst_193 : f32 to vector<1x16xf32>
    %572 = arith.addf %571, %570 : vector<1x16xf32>
    %cst_194 = arith.constant 1.000000e+00 : f32
    %573 = vector.broadcast %cst_194 : f32 to vector<1x16xf32>
    %574 = arith.divf %573, %572 : vector<1x16xf32>
    %575 = arith.mulf %564, %543 : vector<1x16xf32>
    %576 = arith.mulf %556, %566 : vector<1x16xf32>
    %577 = arith.addf %575, %576 : vector<1x16xf32>
    %578 = math.tanh %577 : vector<1x16xf32>
    %579 = arith.mulf %574, %578 : vector<1x16xf32>
    %580 = tpu.concatenate %579, %545, %511, %477, %443, %409, %375, %341 in 0 : vector<1x16xf32>, vector<1x16xf32>, vector<1x16xf32>, vector<1x16xf32>, vector<1x16xf32>, vector<1x16xf32>, vector<1x16xf32>, vector<1x16xf32> -> vector<8x16xf32>
    %c0_195 = arith.constant 0 : index
    %c0_196 = arith.constant 0 : index
    %c0_197 = arith.constant 0 : index
    %581 = vector.load %arg6[%c0_195, %c0_196, %c0_197] : memref<2x32x64xf32, #tpu.memory_space<vmem>>, vector<1x16x64xf32>
    %582 = vector.shape_cast %581 : vector<1x16x64xf32> to vector<16x64xf32>
    %cst_198 = arith.constant dense<0.000000e+00> : vector<8x64xf32>
    %583 = tpu.matmul %301, %582, %cst_198 {dimension_numbers = #tpu.dot_dimension_numbers<[1], [0], [0], [1], [0, 0, 1, 1], [], []>} : vector<8x16xf32>, vector<16x64xf32>, vector<8x64xf32> -> vector<8x64xf32>
    %c0_199 = arith.constant 0 : index
    %c16 = arith.constant 16 : index
    %c0_200 = arith.constant 0 : index
    %584 = vector.load %arg6[%c0_199, %c16, %c0_200] : memref<2x32x64xf32, #tpu.memory_space<vmem>>, vector<1x16x64xf32>
    %585 = vector.shape_cast %584 : vector<1x16x64xf32> to vector<16x64xf32>
    %cst_201 = arith.constant dense<0.000000e+00> : vector<8x64xf32>
    %586 = tpu.matmul %580, %585, %cst_201 {dimension_numbers = #tpu.dot_dimension_numbers<[1], [0], [0], [1], [0, 0, 1, 1], [], []>} : vector<8x16xf32>, vector<16x64xf32>, vector<8x64xf32> -> vector<8x64xf32>
    %587 = arith.addf %583, %586 : vector<8x64xf32>
    %c2 = arith.constant 2 : index
    %c0_202 = arith.constant 0 : index
    %c0_203 = arith.constant 0 : index
    %588 = vector.load %arg8[%c2, %c0_202, %c0_203] : memref<4x1x64xf32, #tpu.memory_space<vmem>>, vector<1x1x64xf32>
    %589 = vector.shape_cast %588 : vector<1x1x64xf32> to vector<1x64xf32>
    %590 = vector.broadcast %589 : vector<1x64xf32> to vector<8x64xf32>
    %591 = arith.addf %587, %590 : vector<8x64xf32>
    %c2_204 = arith.constant 2 : index
    %c0_205 = arith.constant 0 : index
    %c0_206 = arith.constant 0 : index
    %592 = vector.load %arg7[%c2_204, %c0_205, %c0_206] : memref<4x16x64xf32, #tpu.memory_space<vmem>>, vector<1x16x64xf32>
    %593 = vector.shape_cast %592 : vector<1x16x64xf32> to vector<16x64xf32>
    %c0_207 = arith.constant 0 : index
    %c2_208 = arith.constant 2 : index
    %c0_209 = arith.constant 0 : index
    %594 = vector.load %arg3[%c0_207, %c2_208, %c0_209] : memref<1x4x16xf32, #tpu.memory_space<vmem>>, vector<1x1x16xf32>
    %595 = vector.shape_cast %594 : vector<1x1x16xf32> to vector<1x16xf32>
    %c0_210 = arith.constant 0 : index
    %c2_211 = arith.constant 2 : index
    %c0_212 = arith.constant 0 : index
    %596 = vector.load %arg4[%c0_210, %c2_211, %c0_212] : memref<1x4x16xf32, #tpu.memory_space<vmem>>, vector<1x1x16xf32>
    %597 = vector.shape_cast %596 : vector<1x1x16xf32> to vector<1x16xf32>
    %598 = vector.extract_strided_slice %591 {offsets = [0, 0], sizes = [1, 64], strides = [1, 1]} : vector<8x64xf32> to vector<1x64xf32>
    %cst_213 = arith.constant dense<0.000000e+00> : vector<1x64xf32>
    %599 = tpu.matmul %595, %593, %cst_213 {dimension_numbers = #tpu.dot_dimension_numbers<[1], [0], [0], [1], [0, 0, 1, 1], [], []>} : vector<1x16xf32>, vector<16x64xf32>, vector<1x64xf32> -> vector<1x64xf32>
    %600 = arith.addf %598, %599 : vector<1x64xf32>
    %601 = vector.extract_strided_slice %600 {offsets = [0, 0], sizes = [1, 16], strides = [1, 1]} : vector<1x64xf32> to vector<1x16xf32>
    %cst_214 = arith.constant 0.000000e+00 : f32
    %602 = vector.broadcast %cst_214 : f32 to vector<1x16xf32>
    %603 = arith.subf %602, %601 : vector<1x16xf32>
    %604 = math.exp %603 : vector<1x16xf32>
    %cst_215 = arith.constant 1.000000e+00 : f32
    %605 = vector.broadcast %cst_215 : f32 to vector<1x16xf32>
    %606 = arith.addf %605, %604 : vector<1x16xf32>
    %cst_216 = arith.constant 1.000000e+00 : f32
    %607 = vector.broadcast %cst_216 : f32 to vector<1x16xf32>
    %608 = arith.divf %607, %606 : vector<1x16xf32>
    %609 = vector.extract_strided_slice %600 {offsets = [0, 16], sizes = [1, 16], strides = [1, 1]} : vector<1x64xf32> to vector<1x16xf32>
    %cst_217 = arith.constant 0.000000e+00 : f32
    %610 = vector.broadcast %cst_217 : f32 to vector<1x16xf32>
    %611 = arith.subf %610, %609 : vector<1x16xf32>
    %612 = math.exp %611 : vector<1x16xf32>
    %cst_218 = arith.constant 1.000000e+00 : f32
    %613 = vector.broadcast %cst_218 : f32 to vector<1x16xf32>
    %614 = arith.addf %613, %612 : vector<1x16xf32>
    %cst_219 = arith.constant 1.000000e+00 : f32
    %615 = vector.broadcast %cst_219 : f32 to vector<1x16xf32>
    %616 = arith.divf %615, %614 : vector<1x16xf32>
    %617 = vector.extract_strided_slice %600 {offsets = [0, 32], sizes = [1, 16], strides = [1, 1]} : vector<1x64xf32> to vector<1x16xf32>
    %618 = math.tanh %617 : vector<1x16xf32>
    %619 = vector.extract_strided_slice %600 {offsets = [0, 48], sizes = [1, 16], strides = [1, 1]} : vector<1x64xf32> to vector<1x16xf32>
    %cst_220 = arith.constant 0.000000e+00 : f32
    %620 = vector.broadcast %cst_220 : f32 to vector<1x16xf32>
    %621 = arith.subf %620, %619 : vector<1x16xf32>
    %622 = math.exp %621 : vector<1x16xf32>
    %cst_221 = arith.constant 1.000000e+00 : f32
    %623 = vector.broadcast %cst_221 : f32 to vector<1x16xf32>
    %624 = arith.addf %623, %622 : vector<1x16xf32>
    %cst_222 = arith.constant 1.000000e+00 : f32
    %625 = vector.broadcast %cst_222 : f32 to vector<1x16xf32>
    %626 = arith.divf %625, %624 : vector<1x16xf32>
    %627 = arith.mulf %616, %597 : vector<1x16xf32>
    %628 = arith.mulf %608, %618 : vector<1x16xf32>
    %629 = arith.addf %627, %628 : vector<1x16xf32>
    %630 = math.tanh %629 : vector<1x16xf32>
    %631 = arith.mulf %626, %630 : vector<1x16xf32>
    %632 = vector.extract_strided_slice %591 {offsets = [1, 0], sizes = [1, 64], strides = [1, 1]} : vector<8x64xf32> to vector<1x64xf32>
    %cst_223 = arith.constant dense<0.000000e+00> : vector<1x64xf32>
    %633 = tpu.matmul %631, %593, %cst_223 {dimension_numbers = #tpu.dot_dimension_numbers<[1], [0], [0], [1], [0, 0, 1, 1], [], []>} : vector<1x16xf32>, vector<16x64xf32>, vector<1x64xf32> -> vector<1x64xf32>
    %634 = arith.addf %632, %633 : vector<1x64xf32>
    %635 = vector.extract_strided_slice %634 {offsets = [0, 0], sizes = [1, 16], strides = [1, 1]} : vector<1x64xf32> to vector<1x16xf32>
    %cst_224 = arith.constant 0.000000e+00 : f32
    %636 = vector.broadcast %cst_224 : f32 to vector<1x16xf32>
    %637 = arith.subf %636, %635 : vector<1x16xf32>
    %638 = math.exp %637 : vector<1x16xf32>
    %cst_225 = arith.constant 1.000000e+00 : f32
    %639 = vector.broadcast %cst_225 : f32 to vector<1x16xf32>
    %640 = arith.addf %639, %638 : vector<1x16xf32>
    %cst_226 = arith.constant 1.000000e+00 : f32
    %641 = vector.broadcast %cst_226 : f32 to vector<1x16xf32>
    %642 = arith.divf %641, %640 : vector<1x16xf32>
    %643 = vector.extract_strided_slice %634 {offsets = [0, 16], sizes = [1, 16], strides = [1, 1]} : vector<1x64xf32> to vector<1x16xf32>
    %cst_227 = arith.constant 0.000000e+00 : f32
    %644 = vector.broadcast %cst_227 : f32 to vector<1x16xf32>
    %645 = arith.subf %644, %643 : vector<1x16xf32>
    %646 = math.exp %645 : vector<1x16xf32>
    %cst_228 = arith.constant 1.000000e+00 : f32
    %647 = vector.broadcast %cst_228 : f32 to vector<1x16xf32>
    %648 = arith.addf %647, %646 : vector<1x16xf32>
    %cst_229 = arith.constant 1.000000e+00 : f32
    %649 = vector.broadcast %cst_229 : f32 to vector<1x16xf32>
    %650 = arith.divf %649, %648 : vector<1x16xf32>
    %651 = vector.extract_strided_slice %634 {offsets = [0, 32], sizes = [1, 16], strides = [1, 1]} : vector<1x64xf32> to vector<1x16xf32>
    %652 = math.tanh %651 : vector<1x16xf32>
    %653 = vector.extract_strided_slice %634 {offsets = [0, 48], sizes = [1, 16], strides = [1, 1]} : vector<1x64xf32> to vector<1x16xf32>
    %cst_230 = arith.constant 0.000000e+00 : f32
    %654 = vector.broadcast %cst_230 : f32 to vector<1x16xf32>
    %655 = arith.subf %654, %653 : vector<1x16xf32>
    %656 = math.exp %655 : vector<1x16xf32>
    %cst_231 = arith.constant 1.000000e+00 : f32
    %657 = vector.broadcast %cst_231 : f32 to vector<1x16xf32>
    %658 = arith.addf %657, %656 : vector<1x16xf32>
    %cst_232 = arith.constant 1.000000e+00 : f32
    %659 = vector.broadcast %cst_232 : f32 to vector<1x16xf32>
    %660 = arith.divf %659, %658 : vector<1x16xf32>
    %661 = arith.mulf %650, %629 : vector<1x16xf32>
    %662 = arith.mulf %642, %652 : vector<1x16xf32>
    %663 = arith.addf %661, %662 : vector<1x16xf32>
    %664 = math.tanh %663 : vector<1x16xf32>
    %665 = arith.mulf %660, %664 : vector<1x16xf32>
    %666 = vector.extract_strided_slice %591 {offsets = [2, 0], sizes = [1, 64], strides = [1, 1]} : vector<8x64xf32> to vector<1x64xf32>
    %cst_233 = arith.constant dense<0.000000e+00> : vector<1x64xf32>
    %667 = tpu.matmul %665, %593, %cst_233 {dimension_numbers = #tpu.dot_dimension_numbers<[1], [0], [0], [1], [0, 0, 1, 1], [], []>} : vector<1x16xf32>, vector<16x64xf32>, vector<1x64xf32> -> vector<1x64xf32>
    %668 = arith.addf %666, %667 : vector<1x64xf32>
    %669 = vector.extract_strided_slice %668 {offsets = [0, 0], sizes = [1, 16], strides = [1, 1]} : vector<1x64xf32> to vector<1x16xf32>
    %cst_234 = arith.constant 0.000000e+00 : f32
    %670 = vector.broadcast %cst_234 : f32 to vector<1x16xf32>
    %671 = arith.subf %670, %669 : vector<1x16xf32>
    %672 = math.exp %671 : vector<1x16xf32>
    %cst_235 = arith.constant 1.000000e+00 : f32
    %673 = vector.broadcast %cst_235 : f32 to vector<1x16xf32>
    %674 = arith.addf %673, %672 : vector<1x16xf32>
    %cst_236 = arith.constant 1.000000e+00 : f32
    %675 = vector.broadcast %cst_236 : f32 to vector<1x16xf32>
    %676 = arith.divf %675, %674 : vector<1x16xf32>
    %677 = vector.extract_strided_slice %668 {offsets = [0, 16], sizes = [1, 16], strides = [1, 1]} : vector<1x64xf32> to vector<1x16xf32>
    %cst_237 = arith.constant 0.000000e+00 : f32
    %678 = vector.broadcast %cst_237 : f32 to vector<1x16xf32>
    %679 = arith.subf %678, %677 : vector<1x16xf32>
    %680 = math.exp %679 : vector<1x16xf32>
    %cst_238 = arith.constant 1.000000e+00 : f32
    %681 = vector.broadcast %cst_238 : f32 to vector<1x16xf32>
    %682 = arith.addf %681, %680 : vector<1x16xf32>
    %cst_239 = arith.constant 1.000000e+00 : f32
    %683 = vector.broadcast %cst_239 : f32 to vector<1x16xf32>
    %684 = arith.divf %683, %682 : vector<1x16xf32>
    %685 = vector.extract_strided_slice %668 {offsets = [0, 32], sizes = [1, 16], strides = [1, 1]} : vector<1x64xf32> to vector<1x16xf32>
    %686 = math.tanh %685 : vector<1x16xf32>
    %687 = vector.extract_strided_slice %668 {offsets = [0, 48], sizes = [1, 16], strides = [1, 1]} : vector<1x64xf32> to vector<1x16xf32>
    %cst_240 = arith.constant 0.000000e+00 : f32
    %688 = vector.broadcast %cst_240 : f32 to vector<1x16xf32>
    %689 = arith.subf %688, %687 : vector<1x16xf32>
    %690 = math.exp %689 : vector<1x16xf32>
    %cst_241 = arith.constant 1.000000e+00 : f32
    %691 = vector.broadcast %cst_241 : f32 to vector<1x16xf32>
    %692 = arith.addf %691, %690 : vector<1x16xf32>
    %cst_242 = arith.constant 1.000000e+00 : f32
    %693 = vector.broadcast %cst_242 : f32 to vector<1x16xf32>
    %694 = arith.divf %693, %692 : vector<1x16xf32>
    %695 = arith.mulf %684, %663 : vector<1x16xf32>
    %696 = arith.mulf %676, %686 : vector<1x16xf32>
    %697 = arith.addf %695, %696 : vector<1x16xf32>
    %698 = math.tanh %697 : vector<1x16xf32>
    %699 = arith.mulf %694, %698 : vector<1x16xf32>
    %700 = vector.extract_strided_slice %591 {offsets = [3, 0], sizes = [1, 64], strides = [1, 1]} : vector<8x64xf32> to vector<1x64xf32>
    %cst_243 = arith.constant dense<0.000000e+00> : vector<1x64xf32>
    %701 = tpu.matmul %699, %593, %cst_243 {dimension_numbers = #tpu.dot_dimension_numbers<[1], [0], [0], [1], [0, 0, 1, 1], [], []>} : vector<1x16xf32>, vector<16x64xf32>, vector<1x64xf32> -> vector<1x64xf32>
    %702 = arith.addf %700, %701 : vector<1x64xf32>
    %703 = vector.extract_strided_slice %702 {offsets = [0, 0], sizes = [1, 16], strides = [1, 1]} : vector<1x64xf32> to vector<1x16xf32>
    %cst_244 = arith.constant 0.000000e+00 : f32
    %704 = vector.broadcast %cst_244 : f32 to vector<1x16xf32>
    %705 = arith.subf %704, %703 : vector<1x16xf32>
    %706 = math.exp %705 : vector<1x16xf32>
    %cst_245 = arith.constant 1.000000e+00 : f32
    %707 = vector.broadcast %cst_245 : f32 to vector<1x16xf32>
    %708 = arith.addf %707, %706 : vector<1x16xf32>
    %cst_246 = arith.constant 1.000000e+00 : f32
    %709 = vector.broadcast %cst_246 : f32 to vector<1x16xf32>
    %710 = arith.divf %709, %708 : vector<1x16xf32>
    %711 = vector.extract_strided_slice %702 {offsets = [0, 16], sizes = [1, 16], strides = [1, 1]} : vector<1x64xf32> to vector<1x16xf32>
    %cst_247 = arith.constant 0.000000e+00 : f32
    %712 = vector.broadcast %cst_247 : f32 to vector<1x16xf32>
    %713 = arith.subf %712, %711 : vector<1x16xf32>
    %714 = math.exp %713 : vector<1x16xf32>
    %cst_248 = arith.constant 1.000000e+00 : f32
    %715 = vector.broadcast %cst_248 : f32 to vector<1x16xf32>
    %716 = arith.addf %715, %714 : vector<1x16xf32>
    %cst_249 = arith.constant 1.000000e+00 : f32
    %717 = vector.broadcast %cst_249 : f32 to vector<1x16xf32>
    %718 = arith.divf %717, %716 : vector<1x16xf32>
    %719 = vector.extract_strided_slice %702 {offsets = [0, 32], sizes = [1, 16], strides = [1, 1]} : vector<1x64xf32> to vector<1x16xf32>
    %720 = math.tanh %719 : vector<1x16xf32>
    %721 = vector.extract_strided_slice %702 {offsets = [0, 48], sizes = [1, 16], strides = [1, 1]} : vector<1x64xf32> to vector<1x16xf32>
    %cst_250 = arith.constant 0.000000e+00 : f32
    %722 = vector.broadcast %cst_250 : f32 to vector<1x16xf32>
    %723 = arith.subf %722, %721 : vector<1x16xf32>
    %724 = math.exp %723 : vector<1x16xf32>
    %cst_251 = arith.constant 1.000000e+00 : f32
    %725 = vector.broadcast %cst_251 : f32 to vector<1x16xf32>
    %726 = arith.addf %725, %724 : vector<1x16xf32>
    %cst_252 = arith.constant 1.000000e+00 : f32
    %727 = vector.broadcast %cst_252 : f32 to vector<1x16xf32>
    %728 = arith.divf %727, %726 : vector<1x16xf32>
    %729 = arith.mulf %718, %697 : vector<1x16xf32>
    %730 = arith.mulf %710, %720 : vector<1x16xf32>
    %731 = arith.addf %729, %730 : vector<1x16xf32>
    %732 = math.tanh %731 : vector<1x16xf32>
    %733 = arith.mulf %728, %732 : vector<1x16xf32>
    %734 = vector.extract_strided_slice %591 {offsets = [4, 0], sizes = [1, 64], strides = [1, 1]} : vector<8x64xf32> to vector<1x64xf32>
    %cst_253 = arith.constant dense<0.000000e+00> : vector<1x64xf32>
    %735 = tpu.matmul %733, %593, %cst_253 {dimension_numbers = #tpu.dot_dimension_numbers<[1], [0], [0], [1], [0, 0, 1, 1], [], []>} : vector<1x16xf32>, vector<16x64xf32>, vector<1x64xf32> -> vector<1x64xf32>
    %736 = arith.addf %734, %735 : vector<1x64xf32>
    %737 = vector.extract_strided_slice %736 {offsets = [0, 0], sizes = [1, 16], strides = [1, 1]} : vector<1x64xf32> to vector<1x16xf32>
    %cst_254 = arith.constant 0.000000e+00 : f32
    %738 = vector.broadcast %cst_254 : f32 to vector<1x16xf32>
    %739 = arith.subf %738, %737 : vector<1x16xf32>
    %740 = math.exp %739 : vector<1x16xf32>
    %cst_255 = arith.constant 1.000000e+00 : f32
    %741 = vector.broadcast %cst_255 : f32 to vector<1x16xf32>
    %742 = arith.addf %741, %740 : vector<1x16xf32>
    %cst_256 = arith.constant 1.000000e+00 : f32
    %743 = vector.broadcast %cst_256 : f32 to vector<1x16xf32>
    %744 = arith.divf %743, %742 : vector<1x16xf32>
    %745 = vector.extract_strided_slice %736 {offsets = [0, 16], sizes = [1, 16], strides = [1, 1]} : vector<1x64xf32> to vector<1x16xf32>
    %cst_257 = arith.constant 0.000000e+00 : f32
    %746 = vector.broadcast %cst_257 : f32 to vector<1x16xf32>
    %747 = arith.subf %746, %745 : vector<1x16xf32>
    %748 = math.exp %747 : vector<1x16xf32>
    %cst_258 = arith.constant 1.000000e+00 : f32
    %749 = vector.broadcast %cst_258 : f32 to vector<1x16xf32>
    %750 = arith.addf %749, %748 : vector<1x16xf32>
    %cst_259 = arith.constant 1.000000e+00 : f32
    %751 = vector.broadcast %cst_259 : f32 to vector<1x16xf32>
    %752 = arith.divf %751, %750 : vector<1x16xf32>
    %753 = vector.extract_strided_slice %736 {offsets = [0, 32], sizes = [1, 16], strides = [1, 1]} : vector<1x64xf32> to vector<1x16xf32>
    %754 = math.tanh %753 : vector<1x16xf32>
    %755 = vector.extract_strided_slice %736 {offsets = [0, 48], sizes = [1, 16], strides = [1, 1]} : vector<1x64xf32> to vector<1x16xf32>
    %cst_260 = arith.constant 0.000000e+00 : f32
    %756 = vector.broadcast %cst_260 : f32 to vector<1x16xf32>
    %757 = arith.subf %756, %755 : vector<1x16xf32>
    %758 = math.exp %757 : vector<1x16xf32>
    %cst_261 = arith.constant 1.000000e+00 : f32
    %759 = vector.broadcast %cst_261 : f32 to vector<1x16xf32>
    %760 = arith.addf %759, %758 : vector<1x16xf32>
    %cst_262 = arith.constant 1.000000e+00 : f32
    %761 = vector.broadcast %cst_262 : f32 to vector<1x16xf32>
    %762 = arith.divf %761, %760 : vector<1x16xf32>
    %763 = arith.mulf %752, %731 : vector<1x16xf32>
    %764 = arith.mulf %744, %754 : vector<1x16xf32>
    %765 = arith.addf %763, %764 : vector<1x16xf32>
    %766 = math.tanh %765 : vector<1x16xf32>
    %767 = arith.mulf %762, %766 : vector<1x16xf32>
    %768 = vector.extract_strided_slice %591 {offsets = [5, 0], sizes = [1, 64], strides = [1, 1]} : vector<8x64xf32> to vector<1x64xf32>
    %cst_263 = arith.constant dense<0.000000e+00> : vector<1x64xf32>
    %769 = tpu.matmul %767, %593, %cst_263 {dimension_numbers = #tpu.dot_dimension_numbers<[1], [0], [0], [1], [0, 0, 1, 1], [], []>} : vector<1x16xf32>, vector<16x64xf32>, vector<1x64xf32> -> vector<1x64xf32>
    %770 = arith.addf %768, %769 : vector<1x64xf32>
    %771 = vector.extract_strided_slice %770 {offsets = [0, 0], sizes = [1, 16], strides = [1, 1]} : vector<1x64xf32> to vector<1x16xf32>
    %cst_264 = arith.constant 0.000000e+00 : f32
    %772 = vector.broadcast %cst_264 : f32 to vector<1x16xf32>
    %773 = arith.subf %772, %771 : vector<1x16xf32>
    %774 = math.exp %773 : vector<1x16xf32>
    %cst_265 = arith.constant 1.000000e+00 : f32
    %775 = vector.broadcast %cst_265 : f32 to vector<1x16xf32>
    %776 = arith.addf %775, %774 : vector<1x16xf32>
    %cst_266 = arith.constant 1.000000e+00 : f32
    %777 = vector.broadcast %cst_266 : f32 to vector<1x16xf32>
    %778 = arith.divf %777, %776 : vector<1x16xf32>
    %779 = vector.extract_strided_slice %770 {offsets = [0, 16], sizes = [1, 16], strides = [1, 1]} : vector<1x64xf32> to vector<1x16xf32>
    %cst_267 = arith.constant 0.000000e+00 : f32
    %780 = vector.broadcast %cst_267 : f32 to vector<1x16xf32>
    %781 = arith.subf %780, %779 : vector<1x16xf32>
    %782 = math.exp %781 : vector<1x16xf32>
    %cst_268 = arith.constant 1.000000e+00 : f32
    %783 = vector.broadcast %cst_268 : f32 to vector<1x16xf32>
    %784 = arith.addf %783, %782 : vector<1x16xf32>
    %cst_269 = arith.constant 1.000000e+00 : f32
    %785 = vector.broadcast %cst_269 : f32 to vector<1x16xf32>
    %786 = arith.divf %785, %784 : vector<1x16xf32>
    %787 = vector.extract_strided_slice %770 {offsets = [0, 32], sizes = [1, 16], strides = [1, 1]} : vector<1x64xf32> to vector<1x16xf32>
    %788 = math.tanh %787 : vector<1x16xf32>
    %789 = vector.extract_strided_slice %770 {offsets = [0, 48], sizes = [1, 16], strides = [1, 1]} : vector<1x64xf32> to vector<1x16xf32>
    %cst_270 = arith.constant 0.000000e+00 : f32
    %790 = vector.broadcast %cst_270 : f32 to vector<1x16xf32>
    %791 = arith.subf %790, %789 : vector<1x16xf32>
    %792 = math.exp %791 : vector<1x16xf32>
    %cst_271 = arith.constant 1.000000e+00 : f32
    %793 = vector.broadcast %cst_271 : f32 to vector<1x16xf32>
    %794 = arith.addf %793, %792 : vector<1x16xf32>
    %cst_272 = arith.constant 1.000000e+00 : f32
    %795 = vector.broadcast %cst_272 : f32 to vector<1x16xf32>
    %796 = arith.divf %795, %794 : vector<1x16xf32>
    %797 = arith.mulf %786, %765 : vector<1x16xf32>
    %798 = arith.mulf %778, %788 : vector<1x16xf32>
    %799 = arith.addf %797, %798 : vector<1x16xf32>
    %800 = math.tanh %799 : vector<1x16xf32>
    %801 = arith.mulf %796, %800 : vector<1x16xf32>
    %802 = vector.extract_strided_slice %591 {offsets = [6, 0], sizes = [1, 64], strides = [1, 1]} : vector<8x64xf32> to vector<1x64xf32>
    %cst_273 = arith.constant dense<0.000000e+00> : vector<1x64xf32>
    %803 = tpu.matmul %801, %593, %cst_273 {dimension_numbers = #tpu.dot_dimension_numbers<[1], [0], [0], [1], [0, 0, 1, 1], [], []>} : vector<1x16xf32>, vector<16x64xf32>, vector<1x64xf32> -> vector<1x64xf32>
    %804 = arith.addf %802, %803 : vector<1x64xf32>
    %805 = vector.extract_strided_slice %804 {offsets = [0, 0], sizes = [1, 16], strides = [1, 1]} : vector<1x64xf32> to vector<1x16xf32>
    %cst_274 = arith.constant 0.000000e+00 : f32
    %806 = vector.broadcast %cst_274 : f32 to vector<1x16xf32>
    %807 = arith.subf %806, %805 : vector<1x16xf32>
    %808 = math.exp %807 : vector<1x16xf32>
    %cst_275 = arith.constant 1.000000e+00 : f32
    %809 = vector.broadcast %cst_275 : f32 to vector<1x16xf32>
    %810 = arith.addf %809, %808 : vector<1x16xf32>
    %cst_276 = arith.constant 1.000000e+00 : f32
    %811 = vector.broadcast %cst_276 : f32 to vector<1x16xf32>
    %812 = arith.divf %811, %810 : vector<1x16xf32>
    %813 = vector.extract_strided_slice %804 {offsets = [0, 16], sizes = [1, 16], strides = [1, 1]} : vector<1x64xf32> to vector<1x16xf32>
    %cst_277 = arith.constant 0.000000e+00 : f32
    %814 = vector.broadcast %cst_277 : f32 to vector<1x16xf32>
    %815 = arith.subf %814, %813 : vector<1x16xf32>
    %816 = math.exp %815 : vector<1x16xf32>
    %cst_278 = arith.constant 1.000000e+00 : f32
    %817 = vector.broadcast %cst_278 : f32 to vector<1x16xf32>
    %818 = arith.addf %817, %816 : vector<1x16xf32>
    %cst_279 = arith.constant 1.000000e+00 : f32
    %819 = vector.broadcast %cst_279 : f32 to vector<1x16xf32>
    %820 = arith.divf %819, %818 : vector<1x16xf32>
    %821 = vector.extract_strided_slice %804 {offsets = [0, 32], sizes = [1, 16], strides = [1, 1]} : vector<1x64xf32> to vector<1x16xf32>
    %822 = math.tanh %821 : vector<1x16xf32>
    %823 = vector.extract_strided_slice %804 {offsets = [0, 48], sizes = [1, 16], strides = [1, 1]} : vector<1x64xf32> to vector<1x16xf32>
    %cst_280 = arith.constant 0.000000e+00 : f32
    %824 = vector.broadcast %cst_280 : f32 to vector<1x16xf32>
    %825 = arith.subf %824, %823 : vector<1x16xf32>
    %826 = math.exp %825 : vector<1x16xf32>
    %cst_281 = arith.constant 1.000000e+00 : f32
    %827 = vector.broadcast %cst_281 : f32 to vector<1x16xf32>
    %828 = arith.addf %827, %826 : vector<1x16xf32>
    %cst_282 = arith.constant 1.000000e+00 : f32
    %829 = vector.broadcast %cst_282 : f32 to vector<1x16xf32>
    %830 = arith.divf %829, %828 : vector<1x16xf32>
    %831 = arith.mulf %820, %799 : vector<1x16xf32>
    %832 = arith.mulf %812, %822 : vector<1x16xf32>
    %833 = arith.addf %831, %832 : vector<1x16xf32>
    %834 = math.tanh %833 : vector<1x16xf32>
    %835 = arith.mulf %830, %834 : vector<1x16xf32>
    %836 = vector.extract_strided_slice %591 {offsets = [7, 0], sizes = [1, 64], strides = [1, 1]} : vector<8x64xf32> to vector<1x64xf32>
    %cst_283 = arith.constant dense<0.000000e+00> : vector<1x64xf32>
    %837 = tpu.matmul %835, %593, %cst_283 {dimension_numbers = #tpu.dot_dimension_numbers<[1], [0], [0], [1], [0, 0, 1, 1], [], []>} : vector<1x16xf32>, vector<16x64xf32>, vector<1x64xf32> -> vector<1x64xf32>
    %838 = arith.addf %836, %837 : vector<1x64xf32>
    %839 = vector.extract_strided_slice %838 {offsets = [0, 0], sizes = [1, 16], strides = [1, 1]} : vector<1x64xf32> to vector<1x16xf32>
    %cst_284 = arith.constant 0.000000e+00 : f32
    %840 = vector.broadcast %cst_284 : f32 to vector<1x16xf32>
    %841 = arith.subf %840, %839 : vector<1x16xf32>
    %842 = math.exp %841 : vector<1x16xf32>
    %cst_285 = arith.constant 1.000000e+00 : f32
    %843 = vector.broadcast %cst_285 : f32 to vector<1x16xf32>
    %844 = arith.addf %843, %842 : vector<1x16xf32>
    %cst_286 = arith.constant 1.000000e+00 : f32
    %845 = vector.broadcast %cst_286 : f32 to vector<1x16xf32>
    %846 = arith.divf %845, %844 : vector<1x16xf32>
    %847 = vector.extract_strided_slice %838 {offsets = [0, 16], sizes = [1, 16], strides = [1, 1]} : vector<1x64xf32> to vector<1x16xf32>
    %cst_287 = arith.constant 0.000000e+00 : f32
    %848 = vector.broadcast %cst_287 : f32 to vector<1x16xf32>
    %849 = arith.subf %848, %847 : vector<1x16xf32>
    %850 = math.exp %849 : vector<1x16xf32>
    %cst_288 = arith.constant 1.000000e+00 : f32
    %851 = vector.broadcast %cst_288 : f32 to vector<1x16xf32>
    %852 = arith.addf %851, %850 : vector<1x16xf32>
    %cst_289 = arith.constant 1.000000e+00 : f32
    %853 = vector.broadcast %cst_289 : f32 to vector<1x16xf32>
    %854 = arith.divf %853, %852 : vector<1x16xf32>
    %855 = vector.extract_strided_slice %838 {offsets = [0, 32], sizes = [1, 16], strides = [1, 1]} : vector<1x64xf32> to vector<1x16xf32>
    %856 = math.tanh %855 : vector<1x16xf32>
    %857 = vector.extract_strided_slice %838 {offsets = [0, 48], sizes = [1, 16], strides = [1, 1]} : vector<1x64xf32> to vector<1x16xf32>
    %cst_290 = arith.constant 0.000000e+00 : f32
    %858 = vector.broadcast %cst_290 : f32 to vector<1x16xf32>
    %859 = arith.subf %858, %857 : vector<1x16xf32>
    %860 = math.exp %859 : vector<1x16xf32>
    %cst_291 = arith.constant 1.000000e+00 : f32
    %861 = vector.broadcast %cst_291 : f32 to vector<1x16xf32>
    %862 = arith.addf %861, %860 : vector<1x16xf32>
    %cst_292 = arith.constant 1.000000e+00 : f32
    %863 = vector.broadcast %cst_292 : f32 to vector<1x16xf32>
    %864 = arith.divf %863, %862 : vector<1x16xf32>
    %865 = arith.mulf %854, %833 : vector<1x16xf32>
    %866 = arith.mulf %846, %856 : vector<1x16xf32>
    %867 = arith.addf %865, %866 : vector<1x16xf32>
    %868 = math.tanh %867 : vector<1x16xf32>
    %869 = arith.mulf %864, %868 : vector<1x16xf32>
    %870 = tpu.concatenate %631, %665, %699, %733, %767, %801, %835, %869 in 0 : vector<1x16xf32>, vector<1x16xf32>, vector<1x16xf32>, vector<1x16xf32>, vector<1x16xf32>, vector<1x16xf32>, vector<1x16xf32>, vector<1x16xf32> -> vector<8x16xf32>
    %c1_293 = arith.constant 1 : index
    %c0_294 = arith.constant 0 : index
    %c0_295 = arith.constant 0 : index
    %871 = vector.load %arg6[%c1_293, %c0_294, %c0_295] : memref<2x32x64xf32, #tpu.memory_space<vmem>>, vector<1x16x64xf32>
    %872 = vector.shape_cast %871 : vector<1x16x64xf32> to vector<16x64xf32>
    %cst_296 = arith.constant dense<0.000000e+00> : vector<8x64xf32>
    %873 = tpu.matmul %301, %872, %cst_296 {dimension_numbers = #tpu.dot_dimension_numbers<[1], [0], [0], [1], [0, 0, 1, 1], [], []>} : vector<8x16xf32>, vector<16x64xf32>, vector<8x64xf32> -> vector<8x64xf32>
    %c1_297 = arith.constant 1 : index
    %c16_298 = arith.constant 16 : index
    %c0_299 = arith.constant 0 : index
    %874 = vector.load %arg6[%c1_297, %c16_298, %c0_299] : memref<2x32x64xf32, #tpu.memory_space<vmem>>, vector<1x16x64xf32>
    %875 = vector.shape_cast %874 : vector<1x16x64xf32> to vector<16x64xf32>
    %cst_300 = arith.constant dense<0.000000e+00> : vector<8x64xf32>
    %876 = tpu.matmul %580, %875, %cst_300 {dimension_numbers = #tpu.dot_dimension_numbers<[1], [0], [0], [1], [0, 0, 1, 1], [], []>} : vector<8x16xf32>, vector<16x64xf32>, vector<8x64xf32> -> vector<8x64xf32>
    %877 = arith.addf %873, %876 : vector<8x64xf32>
    %c3 = arith.constant 3 : index
    %c0_301 = arith.constant 0 : index
    %c0_302 = arith.constant 0 : index
    %878 = vector.load %arg8[%c3, %c0_301, %c0_302] : memref<4x1x64xf32, #tpu.memory_space<vmem>>, vector<1x1x64xf32>
    %879 = vector.shape_cast %878 : vector<1x1x64xf32> to vector<1x64xf32>
    %880 = vector.broadcast %879 : vector<1x64xf32> to vector<8x64xf32>
    %881 = arith.addf %877, %880 : vector<8x64xf32>
    %c3_303 = arith.constant 3 : index
    %c0_304 = arith.constant 0 : index
    %c0_305 = arith.constant 0 : index
    %882 = vector.load %arg7[%c3_303, %c0_304, %c0_305] : memref<4x16x64xf32, #tpu.memory_space<vmem>>, vector<1x16x64xf32>
    %883 = vector.shape_cast %882 : vector<1x16x64xf32> to vector<16x64xf32>
    %c0_306 = arith.constant 0 : index
    %c3_307 = arith.constant 3 : index
    %c0_308 = arith.constant 0 : index
    %884 = vector.load %arg3[%c0_306, %c3_307, %c0_308] : memref<1x4x16xf32, #tpu.memory_space<vmem>>, vector<1x1x16xf32>
    %885 = vector.shape_cast %884 : vector<1x1x16xf32> to vector<1x16xf32>
    %c0_309 = arith.constant 0 : index
    %c3_310 = arith.constant 3 : index
    %c0_311 = arith.constant 0 : index
    %886 = vector.load %arg4[%c0_309, %c3_310, %c0_311] : memref<1x4x16xf32, #tpu.memory_space<vmem>>, vector<1x1x16xf32>
    %887 = vector.shape_cast %886 : vector<1x1x16xf32> to vector<1x16xf32>
    %888 = vector.extract_strided_slice %881 {offsets = [7, 0], sizes = [1, 64], strides = [1, 1]} : vector<8x64xf32> to vector<1x64xf32>
    %cst_312 = arith.constant dense<0.000000e+00> : vector<1x64xf32>
    %889 = tpu.matmul %885, %883, %cst_312 {dimension_numbers = #tpu.dot_dimension_numbers<[1], [0], [0], [1], [0, 0, 1, 1], [], []>} : vector<1x16xf32>, vector<16x64xf32>, vector<1x64xf32> -> vector<1x64xf32>
    %890 = arith.addf %888, %889 : vector<1x64xf32>
    %891 = vector.extract_strided_slice %890 {offsets = [0, 0], sizes = [1, 16], strides = [1, 1]} : vector<1x64xf32> to vector<1x16xf32>
    %cst_313 = arith.constant 0.000000e+00 : f32
    %892 = vector.broadcast %cst_313 : f32 to vector<1x16xf32>
    %893 = arith.subf %892, %891 : vector<1x16xf32>
    %894 = math.exp %893 : vector<1x16xf32>
    %cst_314 = arith.constant 1.000000e+00 : f32
    %895 = vector.broadcast %cst_314 : f32 to vector<1x16xf32>
    %896 = arith.addf %895, %894 : vector<1x16xf32>
    %cst_315 = arith.constant 1.000000e+00 : f32
    %897 = vector.broadcast %cst_315 : f32 to vector<1x16xf32>
    %898 = arith.divf %897, %896 : vector<1x16xf32>
    %899 = vector.extract_strided_slice %890 {offsets = [0, 16], sizes = [1, 16], strides = [1, 1]} : vector<1x64xf32> to vector<1x16xf32>
    %cst_316 = arith.constant 0.000000e+00 : f32
    %900 = vector.broadcast %cst_316 : f32 to vector<1x16xf32>
    %901 = arith.subf %900, %899 : vector<1x16xf32>
    %902 = math.exp %901 : vector<1x16xf32>
    %cst_317 = arith.constant 1.000000e+00 : f32
    %903 = vector.broadcast %cst_317 : f32 to vector<1x16xf32>
    %904 = arith.addf %903, %902 : vector<1x16xf32>
    %cst_318 = arith.constant 1.000000e+00 : f32
    %905 = vector.broadcast %cst_318 : f32 to vector<1x16xf32>
    %906 = arith.divf %905, %904 : vector<1x16xf32>
    %907 = vector.extract_strided_slice %890 {offsets = [0, 32], sizes = [1, 16], strides = [1, 1]} : vector<1x64xf32> to vector<1x16xf32>
    %908 = math.tanh %907 : vector<1x16xf32>
    %909 = vector.extract_strided_slice %890 {offsets = [0, 48], sizes = [1, 16], strides = [1, 1]} : vector<1x64xf32> to vector<1x16xf32>
    %cst_319 = arith.constant 0.000000e+00 : f32
    %910 = vector.broadcast %cst_319 : f32 to vector<1x16xf32>
    %911 = arith.subf %910, %909 : vector<1x16xf32>
    %912 = math.exp %911 : vector<1x16xf32>
    %cst_320 = arith.constant 1.000000e+00 : f32
    %913 = vector.broadcast %cst_320 : f32 to vector<1x16xf32>
    %914 = arith.addf %913, %912 : vector<1x16xf32>
    %cst_321 = arith.constant 1.000000e+00 : f32
    %915 = vector.broadcast %cst_321 : f32 to vector<1x16xf32>
    %916 = arith.divf %915, %914 : vector<1x16xf32>
    %917 = arith.mulf %906, %887 : vector<1x16xf32>
    %918 = arith.mulf %898, %908 : vector<1x16xf32>
    %919 = arith.addf %917, %918 : vector<1x16xf32>
    %920 = math.tanh %919 : vector<1x16xf32>
    %921 = arith.mulf %916, %920 : vector<1x16xf32>
    %922 = vector.extract_strided_slice %881 {offsets = [6, 0], sizes = [1, 64], strides = [1, 1]} : vector<8x64xf32> to vector<1x64xf32>
    %cst_322 = arith.constant dense<0.000000e+00> : vector<1x64xf32>
    %923 = tpu.matmul %921, %883, %cst_322 {dimension_numbers = #tpu.dot_dimension_numbers<[1], [0], [0], [1], [0, 0, 1, 1], [], []>} : vector<1x16xf32>, vector<16x64xf32>, vector<1x64xf32> -> vector<1x64xf32>
    %924 = arith.addf %922, %923 : vector<1x64xf32>
    %925 = vector.extract_strided_slice %924 {offsets = [0, 0], sizes = [1, 16], strides = [1, 1]} : vector<1x64xf32> to vector<1x16xf32>
    %cst_323 = arith.constant 0.000000e+00 : f32
    %926 = vector.broadcast %cst_323 : f32 to vector<1x16xf32>
    %927 = arith.subf %926, %925 : vector<1x16xf32>
    %928 = math.exp %927 : vector<1x16xf32>
    %cst_324 = arith.constant 1.000000e+00 : f32
    %929 = vector.broadcast %cst_324 : f32 to vector<1x16xf32>
    %930 = arith.addf %929, %928 : vector<1x16xf32>
    %cst_325 = arith.constant 1.000000e+00 : f32
    %931 = vector.broadcast %cst_325 : f32 to vector<1x16xf32>
    %932 = arith.divf %931, %930 : vector<1x16xf32>
    %933 = vector.extract_strided_slice %924 {offsets = [0, 16], sizes = [1, 16], strides = [1, 1]} : vector<1x64xf32> to vector<1x16xf32>
    %cst_326 = arith.constant 0.000000e+00 : f32
    %934 = vector.broadcast %cst_326 : f32 to vector<1x16xf32>
    %935 = arith.subf %934, %933 : vector<1x16xf32>
    %936 = math.exp %935 : vector<1x16xf32>
    %cst_327 = arith.constant 1.000000e+00 : f32
    %937 = vector.broadcast %cst_327 : f32 to vector<1x16xf32>
    %938 = arith.addf %937, %936 : vector<1x16xf32>
    %cst_328 = arith.constant 1.000000e+00 : f32
    %939 = vector.broadcast %cst_328 : f32 to vector<1x16xf32>
    %940 = arith.divf %939, %938 : vector<1x16xf32>
    %941 = vector.extract_strided_slice %924 {offsets = [0, 32], sizes = [1, 16], strides = [1, 1]} : vector<1x64xf32> to vector<1x16xf32>
    %942 = math.tanh %941 : vector<1x16xf32>
    %943 = vector.extract_strided_slice %924 {offsets = [0, 48], sizes = [1, 16], strides = [1, 1]} : vector<1x64xf32> to vector<1x16xf32>
    %cst_329 = arith.constant 0.000000e+00 : f32
    %944 = vector.broadcast %cst_329 : f32 to vector<1x16xf32>
    %945 = arith.subf %944, %943 : vector<1x16xf32>
    %946 = math.exp %945 : vector<1x16xf32>
    %cst_330 = arith.constant 1.000000e+00 : f32
    %947 = vector.broadcast %cst_330 : f32 to vector<1x16xf32>
    %948 = arith.addf %947, %946 : vector<1x16xf32>
    %cst_331 = arith.constant 1.000000e+00 : f32
    %949 = vector.broadcast %cst_331 : f32 to vector<1x16xf32>
    %950 = arith.divf %949, %948 : vector<1x16xf32>
    %951 = arith.mulf %940, %919 : vector<1x16xf32>
    %952 = arith.mulf %932, %942 : vector<1x16xf32>
    %953 = arith.addf %951, %952 : vector<1x16xf32>
    %954 = math.tanh %953 : vector<1x16xf32>
    %955 = arith.mulf %950, %954 : vector<1x16xf32>
    %956 = vector.extract_strided_slice %881 {offsets = [5, 0], sizes = [1, 64], strides = [1, 1]} : vector<8x64xf32> to vector<1x64xf32>
    %cst_332 = arith.constant dense<0.000000e+00> : vector<1x64xf32>
    %957 = tpu.matmul %955, %883, %cst_332 {dimension_numbers = #tpu.dot_dimension_numbers<[1], [0], [0], [1], [0, 0, 1, 1], [], []>} : vector<1x16xf32>, vector<16x64xf32>, vector<1x64xf32> -> vector<1x64xf32>
    %958 = arith.addf %956, %957 : vector<1x64xf32>
    %959 = vector.extract_strided_slice %958 {offsets = [0, 0], sizes = [1, 16], strides = [1, 1]} : vector<1x64xf32> to vector<1x16xf32>
    %cst_333 = arith.constant 0.000000e+00 : f32
    %960 = vector.broadcast %cst_333 : f32 to vector<1x16xf32>
    %961 = arith.subf %960, %959 : vector<1x16xf32>
    %962 = math.exp %961 : vector<1x16xf32>
    %cst_334 = arith.constant 1.000000e+00 : f32
    %963 = vector.broadcast %cst_334 : f32 to vector<1x16xf32>
    %964 = arith.addf %963, %962 : vector<1x16xf32>
    %cst_335 = arith.constant 1.000000e+00 : f32
    %965 = vector.broadcast %cst_335 : f32 to vector<1x16xf32>
    %966 = arith.divf %965, %964 : vector<1x16xf32>
    %967 = vector.extract_strided_slice %958 {offsets = [0, 16], sizes = [1, 16], strides = [1, 1]} : vector<1x64xf32> to vector<1x16xf32>
    %cst_336 = arith.constant 0.000000e+00 : f32
    %968 = vector.broadcast %cst_336 : f32 to vector<1x16xf32>
    %969 = arith.subf %968, %967 : vector<1x16xf32>
    %970 = math.exp %969 : vector<1x16xf32>
    %cst_337 = arith.constant 1.000000e+00 : f32
    %971 = vector.broadcast %cst_337 : f32 to vector<1x16xf32>
    %972 = arith.addf %971, %970 : vector<1x16xf32>
    %cst_338 = arith.constant 1.000000e+00 : f32
    %973 = vector.broadcast %cst_338 : f32 to vector<1x16xf32>
    %974 = arith.divf %973, %972 : vector<1x16xf32>
    %975 = vector.extract_strided_slice %958 {offsets = [0, 32], sizes = [1, 16], strides = [1, 1]} : vector<1x64xf32> to vector<1x16xf32>
    %976 = math.tanh %975 : vector<1x16xf32>
    %977 = vector.extract_strided_slice %958 {offsets = [0, 48], sizes = [1, 16], strides = [1, 1]} : vector<1x64xf32> to vector<1x16xf32>
    %cst_339 = arith.constant 0.000000e+00 : f32
    %978 = vector.broadcast %cst_339 : f32 to vector<1x16xf32>
    %979 = arith.subf %978, %977 : vector<1x16xf32>
    %980 = math.exp %979 : vector<1x16xf32>
    %cst_340 = arith.constant 1.000000e+00 : f32
    %981 = vector.broadcast %cst_340 : f32 to vector<1x16xf32>
    %982 = arith.addf %981, %980 : vector<1x16xf32>
    %cst_341 = arith.constant 1.000000e+00 : f32
    %983 = vector.broadcast %cst_341 : f32 to vector<1x16xf32>
    %984 = arith.divf %983, %982 : vector<1x16xf32>
    %985 = arith.mulf %974, %953 : vector<1x16xf32>
    %986 = arith.mulf %966, %976 : vector<1x16xf32>
    %987 = arith.addf %985, %986 : vector<1x16xf32>
    %988 = math.tanh %987 : vector<1x16xf32>
    %989 = arith.mulf %984, %988 : vector<1x16xf32>
    %990 = vector.extract_strided_slice %881 {offsets = [4, 0], sizes = [1, 64], strides = [1, 1]} : vector<8x64xf32> to vector<1x64xf32>
    %cst_342 = arith.constant dense<0.000000e+00> : vector<1x64xf32>
    %991 = tpu.matmul %989, %883, %cst_342 {dimension_numbers = #tpu.dot_dimension_numbers<[1], [0], [0], [1], [0, 0, 1, 1], [], []>} : vector<1x16xf32>, vector<16x64xf32>, vector<1x64xf32> -> vector<1x64xf32>
    %992 = arith.addf %990, %991 : vector<1x64xf32>
    %993 = vector.extract_strided_slice %992 {offsets = [0, 0], sizes = [1, 16], strides = [1, 1]} : vector<1x64xf32> to vector<1x16xf32>
    %cst_343 = arith.constant 0.000000e+00 : f32
    %994 = vector.broadcast %cst_343 : f32 to vector<1x16xf32>
    %995 = arith.subf %994, %993 : vector<1x16xf32>
    %996 = math.exp %995 : vector<1x16xf32>
    %cst_344 = arith.constant 1.000000e+00 : f32
    %997 = vector.broadcast %cst_344 : f32 to vector<1x16xf32>
    %998 = arith.addf %997, %996 : vector<1x16xf32>
    %cst_345 = arith.constant 1.000000e+00 : f32
    %999 = vector.broadcast %cst_345 : f32 to vector<1x16xf32>
    %1000 = arith.divf %999, %998 : vector<1x16xf32>
    %1001 = vector.extract_strided_slice %992 {offsets = [0, 16], sizes = [1, 16], strides = [1, 1]} : vector<1x64xf32> to vector<1x16xf32>
    %cst_346 = arith.constant 0.000000e+00 : f32
    %1002 = vector.broadcast %cst_346 : f32 to vector<1x16xf32>
    %1003 = arith.subf %1002, %1001 : vector<1x16xf32>
    %1004 = math.exp %1003 : vector<1x16xf32>
    %cst_347 = arith.constant 1.000000e+00 : f32
    %1005 = vector.broadcast %cst_347 : f32 to vector<1x16xf32>
    %1006 = arith.addf %1005, %1004 : vector<1x16xf32>
    %cst_348 = arith.constant 1.000000e+00 : f32
    %1007 = vector.broadcast %cst_348 : f32 to vector<1x16xf32>
    %1008 = arith.divf %1007, %1006 : vector<1x16xf32>
    %1009 = vector.extract_strided_slice %992 {offsets = [0, 32], sizes = [1, 16], strides = [1, 1]} : vector<1x64xf32> to vector<1x16xf32>
    %1010 = math.tanh %1009 : vector<1x16xf32>
    %1011 = vector.extract_strided_slice %992 {offsets = [0, 48], sizes = [1, 16], strides = [1, 1]} : vector<1x64xf32> to vector<1x16xf32>
    %cst_349 = arith.constant 0.000000e+00 : f32
    %1012 = vector.broadcast %cst_349 : f32 to vector<1x16xf32>
    %1013 = arith.subf %1012, %1011 : vector<1x16xf32>
    %1014 = math.exp %1013 : vector<1x16xf32>
    %cst_350 = arith.constant 1.000000e+00 : f32
    %1015 = vector.broadcast %cst_350 : f32 to vector<1x16xf32>
    %1016 = arith.addf %1015, %1014 : vector<1x16xf32>
    %cst_351 = arith.constant 1.000000e+00 : f32
    %1017 = vector.broadcast %cst_351 : f32 to vector<1x16xf32>
    %1018 = arith.divf %1017, %1016 : vector<1x16xf32>
    %1019 = arith.mulf %1008, %987 : vector<1x16xf32>
    %1020 = arith.mulf %1000, %1010 : vector<1x16xf32>
    %1021 = arith.addf %1019, %1020 : vector<1x16xf32>
    %1022 = math.tanh %1021 : vector<1x16xf32>
    %1023 = arith.mulf %1018, %1022 : vector<1x16xf32>
    %1024 = vector.extract_strided_slice %881 {offsets = [3, 0], sizes = [1, 64], strides = [1, 1]} : vector<8x64xf32> to vector<1x64xf32>
    %cst_352 = arith.constant dense<0.000000e+00> : vector<1x64xf32>
    %1025 = tpu.matmul %1023, %883, %cst_352 {dimension_numbers = #tpu.dot_dimension_numbers<[1], [0], [0], [1], [0, 0, 1, 1], [], []>} : vector<1x16xf32>, vector<16x64xf32>, vector<1x64xf32> -> vector<1x64xf32>
    %1026 = arith.addf %1024, %1025 : vector<1x64xf32>
    %1027 = vector.extract_strided_slice %1026 {offsets = [0, 0], sizes = [1, 16], strides = [1, 1]} : vector<1x64xf32> to vector<1x16xf32>
    %cst_353 = arith.constant 0.000000e+00 : f32
    %1028 = vector.broadcast %cst_353 : f32 to vector<1x16xf32>
    %1029 = arith.subf %1028, %1027 : vector<1x16xf32>
    %1030 = math.exp %1029 : vector<1x16xf32>
    %cst_354 = arith.constant 1.000000e+00 : f32
    %1031 = vector.broadcast %cst_354 : f32 to vector<1x16xf32>
    %1032 = arith.addf %1031, %1030 : vector<1x16xf32>
    %cst_355 = arith.constant 1.000000e+00 : f32
    %1033 = vector.broadcast %cst_355 : f32 to vector<1x16xf32>
    %1034 = arith.divf %1033, %1032 : vector<1x16xf32>
    %1035 = vector.extract_strided_slice %1026 {offsets = [0, 16], sizes = [1, 16], strides = [1, 1]} : vector<1x64xf32> to vector<1x16xf32>
    %cst_356 = arith.constant 0.000000e+00 : f32
    %1036 = vector.broadcast %cst_356 : f32 to vector<1x16xf32>
    %1037 = arith.subf %1036, %1035 : vector<1x16xf32>
    %1038 = math.exp %1037 : vector<1x16xf32>
    %cst_357 = arith.constant 1.000000e+00 : f32
    %1039 = vector.broadcast %cst_357 : f32 to vector<1x16xf32>
    %1040 = arith.addf %1039, %1038 : vector<1x16xf32>
    %cst_358 = arith.constant 1.000000e+00 : f32
    %1041 = vector.broadcast %cst_358 : f32 to vector<1x16xf32>
    %1042 = arith.divf %1041, %1040 : vector<1x16xf32>
    %1043 = vector.extract_strided_slice %1026 {offsets = [0, 32], sizes = [1, 16], strides = [1, 1]} : vector<1x64xf32> to vector<1x16xf32>
    %1044 = math.tanh %1043 : vector<1x16xf32>
    %1045 = vector.extract_strided_slice %1026 {offsets = [0, 48], sizes = [1, 16], strides = [1, 1]} : vector<1x64xf32> to vector<1x16xf32>
    %cst_359 = arith.constant 0.000000e+00 : f32
    %1046 = vector.broadcast %cst_359 : f32 to vector<1x16xf32>
    %1047 = arith.subf %1046, %1045 : vector<1x16xf32>
    %1048 = math.exp %1047 : vector<1x16xf32>
    %cst_360 = arith.constant 1.000000e+00 : f32
    %1049 = vector.broadcast %cst_360 : f32 to vector<1x16xf32>
    %1050 = arith.addf %1049, %1048 : vector<1x16xf32>
    %cst_361 = arith.constant 1.000000e+00 : f32
    %1051 = vector.broadcast %cst_361 : f32 to vector<1x16xf32>
    %1052 = arith.divf %1051, %1050 : vector<1x16xf32>
    %1053 = arith.mulf %1042, %1021 : vector<1x16xf32>
    %1054 = arith.mulf %1034, %1044 : vector<1x16xf32>
    %1055 = arith.addf %1053, %1054 : vector<1x16xf32>
    %1056 = math.tanh %1055 : vector<1x16xf32>
    %1057 = arith.mulf %1052, %1056 : vector<1x16xf32>
    %1058 = vector.extract_strided_slice %881 {offsets = [2, 0], sizes = [1, 64], strides = [1, 1]} : vector<8x64xf32> to vector<1x64xf32>
    %cst_362 = arith.constant dense<0.000000e+00> : vector<1x64xf32>
    %1059 = tpu.matmul %1057, %883, %cst_362 {dimension_numbers = #tpu.dot_dimension_numbers<[1], [0], [0], [1], [0, 0, 1, 1], [], []>} : vector<1x16xf32>, vector<16x64xf32>, vector<1x64xf32> -> vector<1x64xf32>
    %1060 = arith.addf %1058, %1059 : vector<1x64xf32>
    %1061 = vector.extract_strided_slice %1060 {offsets = [0, 0], sizes = [1, 16], strides = [1, 1]} : vector<1x64xf32> to vector<1x16xf32>
    %cst_363 = arith.constant 0.000000e+00 : f32
    %1062 = vector.broadcast %cst_363 : f32 to vector<1x16xf32>
    %1063 = arith.subf %1062, %1061 : vector<1x16xf32>
    %1064 = math.exp %1063 : vector<1x16xf32>
    %cst_364 = arith.constant 1.000000e+00 : f32
    %1065 = vector.broadcast %cst_364 : f32 to vector<1x16xf32>
    %1066 = arith.addf %1065, %1064 : vector<1x16xf32>
    %cst_365 = arith.constant 1.000000e+00 : f32
    %1067 = vector.broadcast %cst_365 : f32 to vector<1x16xf32>
    %1068 = arith.divf %1067, %1066 : vector<1x16xf32>
    %1069 = vector.extract_strided_slice %1060 {offsets = [0, 16], sizes = [1, 16], strides = [1, 1]} : vector<1x64xf32> to vector<1x16xf32>
    %cst_366 = arith.constant 0.000000e+00 : f32
    %1070 = vector.broadcast %cst_366 : f32 to vector<1x16xf32>
    %1071 = arith.subf %1070, %1069 : vector<1x16xf32>
    %1072 = math.exp %1071 : vector<1x16xf32>
    %cst_367 = arith.constant 1.000000e+00 : f32
    %1073 = vector.broadcast %cst_367 : f32 to vector<1x16xf32>
    %1074 = arith.addf %1073, %1072 : vector<1x16xf32>
    %cst_368 = arith.constant 1.000000e+00 : f32
    %1075 = vector.broadcast %cst_368 : f32 to vector<1x16xf32>
    %1076 = arith.divf %1075, %1074 : vector<1x16xf32>
    %1077 = vector.extract_strided_slice %1060 {offsets = [0, 32], sizes = [1, 16], strides = [1, 1]} : vector<1x64xf32> to vector<1x16xf32>
    %1078 = math.tanh %1077 : vector<1x16xf32>
    %1079 = vector.extract_strided_slice %1060 {offsets = [0, 48], sizes = [1, 16], strides = [1, 1]} : vector<1x64xf32> to vector<1x16xf32>
    %cst_369 = arith.constant 0.000000e+00 : f32
    %1080 = vector.broadcast %cst_369 : f32 to vector<1x16xf32>
    %1081 = arith.subf %1080, %1079 : vector<1x16xf32>
    %1082 = math.exp %1081 : vector<1x16xf32>
    %cst_370 = arith.constant 1.000000e+00 : f32
    %1083 = vector.broadcast %cst_370 : f32 to vector<1x16xf32>
    %1084 = arith.addf %1083, %1082 : vector<1x16xf32>
    %cst_371 = arith.constant 1.000000e+00 : f32
    %1085 = vector.broadcast %cst_371 : f32 to vector<1x16xf32>
    %1086 = arith.divf %1085, %1084 : vector<1x16xf32>
    %1087 = arith.mulf %1076, %1055 : vector<1x16xf32>
    %1088 = arith.mulf %1068, %1078 : vector<1x16xf32>
    %1089 = arith.addf %1087, %1088 : vector<1x16xf32>
    %1090 = math.tanh %1089 : vector<1x16xf32>
    %1091 = arith.mulf %1086, %1090 : vector<1x16xf32>
    %1092 = vector.extract_strided_slice %881 {offsets = [1, 0], sizes = [1, 64], strides = [1, 1]} : vector<8x64xf32> to vector<1x64xf32>
    %cst_372 = arith.constant dense<0.000000e+00> : vector<1x64xf32>
    %1093 = tpu.matmul %1091, %883, %cst_372 {dimension_numbers = #tpu.dot_dimension_numbers<[1], [0], [0], [1], [0, 0, 1, 1], [], []>} : vector<1x16xf32>, vector<16x64xf32>, vector<1x64xf32> -> vector<1x64xf32>
    %1094 = arith.addf %1092, %1093 : vector<1x64xf32>
    %1095 = vector.extract_strided_slice %1094 {offsets = [0, 0], sizes = [1, 16], strides = [1, 1]} : vector<1x64xf32> to vector<1x16xf32>
    %cst_373 = arith.constant 0.000000e+00 : f32
    %1096 = vector.broadcast %cst_373 : f32 to vector<1x16xf32>
    %1097 = arith.subf %1096, %1095 : vector<1x16xf32>
    %1098 = math.exp %1097 : vector<1x16xf32>
    %cst_374 = arith.constant 1.000000e+00 : f32
    %1099 = vector.broadcast %cst_374 : f32 to vector<1x16xf32>
    %1100 = arith.addf %1099, %1098 : vector<1x16xf32>
    %cst_375 = arith.constant 1.000000e+00 : f32
    %1101 = vector.broadcast %cst_375 : f32 to vector<1x16xf32>
    %1102 = arith.divf %1101, %1100 : vector<1x16xf32>
    %1103 = vector.extract_strided_slice %1094 {offsets = [0, 16], sizes = [1, 16], strides = [1, 1]} : vector<1x64xf32> to vector<1x16xf32>
    %cst_376 = arith.constant 0.000000e+00 : f32
    %1104 = vector.broadcast %cst_376 : f32 to vector<1x16xf32>
    %1105 = arith.subf %1104, %1103 : vector<1x16xf32>
    %1106 = math.exp %1105 : vector<1x16xf32>
    %cst_377 = arith.constant 1.000000e+00 : f32
    %1107 = vector.broadcast %cst_377 : f32 to vector<1x16xf32>
    %1108 = arith.addf %1107, %1106 : vector<1x16xf32>
    %cst_378 = arith.constant 1.000000e+00 : f32
    %1109 = vector.broadcast %cst_378 : f32 to vector<1x16xf32>
    %1110 = arith.divf %1109, %1108 : vector<1x16xf32>
    %1111 = vector.extract_strided_slice %1094 {offsets = [0, 32], sizes = [1, 16], strides = [1, 1]} : vector<1x64xf32> to vector<1x16xf32>
    %1112 = math.tanh %1111 : vector<1x16xf32>
    %1113 = vector.extract_strided_slice %1094 {offsets = [0, 48], sizes = [1, 16], strides = [1, 1]} : vector<1x64xf32> to vector<1x16xf32>
    %cst_379 = arith.constant 0.000000e+00 : f32
    %1114 = vector.broadcast %cst_379 : f32 to vector<1x16xf32>
    %1115 = arith.subf %1114, %1113 : vector<1x16xf32>
    %1116 = math.exp %1115 : vector<1x16xf32>
    %cst_380 = arith.constant 1.000000e+00 : f32
    %1117 = vector.broadcast %cst_380 : f32 to vector<1x16xf32>
    %1118 = arith.addf %1117, %1116 : vector<1x16xf32>
    %cst_381 = arith.constant 1.000000e+00 : f32
    %1119 = vector.broadcast %cst_381 : f32 to vector<1x16xf32>
    %1120 = arith.divf %1119, %1118 : vector<1x16xf32>
    %1121 = arith.mulf %1110, %1089 : vector<1x16xf32>
    %1122 = arith.mulf %1102, %1112 : vector<1x16xf32>
    %1123 = arith.addf %1121, %1122 : vector<1x16xf32>
    %1124 = math.tanh %1123 : vector<1x16xf32>
    %1125 = arith.mulf %1120, %1124 : vector<1x16xf32>
    %1126 = vector.extract_strided_slice %881 {offsets = [0, 0], sizes = [1, 64], strides = [1, 1]} : vector<8x64xf32> to vector<1x64xf32>
    %cst_382 = arith.constant dense<0.000000e+00> : vector<1x64xf32>
    %1127 = tpu.matmul %1125, %883, %cst_382 {dimension_numbers = #tpu.dot_dimension_numbers<[1], [0], [0], [1], [0, 0, 1, 1], [], []>} : vector<1x16xf32>, vector<16x64xf32>, vector<1x64xf32> -> vector<1x64xf32>
    %1128 = arith.addf %1126, %1127 : vector<1x64xf32>
    %1129 = vector.extract_strided_slice %1128 {offsets = [0, 0], sizes = [1, 16], strides = [1, 1]} : vector<1x64xf32> to vector<1x16xf32>
    %cst_383 = arith.constant 0.000000e+00 : f32
    %1130 = vector.broadcast %cst_383 : f32 to vector<1x16xf32>
    %1131 = arith.subf %1130, %1129 : vector<1x16xf32>
    %1132 = math.exp %1131 : vector<1x16xf32>
    %cst_384 = arith.constant 1.000000e+00 : f32
    %1133 = vector.broadcast %cst_384 : f32 to vector<1x16xf32>
    %1134 = arith.addf %1133, %1132 : vector<1x16xf32>
    %cst_385 = arith.constant 1.000000e+00 : f32
    %1135 = vector.broadcast %cst_385 : f32 to vector<1x16xf32>
    %1136 = arith.divf %1135, %1134 : vector<1x16xf32>
    %1137 = vector.extract_strided_slice %1128 {offsets = [0, 16], sizes = [1, 16], strides = [1, 1]} : vector<1x64xf32> to vector<1x16xf32>
    %cst_386 = arith.constant 0.000000e+00 : f32
    %1138 = vector.broadcast %cst_386 : f32 to vector<1x16xf32>
    %1139 = arith.subf %1138, %1137 : vector<1x16xf32>
    %1140 = math.exp %1139 : vector<1x16xf32>
    %cst_387 = arith.constant 1.000000e+00 : f32
    %1141 = vector.broadcast %cst_387 : f32 to vector<1x16xf32>
    %1142 = arith.addf %1141, %1140 : vector<1x16xf32>
    %cst_388 = arith.constant 1.000000e+00 : f32
    %1143 = vector.broadcast %cst_388 : f32 to vector<1x16xf32>
    %1144 = arith.divf %1143, %1142 : vector<1x16xf32>
    %1145 = vector.extract_strided_slice %1128 {offsets = [0, 32], sizes = [1, 16], strides = [1, 1]} : vector<1x64xf32> to vector<1x16xf32>
    %1146 = math.tanh %1145 : vector<1x16xf32>
    %1147 = vector.extract_strided_slice %1128 {offsets = [0, 48], sizes = [1, 16], strides = [1, 1]} : vector<1x64xf32> to vector<1x16xf32>
    %cst_389 = arith.constant 0.000000e+00 : f32
    %1148 = vector.broadcast %cst_389 : f32 to vector<1x16xf32>
    %1149 = arith.subf %1148, %1147 : vector<1x16xf32>
    %1150 = math.exp %1149 : vector<1x16xf32>
    %cst_390 = arith.constant 1.000000e+00 : f32
    %1151 = vector.broadcast %cst_390 : f32 to vector<1x16xf32>
    %1152 = arith.addf %1151, %1150 : vector<1x16xf32>
    %cst_391 = arith.constant 1.000000e+00 : f32
    %1153 = vector.broadcast %cst_391 : f32 to vector<1x16xf32>
    %1154 = arith.divf %1153, %1152 : vector<1x16xf32>
    %1155 = arith.mulf %1144, %1123 : vector<1x16xf32>
    %1156 = arith.mulf %1136, %1146 : vector<1x16xf32>
    %1157 = arith.addf %1155, %1156 : vector<1x16xf32>
    %1158 = math.tanh %1157 : vector<1x16xf32>
    %1159 = arith.mulf %1154, %1158 : vector<1x16xf32>
    %1160 = tpu.concatenate %1159, %1125, %1091, %1057, %1023, %989, %955, %921 in 0 : vector<1x16xf32>, vector<1x16xf32>, vector<1x16xf32>, vector<1x16xf32>, vector<1x16xf32>, vector<1x16xf32>, vector<1x16xf32>, vector<1x16xf32> -> vector<8x16xf32>
    %c0_392 = arith.constant 0 : index
    %c0_393 = arith.constant 0 : index
    %c0_394 = arith.constant 0 : index
    %1161 = vector.load %arg9[%c0_392, %c0_393, %c0_394] : memref<1x8x32xf32, #tpu.memory_space<vmem>>, vector<1x8x16xf32>
    %1162 = vector.shape_cast %1161 : vector<1x8x16xf32> to vector<8x16xf32>
    %1163 = vector.shape_cast %870 : vector<8x16xf32> to vector<1x8x16xf32>
    tpu.vector_store %arg9[%c0_392, %c0_393, %c0_394], %1163 {strides = array<i32>} : memref<1x8x32xf32, #tpu.memory_space<vmem>>, vector<1x8x16xf32>,
    %c0_395 = arith.constant 0 : index
    %c0_396 = arith.constant 0 : index
    %c16_397 = arith.constant 16 : index
    %1164 = vector.load %arg9[%c0_395, %c0_396, %c16_397] : memref<1x8x32xf32, #tpu.memory_space<vmem>>, vector<1x8x16xf32>
    %1165 = vector.shape_cast %1164 : vector<1x8x16xf32> to vector<8x16xf32>
    %1166 = vector.shape_cast %1160 : vector<8x16xf32> to vector<1x8x16xf32>
    tpu.vector_store %arg9[%c0_395, %c0_396, %c16_397], %1166 {strides = array<i32>} : memref<1x8x32xf32, #tpu.memory_space<vmem>>, vector<1x8x16xf32>,
    return
  }
  func.func @transform_0(%arg0: i32) -> (i32, i32, i32) {
    %c0_i32 = arith.constant 0 : i32
    %c0_i32_0 = arith.constant 0 : i32
    %c0_i32_1 = arith.constant 0 : i32
    return %arg0, %c0_i32, %c0_i32_0 : i32, i32, i32
  }
  func.func @transform_1(%arg0: i32) -> (i32, i32) {
    %c0_i32 = arith.constant 0 : i32
    %c0_i32_0 = arith.constant 0 : i32
    %c0_i32_1 = arith.constant 0 : i32
    return %c0_i32, %c0_i32_0 : i32, i32
  }
  func.func @transform_2(%arg0: i32) -> (i32, i32, i32) {
    %c0_i32 = arith.constant 0 : i32
    %c0_i32_0 = arith.constant 0 : i32
    %c0_i32_1 = arith.constant 0 : i32
    return %arg0, %c0_i32, %c0_i32_0 : i32, i32, i32
  }
  func.func @transform_3(%arg0: i32) -> (i32, i32, i32) {
    %c0_i32 = arith.constant 0 : i32
    %c0_i32_0 = arith.constant 0 : i32
    %c0_i32_1 = arith.constant 0 : i32
    return %arg0, %c0_i32, %c0_i32_0 : i32, i32, i32
  }
  func.func @transform_4(%arg0: i32) -> (i32, i32, i32) {
    %c0_i32 = arith.constant 0 : i32
    %c0_i32_0 = arith.constant 0 : i32
    %c0_i32_1 = arith.constant 0 : i32
    %c0_i32_2 = arith.constant 0 : i32
    return %c0_i32, %c0_i32_0, %c0_i32_1 : i32, i32, i32
  }
  func.func @transform_5(%arg0: i32) -> (i32, i32, i32) {
    %c0_i32 = arith.constant 0 : i32
    %c0_i32_0 = arith.constant 0 : i32
    %c0_i32_1 = arith.constant 0 : i32
    %c0_i32_2 = arith.constant 0 : i32
    return %c0_i32, %c0_i32_0, %c0_i32_1 : i32, i32, i32
  }
  func.func @transform_6(%arg0: i32) -> (i32, i32, i32) {
    %c0_i32 = arith.constant 0 : i32
    %c0_i32_0 = arith.constant 0 : i32
    %c0_i32_1 = arith.constant 0 : i32
    %c0_i32_2 = arith.constant 0 : i32
    return %c0_i32, %c0_i32_0, %c0_i32_1 : i32, i32, i32
  }
  func.func @transform_7(%arg0: i32) -> (i32, i32, i32) {
    %c0_i32 = arith.constant 0 : i32
    %c0_i32_0 = arith.constant 0 : i32
    %c0_i32_1 = arith.constant 0 : i32
    %c0_i32_2 = arith.constant 0 : i32
    return %c0_i32, %c0_i32_0, %c0_i32_1 : i32, i32, i32
  }
  func.func @transform_8(%arg0: i32) -> (i32, i32, i32) {
    %c0_i32 = arith.constant 0 : i32
    %c0_i32_0 = arith.constant 0 : i32
    %c0_i32_1 = arith.constant 0 : i32
    return %arg0, %c0_i32, %c0_i32_0 : i32, i32, i32
  }
}

</mosaic_0001>

<bundles_post_ra>
// kernel: tpu_custom_call.1
= control target key start
LH: loop header
LB: loop body
LE: loop exit
PB: predicated region body
PF: predicated region fallthrough
CT: control target
= control target key end

     0   :  { %13 = vsyncpa [#allocation3], 0  ;;  %s4182_s0 = inlined_call_operand.vmem [shape: s32[2,8,1], index: 0, kind: input, shape index: {}]   ;;  %s4183_s1 = inlined_call_operand.vmem [shape: f32[50,32], index: 1, kind: input, shape index: {}]   ;;  %s4184_s2 = inlined_call_operand.vmem [shape: f32[2,4,16], index: 2, kind: input, shape index: {}]   ;;  %s4185_s3 = inlined_call_operand.vmem [shape: f32[2,4,16], index: 3, kind: input, shape index: {}]   ;;  %s4186_s4 = inlined_call_operand.vmem [shape: f32[2,32,64], index: 4, kind: input, shape index: {}]   ;;  %s4187_s5 = inlined_call_operand.hbm [shape: f32[2,32,64], index: 5, kind: input, shape index: {}]   ;;  %s4188_s6 = inlined_call_operand.hbm [shape: f32[4,16,64], index: 6, kind: input, shape index: {}]   ;;  %s4189_s7 = inlined_call_operand.vmem [shape: f32[4,1,64], index: 7, kind: input, shape index: {}]   ;;  %s4190_s8 = inlined_call_operand.hbm [shape: f32[2,8,32], index: 8, kind: output, shape index: {}]  }
   0x1   :  { %14 = vsyncpa [#allocation6], 0 }
   0x2   :  { %15 = vsyncpa [#allocation4], 0 }
   0x3   :  { %17 = vsyncpa [#allocation4 + $0x1], 0  ;;  %s3572_s27 = smov 0   ;;  %s3574_s28 = smov 0  }
   0x4   :  { %s3576_s29 = smov 0   ;;  %s3578_s30 = smov 0  }
   0x5 LB: > { %s3593_s9 = sadd.s32 4294967295, %s3515_s30   ;;  %s2992_s10 = sadd.s32 4294967294, %s3515_s30   ;;  %s3515_s30 = sphi %s3578_s30, %s4197_s30   ;;  %s3511_s29 = sphi %s3576_s29, %s4196_s29   ;;  %s3507_s28 = sphi %s3574_s28, %s4195_s28   ;;  %s3503_s27 = sphi %s3572_s27, %s4194_s27  }
   0x6   : > { %s3597_s11 = sadd.s32 1, %s3515_s30   ;;  %s213_s12 = sadd.s32 1, %s3511_s29 }
   0x7   : > { %s210_s13 = ssub.s32 %s3515_s30, %s3597_s11  ;;  %p223_p0 = scmp.ne.s32.totalorder %s3511_s29, %s3507_s28 }
   0x8   : > { %p211_p1 = scmp.eq.s32.totalorder %s210_s13, 0  ;;  %p224_p2 = scmp.eq.s32.totalorder %s3593_s9, 1 }
   0x9   : > { %p229_p3 = scmp.ne.s32.totalorder %s3507_s28, %s3503_s27  ;;  %p230_p4 = scmp.eq.s32.totalorder %s2992_s10, 1 }
   0xa   : > { %s3608_s14 = scalar_select %p211_p1, %s3511_s29, %s213_s12  }
   0xb   : > { %p3610_p5 = por %p224_p2, %p223_p0  ;;  %p3614_p6 = por %p230_p4, %p229_p3 }
   0xc   : > { %p2993_p7 = scmp.ge.s32.totalorder %s3515_s30, 1  ;;  %p237_p8 = scmp.lt.s32.totalorder %s3515_s30, 3 }
   0xd   : > { %p3077_p9 = scmp.eq.s32.totalorder %s3593_s9, 0  ;;  %s254_s20 = sshll.u32 %s4187_s5, 4  ;;  %s255_s20 = int_to_ptr.hbm [resolvable:$true] %s254_s20 }
   0xe   : > { %p3621_p10 = pnand %p2993_p7, %p237_p8  ;;  %s3517_s21 = smov [#allocation2]  }
   0xf   : > { %s256_s22 = sshll.u32 %s3517_s21, 4  ;;  %s268_s25 = sshll.u32 %s4188_s6, 4  ;;  %s257_s22 = int_to_ptr.vmem [resolvable:$true] %s256_s22  ;;  %s269_s25 = int_to_ptr.hbm [resolvable:$true] %s268_s25 }
  0x10   : > { %p3066_p11 = pneg %p3621_p10  ;;  %s3518_s26 = smov 128  }
  0x11   : > { %s3519_s10 = smov 8   ;;  %s3520_s12 = smov [#allocation5]  }
  0x12   : > { %p3067_p12 = pnand %p3077_p9, %p3066_p11  ;;  %s270_s13 = sshll.u32 %s3520_s12, 4  ;;  %s271_s13 = int_to_ptr.vmem [resolvable:$true] %s270_s13 }
  0x13   : > { %310 = sbr.rel (%p3621_p10) target bundleno = 15504 (0x3c90), region = 52 }
  0x14   : > { %3069 = dma.hbm_to_vmem [thread:$0]  (!%p3067_p12), %s255_s20, 1024, %s257_s22, [#allocation3], %s3518_s26, %s3518_s26, %s3519_s10  }
  0x15   : > { %3072 = dma.hbm_to_vmem [thread:$0]  (!%p3067_p12), %s269_s25, 1024, %s271_s13, [#allocation6], %s3518_s26, %s3518_s26, %s3519_s10  }
  0x18   : > { %3490 = dma.done.wait (%p3077_p9), [#allocation3], 1024  }
  0x19   : > { %3492 = vsyncadd (%p3077_p9), [#allocation3], 4294966272 }
  0x1a   : > { %3494 = dma.done.wait (%p3077_p9), [#allocation6], 1024  }
  0x1b   : > { %3496 = vsyncadd (%p3077_p9), [#allocation6], 4294966272  ;;  %p357_p13 = scmp.lt.s32.totalorder %s3593_s9, 1  ;;  %v3521_v0 = vmov 0   ;;  %vm389_vm0 = vcmask 1041408   ;;  %v383_v3 = vld [vmem:[%s4183_s1 + $0x28] sm:$0xff]  ;;  %v370_v18 = vlaneseq }
  0x1c   : > { %3124 = vset.pattern.permute.xlu0 %v3521_v0  ;;  %v384_v2 = vld [vmem:[%s4183_s1 + $0x30] sm:$0x3]  ;;  %v382_v4 = vld [vmem:[%s4183_s1 + $0x20] sm:$0xff]  ;;  %v381_v5 = vld [vmem:[%s4183_s1 + $0x18] sm:$0xff]  ;;  %vm479_vm1 = vcmask 130048   ;;  %vm385_vm2 = vcmask 408576  }
  0x1d   : > { %s3647_s18 = scalar_select %p357_p13, %s3593_s9, 1  ;;  %3005 = vmatpush.msk.msra.mxu0 %vm389_vm0, %v384_v2  ;;  %v380_v6 = vld [vmem:[%s4183_s1 + $0x10] sm:$0xff]  ;;  %v379_v7 = vld [vmem:[%s4183_s1 + $0x8] sm:$0xff]  ;;  %v378_v8 = vld [vmem:[%s4183_s1] sm:$0xff]  ;;  %v371_v19 = vand.u32 127, %v370_v18  ;;  %v3522_v21 = vmov 0.0  }
  0x1e   : > { %v416_v9 = vld [vmem:[%s4186_s4 + $0x18] sm:$0xff]  ;;  %v476_v11 = vld [vmem:[#allocation5 + $0x8] sm:$0xff]  ;;  %v415_v12 = vld [vmem:[%s4186_s4 + $0x10] sm:$0xff]  ;;  %vm421_vm4 = vcmask 261120   ;;  %s3524_s12 = smov 96   ;;  %s3525_s13 = smov 32  }
  0x1f   : > { %s3001_s17 = sshll.u32 %s3647_s18, 3  ;;  %403 = vmatpush.msra.mxu0 %v383_v3  ;;  %s3002_s22 = sshll.u32 %s3647_s18, 2  ;;  %v3011_v10 = vld [vmem:[%s4186_s4 + $0x38] sm:$0xff]  ;;  %437 = vmatpush.msra.mxu1 %v416_v9  ;;  %v3010_v13 = vld [vmem:[%s4186_s4 + $0x30] sm:$0xff]  ;;  %v475_v14 = vld [vmem:[#allocation5] sm:$0xff] }
  0x20   : > { %s360_s21 = scalar_lea.vmem %s4182_s0, %s3001_s17  ;;  %s3681_s10 = scalar_lea.vmem %s4184_s2, %s3002_s22  ;;  %467 = vmatpush.msra.mxu2 %v3011_v10  ;;  %497 = vmatpush.msra.mxu3 %v476_v11  ;;  %v414_v16 = vld [vmem:[%s4186_s4 + $0x8] sm:$0xff]  ;;  %v413_v23 = vld [vmem:[%s4186_s4] sm:$0xff] }
  0x21   : > { %v369_v1 = vld [vmem:[%s360_s21] sm:$0xff]  ;;  %404 = vmatpush.msra.mxu0 %v382_v4  ;;  %438 = vmatpush.msra.mxu1 %v415_v12  ;;  %v3009_v17 = vld [vmem:[%s4186_s4 + $0x28] sm:$0xff]  ;;  %s3708_s20 = scalar_lea.vmem %s4185_s3, %s3002_s22  ;;  %s3523_s18 = smov 16  }
  0x22   : > { %373 = vperm.xlu0 %3124, %v369_v1   ;;  %v477_v15 = vld [vmem:[%s3681_s10] sm:$0x1]  ;;  %468 = vmatpush.msra.mxu2 %v3010_v13  ;;  %s3526_s17 = smov 80   ;;  %s3053_s26 = sshll.u32 %s3593_s9, 3 }
  0x23   : > { %405 = vmatpush.msra.mxu0 %v381_v5  ;;  %498 = vmatpush.msra.mxu3 %v475_v14  ;;  %v3008_v24 = vld [vmem:[%s4186_s4 + $0x20] sm:$0xff]  ;;  %s2882_s19 = scalar_lea.hbm %s4190_s8, %s3053_s26 }
  0x24   : > { %3014 = vmatmul.msk.f32.vlgmr.msra.gmra.mxu3 %vm479_vm1, %v477_v15  ;;  %439 = vmatpush.msra.mxu1 %v414_v16  ;;  %v478_v25 = vld [vmem:[%s3708_s20] sm:$0x1]  ;;  %s2886_s23 = sshll.u32 %s2882_s19, 4  ;;  %s2887_s23 = int_to_ptr.hbm [resolvable:$true] %s2886_s23 }
  0x25   : > { %406 = vmatpush.msra.mxu0 %v380_v6  ;;  %469 = vmatpush.msra.mxu2 %v3009_v17  ;;  %v3125_v27 = vld [vmem:[%s4189_s7] ss:$0 sm:$0xff]  ;;  %s3459_s25 = sshra.s32 %s2887_s23, 4  ;;  %s3460_s25 = int_to_ptr.hbm [resolvable:$true] %s3459_s25 }
  0x26   : > { %564 = vmatpush.msrb.mxu3 %v476_v11  ;;  %440 = vmatpush.msra.mxu1 %v413_v23  ;;  %s3461_s22 = scalar_lea.hbm %s3460_s25, 8  ;;  %p3466_p3 = scmp.lt.s32.totalorder %s3460_s25, %s4190_s8 }
  0x27   : > { %407 = vmatpush.msra.mxu0 %v379_v7  ;;  %470 = vmatpush.msra.mxu2 %v3008_v24  ;;  %p3462_p0 = scmp.ne.s32.totalorder %s3460_s25, %s3461_s22 }
  0x28   : > { %565 = vmatpush.msrb.mxu3 %v475_v14  ;;  %634 = vmatpush.msrb.mxu1 %v476_v11 }
  0x29   : > { %408 = vmatpush.msra.mxu0 %v378_v8  ;;  %704 = vmatpush.msrb.mxu2 %v476_v11  ;;  %p3463_p1 = pnand %p3462_p0, %p3610_p5 }
  0x2a   : > { %774 = vmatpush.msra.mxu3 %v476_v11  ;;  %525 = vrot.lane.b32.xlu1 %v478_v25, %s3523_s18 }
  0x2b   : > { %844 = vmatpush.msrb.mxu0 %v476_v11  ;;  %635 = vmatpush.msrb.mxu1 %v475_v14  ;;  %p3464_p2 = pneg %p3463_p1 }
  0x2c   : > { %775 = vmatpush.msra.mxu3 %v475_v14  ;;  %705 = vmatpush.msrb.mxu2 %v475_v14 }
  0x2d   : > { %845 = vmatpush.msrb.mxu0 %v475_v14 }
  0x94   : > { %v374_v20 = vpop.permute.xlu0 %373 }
  0x95   : > { %vm375_vm3 = vcmp.eq.s32.totalorder %v374_v20, %v371_v19 }
  0x96   : > { %v3004_v22 = vsel %vm375_vm3, 1.0, %v3522_v21  ;;  %vm1034_vm3 = vcmask 1040384  }
  0x97   : > { %3006 = vmatmul.msk.f32.vlgmr.msra.gmra.mxu0 %vm385_vm2, %v3004_v22 }
  0x9c   : > { %v526_v49 = vpop.permute.xlu1 %525 }
  0xa7   : > { %v500_v29 = vpop.f32.mrf.mxu3 }
 0x114   : > { %v410_v26 = vpop.f32.mrf.mxu0 }
 0x115   : > { %3007 = vmatmul.msk.f32.vlgmr.msra.gmra.mxu1 %vm421_vm4, %v410_v26  ;;  %3013 = vmatmul.msk.f32.vlgmr.msra.gmra.mxu2 %vm421_vm4, %v410_v26 }
 0x116   : > { %914 = vmatpush.msra.mxu1 %v476_v11  ;;  %984 = vmatpush.msra.mxu2 %v476_v11 }
 0x118   : > { %915 = vmatpush.msra.mxu1 %v475_v14  ;;  %985 = vmatpush.msra.mxu2 %v475_v14 }
 0x192   : > { %v442_v28 = vpop.f32.mrf.mxu1 }
 0x193   : > { %v3721_v30 = vadd.f32 %v3125_v27, %v442_v28 }
 0x195   : > { %v503_v31 = vadd.f32 %v500_v29, %v3721_v30 }
 0x197   : > { %3129 = vtanh.f32 %v503_v31  ;;  %v504_v33 = vsub.f32 0.0, %v503_v31 }
 0x199   : > { %v505_v34 = vmul.f32 1.442695, %v504_v33 }
 0x19b   : > { %3131 = vpow2.f32 %v505_v34 }
 0x19d   : > { %v3130_v32 = vpop.eup %3129 }
 0x19e   : > { %530 = vrot.lane.b32.xlu0 %v3130_v32, %s3524_s12 }
 0x1a1   : > { %v3132_v35 = vpop.eup %3131 }
 0x1a2   : > { %v507_v36 = vadd.f32 1.0, %v3132_v35 }
 0x1a4   : > { %3133 = vrcp.f32 %v507_v36  ;;  %v519_v42 = vand.u32 2147483648, %v507_v36  ;;  %vm513_vm6 = vweird.f32 %v507_v36  ;;  %v517_v43 = vand.u32 2147483647, %v507_v36 }
 0x1a6   : > { %v520_v45 = vor.u32 1.1754944e-38, %v519_v42  ;;  %vm518_vm8 = vcmp.eq.f32.partialorder %v517_v43, 8.507059e+37 }
 0x1aa   : > { %v3134_v37 = vpop.eup %3133 }
 0x1ab   : > { %v509_v38 = vmul.f32 %v3134_v37, %v507_v36  ;;  %vm514_vm5 = vweird.f32 %v3134_v37 }
 0x1ac   : > { %vm515_vm7 = vmor %vm513_vm6, %vm514_vm5 }
 0x1ad   : > { %v510_v39 = vsub.f32 1.0, %v509_v38 }
 0x1af   : > { %v511_v40 = vmul.f32 %v3134_v37, %v510_v39 }
 0x1b1   : > { %v512_v41 = vadd.f32 %v3134_v37, %v511_v40 }
 0x1b3   : > { %v516_v44 = vsel %vm515_vm7, %v3134_v37, %v512_v41 }
 0x1b4   : > { %v521_v46 = vsel %vm518_vm8, %v520_v45, %v516_v44  ;;  %vm1037_vm8 = vcmask 1042432  }
 0x1b5   : > { %v528_v50 = vmul.f32 %v526_v49, %v521_v46 }
 0x210   : > { %v531_v47 = vpop.permute.xlu0 %530 }
 0x211   : > { %v533_v48 = vmul.f32 %v531_v47, %v521_v46 }
 0x213   : > { %535 = vrot.lane.b32.xlu1 %v533_v48, %s3523_s18 }
 0x285   : > { %v536_v51 = vpop.permute.xlu1 %535 }
 0x286   : > { %v538_v52 = vadd.f32 %v536_v51, %v528_v50 }
 0x288   : > { %3135 = vtanh.f32 %v538_v52  ;;  %v595_v13 = vrot.slane %v538_v52, 7 }
 0x28e   : > { %v3136_v53 = vpop.eup %3135 }
 0x28f   : > { %541 = vrot.lane.b32.xlu2 %v3136_v53, %s3525_s13 }
 0x2e9   : > { %v542_v54 = vpop.permute.xlu2 %541 }
 0x2ea   : > { %v3727_v55 = vmul.f32 %v542_v54, %v521_v46  ;;  %v3747_v54 = vpop.f32.mrf.mxu2 }
 0x2ec   : > { %546 = vrot.lane.b32.xlu2 %v3727_v55, %s3526_s17 }
 0x346   : > { %v547_v56 = vpop.permute.xlu2 %546 }
 0x347   : > { %3015 = vmatmul.msk.f32.vlgmr.msrb.gmra.mxu3 %vm479_vm1, %v547_v56 }
 0x3ca   : > { %v567_v57 = vpop.f32.mrf.mxu3 }
 0x3cb   : > { %v571_v58 = vrot.slane %v567_v57, 7 }
 0x3cd   : > { %v573_v59 = vadd.f32 %v571_v58, %v3721_v30 }
 0x3cf   : > { %3137 = vtanh.f32 %v573_v59  ;;  %v574_v61 = vsub.f32 0.0, %v573_v59 }
 0x3d1   : > { %v575_v62 = vmul.f32 1.442695, %v574_v61 }
 0x3d3   : > { %3139 = vpow2.f32 %v575_v62 }
 0x3d5   : > { %v3138_v60 = vpop.eup %3137 }
 0x3d6   : > { %599 = vrot.lane.b32.xlu0 %v3138_v60, %s3524_s12 }
 0x3d9   : > { %v3140_v63 = vpop.eup %3139 }
 0x3da   : > { %v577_v0 = vadd.f32 1.0, %v3140_v63 }
 0x3dc   : > { %3141 = vrcp.f32 %v577_v0  ;;  %v589_v6 = vand.u32 2147483648, %v577_v0  ;;  %vm583_vm10 = vweird.f32 %v577_v0  ;;  %v587_v7 = vand.u32 2147483647, %v577_v0 }
 0x3de   : > { %v590_v9 = vor.u32 1.1754944e-38, %v589_v6  ;;  %vm588_vm12 = vcmp.eq.f32.partialorder %v587_v7, 8.507059e+37 }
 0x3e2   : > { %v3142_v1 = vpop.eup %3141 }
 0x3e3   : > { %v579_v2 = vmul.f32 %v3142_v1, %v577_v0  ;;  %vm584_vm9 = vweird.f32 %v3142_v1 }
 0x3e4   : > { %vm585_vm11 = vmor %vm583_vm10, %vm584_vm9 }
 0x3e5   : > { %v580_v3 = vsub.f32 1.0, %v579_v2 }
 0x3e7   : > { %v581_v4 = vmul.f32 %v3142_v1, %v580_v3 }
 0x3e9   : > { %v582_v5 = vadd.f32 %v3142_v1, %v581_v4 }
 0x3eb   : > { %v586_v8 = vsel %vm585_vm11, %v3142_v1, %v582_v5 }
 0x3ec   : > { %v591_v11 = vsel %vm588_vm12, %v590_v9, %v586_v8 }
 0x3ed   : > { %v597_v14 = vmul.f32 %v595_v13, %v591_v11 }
 0x448   : > { %v600_v10 = vpop.permute.xlu0 %599 }
 0x449   : > { %v602_v12 = vmul.f32 %v600_v10, %v591_v11 }
 0x44b   : > { %604 = vrot.lane.b32.xlu1 %v602_v12, %s3523_s18 }
 0x4bd   : > { %v605_v15 = vpop.permute.xlu1 %604 }
 0x4be   : > { %v607_v16 = vadd.f32 %v605_v15, %v597_v14 }
 0x4c0   : > { %3143 = vtanh.f32 %v607_v16  ;;  %v665_v43 = vrot.slane %v607_v16, 7 }
 0x4c6   : > { %v3144_v17 = vpop.eup %3143 }
 0x4c7   : > { %610 = vrot.lane.b32.xlu2 %v3144_v17, %s3525_s13 }
 0x521   : > { %v611_v18 = vpop.permute.xlu2 %610 }
 0x522   : > { %v613_v19 = vmul.f32 %v611_v18, %v591_v11 }
 0x524   : > { %v615_v20 = vrot.slane %v613_v19, 1  ;;  %v1035_v50 = vsel %vm1034_vm3, %v3727_v55, %v613_v19 }
 0x526   : > { %616 = vrot.lane.b32.xlu0 %v615_v20, %s3526_s17  ;;  %v3760_v20 = vld [vmem:[#allocation5 + $0x18] sm:$0xff] }
 0x527   : > { %1069 = vmatpush.msrb.mxu3 %v3760_v20  ;;  %1141 = vmatpush.msra.mxu0 %v3760_v20 }
 0x598   : > { %v617_v21 = vpop.permute.xlu0 %616 }
 0x599   : > { %3016 = vmatmul.msk.f32.vlgmr.msrb.gmra.mxu1 %vm479_vm1, %v617_v21  ;;  %v3762_v21 = vld [vmem:[#allocation5 + $0x10] sm:$0xff] }
 0x59a   : > { %1211 = vmatpush.msrb.mxu1 %v3760_v20  ;;  %1070 = vmatpush.msrb.mxu3 %v3762_v21 }
 0x59b   : > { %1142 = vmatpush.msra.mxu0 %v3762_v21 }
 0x59c   : > { %1212 = vmatpush.msrb.mxu1 %v3762_v21 }
 0x616   : > { %v637_v22 = vpop.f32.mrf.mxu1 }
 0x617   : > { %v641_v23 = vrot.slane %v637_v22, 6 }
 0x619   : > { %v643_v24 = vadd.f32 %v641_v23, %v3721_v30  ;;  %v1050_v23 = vld [vmem:[%s3681_s10 + $0x1] sm:$0x1] }
 0x61b   : > { %3145 = vtanh.f32 %v643_v24  ;;  %v644_v26 = vsub.f32 0.0, %v643_v24 }
 0x61d   : > { %v645_v27 = vmul.f32 1.442695, %v644_v26 }
 0x61f   : > { %3147 = vpow2.f32 %v645_v27  ;;  %v3126_v27 = vld [vmem:[%s4189_s7 + $0x1] ss:$0 sm:$0xff] }
 0x621   : > { %v3146_v25 = vpop.eup %3145 }
 0x622   : > { %669 = vrot.lane.b32.xlu1 %v3146_v25, %s3524_s12 }
 0x625   : > { %v3148_v28 = vpop.eup %3147 }
 0x626   : > { %v647_v29 = vadd.f32 1.0, %v3148_v28 }
 0x628   : > { %3149 = vrcp.f32 %v647_v29  ;;  %v659_v36 = vand.u32 2147483648, %v647_v29  ;;  %vm653_vm14 = vweird.f32 %v647_v29  ;;  %v657_v37 = vand.u32 2147483647, %v647_v29 }
 0x62a   : > { %v660_v39 = vor.u32 1.1754944e-38, %v659_v36  ;;  %vm658_vm2 = vcmp.eq.f32.partialorder %v657_v37, 8.507059e+37 }
 0x62e   : > { %v3150_v31 = vpop.eup %3149 }
 0x62f   : > { %v649_v32 = vmul.f32 %v3150_v31, %v647_v29  ;;  %vm654_vm13 = vweird.f32 %v3150_v31  ;;  %v3782_v29 = vadd.f32 %v3126_v27, %v3747_v54 }
 0x630   : > { %vm655_vm15 = vmor %vm653_vm14, %vm654_vm13 }
 0x631   : > { %v650_v33 = vsub.f32 1.0, %v649_v32 }
 0x633   : > { %v651_v34 = vmul.f32 %v3150_v31, %v650_v33 }
 0x635   : > { %v652_v35 = vadd.f32 %v3150_v31, %v651_v34  ;;  %v1051_v34 = vld [vmem:[%s3708_s20 + $0x1] sm:$0x1] }
 0x637   : > { %v656_v38 = vsel %vm655_vm15, %v3150_v31, %v652_v35  ;;  %v1100_v35 = vrot.slane %v1051_v34, 1 }
 0x638   : > { %v661_v41 = vsel %vm658_vm2, %v660_v39, %v656_v38 }
 0x639   : > { %v667_v44 = vmul.f32 %v665_v43, %v661_v41 }
 0x694   : > { %v670_v40 = vpop.permute.xlu1 %669 }
 0x695   : > { %v672_v42 = vmul.f32 %v670_v40, %v661_v41 }
 0x697   : > { %674 = vrot.lane.b32.xlu2 %v672_v42, %s3523_s18 }
 0x6f1   : > { %v675_v45 = vpop.permute.xlu2 %674 }
 0x6f2   : > { %v677_v46 = vadd.f32 %v675_v45, %v667_v44 }
 0x6f4   : > { %3151 = vtanh.f32 %v677_v46  ;;  %v735_v11 = vrot.slane %v677_v46, 7 }
 0x6fa   : > { %v3152_v47 = vpop.eup %3151 }
 0x6fb   : > { %680 = vrot.lane.b32.xlu0 %v3152_v47, %s3525_s13 }
 0x76d   : > { %v681_v48 = vpop.permute.xlu0 %680 }
 0x76e   : > { %v683_v49 = vmul.f32 %v681_v48, %v661_v41 }
 0x770   : > { %v685_v51 = vrot.slane %v683_v49, 2  ;;  %v1036_v52 = vsel %vm389_vm0, %v1035_v50, %v683_v49 }
 0x772   : > { %686 = vrot.lane.b32.xlu1 %v685_v51, %s3526_s17 }
 0x7e4   : > { %v687_v53 = vpop.permute.xlu1 %686 }
 0x7e5   : > { %3017 = vmatmul.msk.f32.vlgmr.msrb.gmra.mxu2 %vm479_vm1, %v687_v53 }
 0x7e6   : > { %1281 = vmatpush.msrb.mxu2 %v3760_v20 }
 0x7e8   : > { %1282 = vmatpush.msrb.mxu2 %v3762_v21 }
 0x868   : > { %v707_v56 = vpop.f32.mrf.mxu2 }
 0x869   : > { %v711_v57 = vrot.slane %v707_v56, 5 }
 0x86b   : > { %v713_v58 = vadd.f32 %v711_v57, %v3721_v30 }
 0x86d   : > { %3153 = vtanh.f32 %v713_v58  ;;  %v714_v60 = vsub.f32 0.0, %v713_v58 }
 0x86f   : > { %v715_v55 = vmul.f32 1.442695, %v714_v60 }
 0x871   : > { %3155 = vpow2.f32 %v715_v55 }
 0x873   : > { %v3154_v59 = vpop.eup %3153 }
 0x874   : > { %739 = vrot.lane.b32.xlu2 %v3154_v59, %s3524_s12 }
 0x877   : > { %v3156_v61 = vpop.eup %3155 }
 0x878   : > { %v717_v62 = vadd.f32 1.0, %v3156_v61 }
 0x87a   : > { %3157 = vrcp.f32 %v717_v62  ;;  %v729_v4 = vand.u32 2147483648, %v717_v62  ;;  %vm723_vm5 = vweird.f32 %v717_v62  ;;  %v727_v5 = vand.u32 2147483647, %v717_v62 }
 0x87c   : > { %v730_v7 = vor.u32 1.1754944e-38, %v729_v4  ;;  %vm728_vm7 = vcmp.eq.f32.partialorder %v727_v5, 8.507059e+37 }
 0x880   : > { %v3158_v63 = vpop.eup %3157 }
 0x881   : > { %v719_v0 = vmul.f32 %v3158_v63, %v717_v62  ;;  %vm724_vm4 = vweird.f32 %v3158_v63 }
 0x882   : > { %vm725_vm6 = vmor %vm723_vm5, %vm724_vm4  ;;  %vm1039_vm4 = vcmask 1043456  }
 0x883   : > { %v720_v1 = vsub.f32 1.0, %v719_v0 }
 0x885   : > { %v721_v2 = vmul.f32 %v3158_v63, %v720_v1 }
 0x887   : > { %v722_v3 = vadd.f32 %v3158_v63, %v721_v2 }
 0x889   : > { %v726_v6 = vsel %vm725_vm6, %v3158_v63, %v722_v3 }
 0x88a   : > { %v731_v9 = vsel %vm728_vm7, %v730_v7, %v726_v6 }
 0x88b   : > { %v737_v12 = vmul.f32 %v735_v11, %v731_v9 }
 0x8ce   : > { %v740_v8 = vpop.permute.xlu2 %739 }
 0x8cf   : > { %v742_v10 = vmul.f32 %v740_v8, %v731_v9 }
 0x8d1   : > { %744 = vrot.lane.b32.xlu0 %v742_v10, %s3523_s18 }
 0x943   : > { %v745_v13 = vpop.permute.xlu0 %744 }
 0x944   : > { %v3752_v14 = vadd.f32 %v745_v13, %v737_v12 }
 0x946   : > { %3159 = vtanh.f32 %v3752_v14  ;;  %v805_v5 = vrot.slane %v3752_v14, 7 }
 0x94c   : > { %v3160_v15 = vpop.eup %3159 }
 0x94d   : > { %750 = vrot.lane.b32.xlu1 %v3160_v15, %s3525_s13 }
 0x9bf   : > { %v751_v16 = vpop.permute.xlu1 %750 }
 0x9c0   : > { %v753_v17 = vmul.f32 %v751_v16, %v731_v9 }
 0x9c2   : > { %v755_v18 = vrot.slane %v753_v17, 3  ;;  %v3757_v19 = vsel %vm1037_vm8, %v1036_v52, %v753_v17 }
 0x9c4   : > { %756 = vrot.lane.b32.xlu2 %v755_v18, %s3526_s17 }
 0xa1e   : > { %v757_v22 = vpop.permute.xlu2 %756 }
 0xa1f   : > { %3018 = vmatmul.msk.f32.vlgmr.msra.gmra.mxu3 %vm479_vm1, %v757_v22 }
 0xa20   : > { %1351 = vmatpush.msra.mxu3 %v3760_v20 }
 0xa22   : > { %1352 = vmatpush.msra.mxu3 %v3762_v21 }
 0xa27   : > { %3022 = vmatmul.msk.f32.vlgmr.msrb.gmra.mxu3 %vm479_vm1, %v1050_v23 }
 0xaa2   : > { %v777_v24 = vpop.f32.mrf.mxu3 }
 0xaa3   : > { %v781_v25 = vrot.slane %v777_v24, 4 }
 0xaa5   : > { %v783_v26 = vadd.f32 %v781_v25, %v3721_v30 }
 0xaa7   : > { %3161 = vtanh.f32 %v783_v26  ;;  %v784_v37 = vsub.f32 0.0, %v783_v26 }
 0xaa9   : > { %v785_v38 = vmul.f32 1.442695, %v784_v37 }
 0xaaa   : > { %v1072_v28 = vpop.f32.mrf.mxu3 }
 0xaab   : > { %v1076_v31 = vrot.slane %v1072_v28, 1 }
 0xaad   : > { %v3162_v32 = vpop.eup %3161  ;;  %v1078_v33 = vadd.f32 %v1076_v31, %v3782_v29 }
 0xaae   : > { %809 = vrot.lane.b32.xlu0 %v3162_v32, %s3524_s12 }
 0xaaf   : > { %3163 = vtanh.f32 %v1078_v33  ;;  %v1079_v39 = vsub.f32 0.0, %v1078_v33 }
 0xab0   : > { %3165 = vpow2.f32 %v785_v38 }
 0xab1   : > { %v1080_v40 = vmul.f32 1.442695, %v1079_v39 }
 0xab3   : > { %3167 = vpow2.f32 %v1080_v40 }
 0xab5   : > { %v3164_v36 = vpop.eup %3163 }
 0xab6   : > { %1106 = vrot.lane.b32.xlu1 %v3164_v36, %s3524_s12  ;;  %1101 = vrot.lane.b32.xlu0 %v1100_v35, %s3523_s18  ;;  %v3166_v41 = vpop.eup %3165 }
 0xab7   : > { %v787_v42 = vadd.f32 1.0, %v3166_v41 }
 0xab9   : > { %3169 = vrcp.f32 %v787_v42  ;;  %v3168_v43 = vpop.eup %3167  ;;  %v799_v53 = vand.u32 2147483648, %v787_v42  ;;  %vm793_vm10 = vweird.f32 %v787_v42  ;;  %v797_v54 = vand.u32 2147483647, %v787_v42 }
 0xaba   : > { %v1082_v44 = vadd.f32 1.0, %v3168_v43 }
 0xabb   : > { %v800_v58 = vor.u32 1.1754944e-38, %v799_v53  ;;  %vm798_vm12 = vcmp.eq.f32.partialorder %v797_v54, 8.507059e+37 }
 0xabc   : > { %3171 = vrcp.f32 %v1082_v44  ;;  %v1094_v62 = vand.u32 2147483648, %v1082_v44  ;;  %vm1088_vm14 = vweird.f32 %v1082_v44  ;;  %v1092_v63 = vand.u32 2147483647, %v1082_v44 }
 0xabe   : > { %v1095_v1 = vor.u32 1.1754944e-38, %v1094_v62  ;;  %vm1093_vm2 = vcmp.eq.f32.partialorder %v1092_v63, 8.507059e+37 }
 0xabf   : > { %v3170_v45 = vpop.eup %3169 }
 0xac0   : > { %v789_v46 = vmul.f32 %v3170_v45, %v787_v42  ;;  %vm794_vm9 = vweird.f32 %v3170_v45 }
 0xac1   : > { %vm795_vm11 = vmor %vm793_vm10, %vm794_vm9 }
 0xac2   : > { %v790_v47 = vsub.f32 1.0, %v789_v46  ;;  %v3172_v48 = vpop.eup %3171 }
 0xac3   : > { %v1084_v50 = vmul.f32 %v3172_v48, %v1082_v44  ;;  %vm1089_vm13 = vweird.f32 %v3172_v48 }
 0xac4   : > { %v791_v49 = vmul.f32 %v3170_v45, %v790_v47  ;;  %vm1090_vm15 = vmor %vm1088_vm14, %vm1089_vm13  ;;  %vm1041_vm14 = vcmask 1044480  }
 0xac5   : > { %v1085_v52 = vsub.f32 1.0, %v1084_v50 }
 0xac6   : > { %v792_v51 = vadd.f32 %v3170_v45, %v791_v49 }
 0xac7   : > { %v1086_v57 = vmul.f32 %v3172_v48, %v1085_v52 }
 0xac8   : > { %v796_v56 = vsel %vm795_vm11, %v3170_v45, %v792_v51 }
 0xac9   : > { %v801_v60 = vsel %vm798_vm12, %v800_v58, %v796_v56  ;;  %v1087_v61 = vadd.f32 %v3172_v48, %v1086_v57 }
 0xaca   : > { %v807_v6 = vmul.f32 %v805_v5, %v801_v60 }
 0xacb   : > { %v1091_v0 = vsel %vm1090_vm15, %v3172_v48, %v1087_v61 }
 0xacc   : > { %v1096_v3 = vsel %vm1093_vm2, %v1095_v1, %v1091_v0 }
 0xb20   : > { %v810_v59 = vpop.permute.xlu0 %809 }
 0xb21   : > { %v812_v55 = vmul.f32 %v810_v59, %v801_v60 }
 0xb23   : > { %814 = vrot.lane.b32.xlu2 %v812_v55, %s3523_s18 }
 0xb28   : > { %v1107_v2 = vpop.permute.xlu1 %1106  ;;  %v1102_v10 = vpop.permute.xlu0 %1101 }
 0xb29   : > { %v1109_v4 = vmul.f32 %v1107_v2, %v1096_v3  ;;  %v1104_v11 = vmul.f32 %v1102_v10, %v1096_v3 }
 0xb2b   : > { %1111 = vrot.lane.b32.xlu1 %v1109_v4, %s3523_s18 }
 0xb7d   : > { %v815_v7 = vpop.permute.xlu2 %814 }
 0xb7e   : > { %v3792_v8 = vadd.f32 %v815_v7, %v807_v6 }
 0xb80   : > { %3173 = vtanh.f32 %v3792_v8  ;;  %v875_v4 = vrot.slane %v3792_v8, 7 }
 0xb86   : > { %v3174_v9 = vpop.eup %3173 }
 0xb87   : > { %820 = vrot.lane.b32.xlu2 %v3174_v9, %s3525_s13 }
 0xb9d   : > { %v1112_v12 = vpop.permute.xlu1 %1111 }
 0xb9e   : > { %v3796_v13 = vadd.f32 %v1112_v12, %v1104_v11 }
 0xba0   : > { %3175 = vtanh.f32 %v3796_v13  ;;  %v1172_v10 = vrot.slane %v3796_v13, 1 }
 0xba6   : > { %v3176_v15 = vpop.eup %3175 }
 0xba7   : > { %1117 = vrot.lane.b32.xlu0 %v3176_v15, %s3525_s13 }
 0xbe1   : > { %v821_v14 = vpop.permute.xlu2 %820 }
 0xbe2   : > { %v823_v16 = vmul.f32 %v821_v14, %v801_v60 }
 0xbe4   : > { %v825_v17 = vrot.slane %v823_v16, 4  ;;  %v3802_v18 = vsel %vm1039_vm4, %v3757_v19, %v823_v16 }
 0xbe6   : > { %826 = vrot.lane.b32.xlu1 %v825_v17, %s3526_s17 }
 0xc19   : > { %v1118_v22 = vpop.permute.xlu0 %1117 }
 0xc1a   : > { %v3805_v23 = vmul.f32 %v1118_v22, %v1096_v3 }
 0xc1c   : > { %v1122_v24 = vrot.slane %v3805_v23, 7 }
 0xc1e   : > { %1123 = vrot.lane.b32.xlu2 %v1122_v24, %s3526_s17 }
 0xc58   : > { %v827_v25 = vpop.permute.xlu1 %826 }
 0xc59   : > { %3019 = vmatmul.msk.f32.vlgmr.msrb.gmra.mxu0 %vm479_vm1, %v827_v25 }
 0xc5a   : > { %1421 = vmatpush.msrb.mxu0 %v3760_v20 }
 0xc5c   : > { %1422 = vmatpush.msrb.mxu0 %v3762_v21 }
 0xc78   : > { %v1124_v26 = vpop.permute.xlu2 %1123 }
 0xc79   : > { %3023 = vmatmul.msk.f32.vlgmr.msra.gmra.mxu0 %vm479_vm1, %v1124_v26 }
 0xcd6   : > { %v847_v19 = vpop.f32.mrf.mxu0 }
 0xcd7   : > { %v851_v27 = vrot.slane %v847_v19, 3 }
 0xcd9   : > { %v853_v28 = vadd.f32 %v851_v27, %v3721_v30 }
 0xcdb   : > { %3177 = vtanh.f32 %v853_v28  ;;  %v854_v36 = vsub.f32 0.0, %v853_v28 }
 0xcdd   : > { %v855_v37 = vmul.f32 1.442695, %v854_v36 }
 0xce1   : > { %v3178_v31 = vpop.eup %3177 }
 0xce2   : > { %879 = vrot.lane.b32.xlu0 %v3178_v31, %s3524_s12 }
 0xcf6   : > { %v1144_v32 = vpop.f32.mrf.mxu0 }
 0xcf7   : > { %v1148_v33 = vrot.slane %v1144_v32, 2 }
 0xcf9   : > { %v1150_v34 = vadd.f32 %v1148_v33, %v3782_v29 }
 0xcfb   : > { %3179 = vtanh.f32 %v1150_v34  ;;  %v1151_v42 = vsub.f32 0.0, %v1150_v34 }
 0xcfc   : > { %3181 = vpow2.f32 %v855_v37 }
 0xcfd   : > { %v1152_v44 = vmul.f32 1.442695, %v1151_v42 }
 0xd01   : > { %v3180_v35 = vpop.eup %3179 }
 0xd02   : > { %1176 = vrot.lane.b32.xlu1 %v3180_v35, %s3524_s12  ;;  %v3182_v38 = vpop.eup %3181 }
 0xd03   : > { %v857_v39 = vadd.f32 1.0, %v3182_v38 }
 0xd05   : > { %3183 = vrcp.f32 %v857_v39  ;;  %v869_v47 = vand.u32 2147483648, %v857_v39  ;;  %vm863_vm6 = vweird.f32 %v857_v39  ;;  %v867_v48 = vand.u32 2147483647, %v857_v39 }
 0xd06   : > { %3185 = vpow2.f32 %v1152_v44 }
 0xd07   : > { %v870_v51 = vor.u32 1.1754944e-38, %v869_v47  ;;  %vm868_vm9 = vcmp.eq.f32.partialorder %v867_v48, 8.507059e+37 }
 0xd0b   : > { %v3184_v40 = vpop.eup %3183 }
 0xd0c   : > { %v859_v41 = vmul.f32 %v3184_v40, %v857_v39  ;;  %vm864_vm5 = vweird.f32 %v3184_v40  ;;  %v3186_v49 = vpop.eup %3185 }
 0xd0d   : > { %vm865_vm7 = vmor %vm863_vm6, %vm864_vm5  ;;  %v1154_v52 = vadd.f32 1.0, %v3186_v49 }
 0xd0e   : > { %v860_v43 = vsub.f32 1.0, %v859_v41 }
 0xd0f   : > { %3187 = vrcp.f32 %v1154_v52  ;;  %v1166_v61 = vand.u32 2147483648, %v1154_v52  ;;  %vm1160_vm11 = vweird.f32 %v1154_v52  ;;  %v1164_v62 = vand.u32 2147483647, %v1154_v52 }
 0xd10   : > { %v861_v45 = vmul.f32 %v3184_v40, %v860_v43 }
 0xd11   : > { %v1167_v0 = vor.u32 1.1754944e-38, %v1166_v61  ;;  %vm1165_vm13 = vcmp.eq.f32.partialorder %v1164_v62, 8.507059e+37 }
 0xd12   : > { %v862_v46 = vadd.f32 %v3184_v40, %v861_v45 }
 0xd14   : > { %v866_v50 = vsel %vm865_vm7, %v3184_v40, %v862_v46 }
 0xd15   : > { %v871_v54 = vsel %vm868_vm9, %v870_v51, %v866_v50  ;;  %v3188_v57 = vpop.eup %3187 }
 0xd16   : > { %v1156_v58 = vmul.f32 %v3188_v57, %v1154_v52  ;;  %vm1161_vm10 = vweird.f32 %v3188_v57  ;;  %v877_v5 = vmul.f32 %v875_v4, %v871_v54 }
 0xd17   : > { %vm1162_vm12 = vmor %vm1160_vm11, %vm1161_vm10 }
 0xd18   : > { %v1157_v59 = vsub.f32 1.0, %v1156_v58 }
 0xd1a   : > { %v1158_v60 = vmul.f32 %v3188_v57, %v1157_v59 }
 0xd1c   : > { %v1159_v55 = vadd.f32 %v3188_v57, %v1158_v60 }
 0xd1e   : > { %v1163_v63 = vsel %vm1162_vm12, %v3188_v57, %v1159_v55  ;;  %vm1043_vm12 = vcmask 1045504  }
 0xd1f   : > { %v1168_v2 = vsel %vm1165_vm13, %v1167_v0, %v1163_v63 }
 0xd20   : > { %v1174_v11 = vmul.f32 %v1172_v10, %v1168_v2 }
 0xd54   : > { %v880_v53 = vpop.permute.xlu0 %879 }
 0xd55   : > { %v882_v56 = vmul.f32 %v880_v53, %v871_v54 }
 0xd57   : > { %884 = vrot.lane.b32.xlu2 %v882_v56, %s3523_s18 }
 0xd74   : > { %v1177_v1 = vpop.permute.xlu1 %1176 }
 0xd75   : > { %v1179_v3 = vmul.f32 %v1177_v1, %v1168_v2 }
 0xd77   : > { %1181 = vrot.lane.b32.xlu0 %v1179_v3, %s3523_s18 }
 0xdb1   : > { %v885_v6 = vpop.permute.xlu2 %884 }
 0xdb2   : > { %v3820_v7 = vadd.f32 %v885_v6, %v877_v5 }
 0xdb4   : > { %3189 = vtanh.f32 %v3820_v7  ;;  %v945_v4 = vrot.slane %v3820_v7, 7 }
 0xdba   : > { %v3190_v9 = vpop.eup %3189 }
 0xdbb   : > { %890 = vrot.lane.b32.xlu1 %v3190_v9, %s3525_s13 }
 0xde9   : > { %v1182_v12 = vpop.permute.xlu0 %1181 }
 0xdea   : > { %v3825_v15 = vadd.f32 %v1182_v12, %v1174_v11 }
 0xdec   : > { %3191 = vtanh.f32 %v3825_v15  ;;  %v1242_v11 = vrot.slane %v3825_v15, 1 }
 0xdf2   : > { %v3192_v14 = vpop.eup %3191 }
 0xdf3   : > { %1187 = vrot.lane.b32.xlu2 %v3192_v14, %s3525_s13 }
 0xe2d   : > { %v891_v8 = vpop.permute.xlu1 %890 }
 0xe2e   : > { %v893_v16 = vmul.f32 %v891_v8, %v871_v54 }
 0xe30   : > { %v895_v17 = vrot.slane %v893_v16, 5  ;;  %v3831_v22 = vsel %vm1041_vm14, %v3802_v18, %v893_v16 }
 0xe32   : > { %896 = vrot.lane.b32.xlu0 %v895_v17, %s3526_s17 }
 0xe4d   : > { %v1188_v13 = vpop.permute.xlu2 %1187 }
 0xe4e   : > { %v3834_v24 = vmul.f32 %v1188_v13, %v1168_v2 }
 0xe50   : > { %v1192_v25 = vrot.slane %v3834_v24, 6 }
 0xe52   : > { %1193 = vrot.lane.b32.xlu1 %v1192_v25, %s3526_s17 }
 0xea4   : > { %v897_v26 = vpop.permute.xlu0 %896 }
 0xea5   : > { %3020 = vmatmul.msk.f32.vlgmr.msra.gmra.mxu1 %vm479_vm1, %v897_v26 }
 0xea6   : > { %1491 = vmatpush.msra.mxu1 %v3760_v20 }
 0xea8   : > { %1492 = vmatpush.msra.mxu1 %v3762_v21 }
 0xec4   : > { %v1194_v19 = vpop.permute.xlu1 %1193 }
 0xec5   : > { %3024 = vmatmul.msk.f32.vlgmr.msrb.gmra.mxu1 %vm479_vm1, %v1194_v19 }
 0xf22   : > { %v917_v18 = vpop.f32.mrf.mxu1 }
 0xf23   : > { %v921_v27 = vrot.slane %v917_v18, 2 }
 0xf25   : > { %v923_v28 = vadd.f32 %v921_v27, %v3721_v30 }
 0xf27   : > { %3193 = vtanh.f32 %v923_v28  ;;  %v924_v36 = vsub.f32 0.0, %v923_v28 }
 0xf29   : > { %v925_v37 = vmul.f32 1.442695, %v924_v36 }
 0xf2d   : > { %v3194_v31 = vpop.eup %3193 }
 0xf2e   : > { %949 = vrot.lane.b32.xlu2 %v3194_v31, %s3524_s12 }
 0xf42   : > { %v1214_v32 = vpop.f32.mrf.mxu1 }
 0xf43   : > { %v1218_v33 = vrot.slane %v1214_v32, 3 }
 0xf45   : > { %v1220_v34 = vadd.f32 %v1218_v33, %v3782_v29 }
 0xf47   : > { %3195 = vtanh.f32 %v1220_v34  ;;  %v1221_v52 = vsub.f32 0.0, %v1220_v34 }
 0xf48   : > { %3197 = vpow2.f32 %v925_v37 }
 0xf49   : > { %v1222_v53 = vmul.f32 1.442695, %v1221_v52 }
 0xf4d   : > { %v3196_v35 = vpop.eup %3195 }
 0xf4e   : > { %1246 = vrot.lane.b32.xlu0 %v3196_v35, %s3524_s12  ;;  %v3198_v38 = vpop.eup %3197 }
 0xf4f   : > { %v927_v39 = vadd.f32 1.0, %v3198_v38 }
 0xf51   : > { %3199 = vrcp.f32 %v927_v39  ;;  %v939_v45 = vand.u32 2147483648, %v927_v39  ;;  %vm933_vm2 = vweird.f32 %v927_v39  ;;  %v937_v46 = vand.u32 2147483647, %v927_v39 }
 0xf52   : > { %3201 = vpow2.f32 %v1222_v53 }
 0xf53   : > { %v940_v48 = vor.u32 1.1754944e-38, %v939_v45  ;;  %vm938_vm6 = vcmp.eq.f32.partialorder %v937_v46, 8.507059e+37 }
 0xf57   : > { %v3200_v40 = vpop.eup %3199 }
 0xf58   : > { %v929_v41 = vmul.f32 %v3200_v40, %v927_v39  ;;  %vm934_vm15 = vweird.f32 %v3200_v40  ;;  %v3202_v54 = vpop.eup %3201 }
 0xf59   : > { %vm935_vm5 = vmor %vm933_vm2, %vm934_vm15  ;;  %v1224_v56 = vadd.f32 1.0, %v3202_v54 }
 0xf5a   : > { %v930_v42 = vsub.f32 1.0, %v929_v41 }
 0xf5b   : > { %3203 = vrcp.f32 %v1224_v56  ;;  %v1236_v61 = vand.u32 2147483648, %v1224_v56  ;;  %vm1230_vm9 = vweird.f32 %v1224_v56  ;;  %v1234_v62 = vand.u32 2147483647, %v1224_v56 }
 0xf5c   : > { %v931_v43 = vmul.f32 %v3200_v40, %v930_v42 }
 0xf5d   : > { %v1237_v0 = vor.u32 1.1754944e-38, %v1236_v61  ;;  %vm1235_vm11 = vcmp.eq.f32.partialorder %v1234_v62, 8.507059e+37 }
 0xf5e   : > { %v932_v44 = vadd.f32 %v3200_v40, %v931_v43 }
 0xf60   : > { %v936_v47 = vsel %vm935_vm5, %v3200_v40, %v932_v44 }
 0xf61   : > { %v941_v49 = vsel %vm938_vm6, %v940_v48, %v936_v47  ;;  %v3204_v57 = vpop.eup %3203 }
 0xf62   : > { %v1226_v58 = vmul.f32 %v3204_v57, %v1224_v56  ;;  %vm1231_vm7 = vweird.f32 %v3204_v57  ;;  %v947_v5 = vmul.f32 %v945_v4, %v941_v49 }
 0xf63   : > { %vm1232_vm10 = vmor %vm1230_vm9, %vm1231_vm7 }
 0xf64   : > { %v1227_v59 = vsub.f32 1.0, %v1226_v58 }
 0xf66   : > { %v1228_v60 = vmul.f32 %v3204_v57, %v1227_v59 }
 0xf68   : > { %v1229_v55 = vadd.f32 %v3204_v57, %v1228_v60 }
 0xf6a   : > { %v1233_v63 = vsel %vm1232_vm10, %v3204_v57, %v1229_v55 }
 0xf6b   : > { %v1238_v2 = vsel %vm1235_vm11, %v1237_v0, %v1233_v63 }
 0xf6c   : > { %v1244_v12 = vmul.f32 %v1242_v11, %v1238_v2 }
 0xf88   : > { %v950_v50 = vpop.permute.xlu2 %949 }
 0xf89   : > { %v952_v51 = vmul.f32 %v950_v50, %v941_v49 }
 0xf8b   : > { %954 = vrot.lane.b32.xlu1 %v952_v51, %s3523_s18 }
 0xfc0   : > { %v1247_v1 = vpop.permute.xlu0 %1246 }
 0xfc1   : > { %v1249_v3 = vmul.f32 %v1247_v1, %v1238_v2 }
 0xfc3   : > { %1251 = vrot.lane.b32.xlu2 %v1249_v3, %s3523_s18 }
 0xffd   : > { %v955_v6 = vpop.permute.xlu1 %954 }
 0xffe   : > { %v3849_v9 = vadd.f32 %v955_v6, %v947_v5 }
0x1000   : > { %3205 = vtanh.f32 %v3849_v9 }
0x1006   : > { %v3206_v10 = vpop.eup %3205 }
0x1007   : > { %960 = vrot.lane.b32.xlu0 %v3206_v10, %s3525_s13 }
0x101d   : > { %v1252_v14 = vpop.permute.xlu2 %1251 }
0x101e   : > { %v1254_v8 = vadd.f32 %v1252_v14, %v1244_v12 }
0x1020   : > { %3207 = vtanh.f32 %v1254_v8  ;;  %v1312_v48 = vrot.slane %v1254_v8, 1 }
0x1026   : > { %v3208_v16 = vpop.eup %3207 }
0x1027   : > { %1257 = vrot.lane.b32.xlu1 %v3208_v16, %s3525_s13 }
0x1079   : > { %v961_v17 = vpop.permute.xlu0 %960 }
0x107a   : > { %v963_v7 = vmul.f32 %v961_v17, %v941_v49 }
0x107c   : > { %v965_v13 = vrot.slane %v963_v7, 6  ;;  %v3857_v25 = vsel %vm1043_vm12, %v3831_v22, %v963_v7 }
0x107e   : > { %966 = vrot.lane.b32.xlu2 %v965_v13, %s3526_s17 }
0x1099   : > { %v1258_v26 = vpop.permute.xlu1 %1257 }
0x109a   : > { %v3860_v19 = vmul.f32 %v1258_v26, %v1238_v2 }
0x109c   : > { %v1262_v15 = vrot.slane %v3860_v19, 5 }
0x109e   : > { %1263 = vrot.lane.b32.xlu0 %v1262_v15, %s3526_s17 }
0x10d8   : > { %v967_v18 = vpop.permute.xlu2 %966 }
0x10d9   : > { %3021 = vmatmul.msk.f32.vlgmr.msra.gmra.mxu2 %vm479_vm1, %v967_v18 }
0x10da   : > { %1561 = vmatpush.msra.mxu2 %v3760_v20 }
0x10dc   : > { %1562 = vmatpush.msra.mxu2 %v3762_v21 }
0x1110   : > { %v1264_v27 = vpop.permute.xlu0 %1263 }
0x1111   : > { %3025 = vmatmul.msk.f32.vlgmr.msrb.gmra.mxu2 %vm479_vm1, %v1264_v27 }
0x115c   : > { %v3868_v22 = vpop.f32.mrf.mxu2 }
0x1194   : > { %v1284_v28 = vpop.f32.mrf.mxu2 }
0x1195   : > { %v1288_v31 = vrot.slane %v1284_v28, 4 }
0x1197   : > { %v1290_v32 = vadd.f32 %v1288_v31, %v3782_v29 }
0x1199   : > { %3209 = vtanh.f32 %v1290_v32  ;;  %v1291_v34 = vsub.f32 0.0, %v1290_v32 }
0x119b   : > { %v1292_v35 = vmul.f32 1.442695, %v1291_v34 }
0x119d   : > { %3211 = vpow2.f32 %v1292_v35 }
0x119f   : > { %v3210_v33 = vpop.eup %3209 }
0x11a0   : > { %1316 = vrot.lane.b32.xlu1 %v3210_v33, %s3524_s12 }
0x11a3   : > { %v3212_v36 = vpop.eup %3211 }
0x11a4   : > { %v1294_v20 = vadd.f32 1.0, %v3212_v36 }
0x11a6   : > { %3213 = vrcp.f32 %v1294_v20  ;;  %v1306_v41 = vand.u32 2147483648, %v1294_v20  ;;  %vm1300_vm15 = vweird.f32 %v1294_v20  ;;  %v1304_v42 = vand.u32 2147483647, %v1294_v20 }
0x11a8   : > { %v1307_v44 = vor.u32 1.1754944e-38, %v1306_v41  ;;  %vm1305_vm5 = vcmp.eq.f32.partialorder %v1304_v42, 8.507059e+37 }
0x11ac   : > { %v3214_v21 = vpop.eup %3213 }
0x11ad   : > { %v1296_v37 = vmul.f32 %v3214_v21, %v1294_v20  ;;  %vm1301_vm13 = vweird.f32 %v3214_v21 }
0x11ae   : > { %vm1302_vm2 = vmor %vm1300_vm15, %vm1301_vm13 }
0x11af   : > { %v1297_v38 = vsub.f32 1.0, %v1296_v37 }
0x11b1   : > { %v1298_v39 = vmul.f32 %v3214_v21, %v1297_v38 }
0x11b3   : > { %v1299_v40 = vadd.f32 %v3214_v21, %v1298_v39 }
0x11b5   : > { %v1303_v43 = vsel %vm1302_vm2, %v3214_v21, %v1299_v40 }
0x11b6   : > { %v1308_v46 = vsel %vm1305_vm5, %v1307_v44, %v1303_v43 }
0x11b7   : > { %v1314_v49 = vmul.f32 %v1312_v48, %v1308_v46 }
0x1212   : > { %v1317_v45 = vpop.permute.xlu1 %1316 }
0x1213   : > { %v1319_v47 = vmul.f32 %v1317_v45, %v1308_v46 }
0x1215   : > { %1321 = vrot.lane.b32.xlu2 %v1319_v47, %s3523_s18 }
0x126f   : > { %v1322_v50 = vpop.permute.xlu2 %1321 }
0x1270   : > { %v1324_v51 = vadd.f32 %v1322_v50, %v1314_v49 }
0x1272   : > { %3215 = vtanh.f32 %v1324_v51  ;;  %v1382_v17 = vrot.slane %v1324_v51, 1 }
0x1278   : > { %v3216_v52 = vpop.eup %3215 }
0x1279   : > { %1327 = vrot.lane.b32.xlu0 %v3216_v52, %s3525_s13 }
0x12eb   : > { %v1328_v53 = vpop.permute.xlu0 %1327 }
0x12ec   : > { %v3874_v54 = vmul.f32 %v1328_v53, %v1308_v46 }
0x12ee   : > { %v1332_v56 = vrot.slane %v3874_v54, 4 }
0x12f0   : > { %1333 = vrot.lane.b32.xlu1 %v1332_v56, %s3526_s17 }
0x1362   : > { %v1334_v57 = vpop.permute.xlu1 %1333 }
0x1363   : > { %3026 = vmatmul.msk.f32.vlgmr.msra.gmra.mxu3 %vm479_vm1, %v1334_v57 }
0x13e6   : > { %v1354_v58 = vpop.f32.mrf.mxu3 }
0x13e7   : > { %v1358_v59 = vrot.slane %v1354_v58, 5 }
0x13e9   : > { %v1360_v60 = vadd.f32 %v1358_v59, %v3782_v29 }
0x13eb   : > { %3217 = vtanh.f32 %v1360_v60  ;;  %v1361_v61 = vsub.f32 0.0, %v1360_v60 }
0x13ed   : > { %v1362_v62 = vmul.f32 1.442695, %v1361_v61 }
0x13ef   : > { %3219 = vpow2.f32 %v1362_v62 }
0x13f1   : > { %v3218_v55 = vpop.eup %3217 }
0x13f2   : > { %1386 = vrot.lane.b32.xlu2 %v3218_v55, %s3524_s12 }
0x13f5   : > { %v3220_v63 = vpop.eup %3219 }
0x13f6   : > { %v1364_v0 = vadd.f32 1.0, %v3220_v63 }
0x13f8   : > { %3221 = vrcp.f32 %v1364_v0  ;;  %v1376_v6 = vand.u32 2147483648, %v1364_v0  ;;  %vm1370_vm7 = vweird.f32 %v1364_v0  ;;  %v1374_v10 = vand.u32 2147483647, %v1364_v0 }
0x13fa   : > { %v1377_v12 = vor.u32 1.1754944e-38, %v1376_v6  ;;  %vm1375_vm10 = vcmp.eq.f32.partialorder %v1374_v10, 8.507059e+37 }
0x13fe   : > { %v3222_v1 = vpop.eup %3221 }
0x13ff   : > { %v1366_v2 = vmul.f32 %v3222_v1, %v1364_v0  ;;  %vm1371_vm6 = vweird.f32 %v3222_v1 }
0x1400   : > { %vm1372_vm9 = vmor %vm1370_vm7, %vm1371_vm6 }
0x1401   : > { %v1367_v3 = vsub.f32 1.0, %v1366_v2 }
0x1403   : > { %v1368_v4 = vmul.f32 %v3222_v1, %v1367_v3 }
0x1405   : > { %v1369_v5 = vadd.f32 %v3222_v1, %v1368_v4 }
0x1407   : > { %v1373_v11 = vsel %vm1372_vm9, %v3222_v1, %v1369_v5 }
0x1408   : > { %v1378_v8 = vsel %vm1375_vm10, %v1377_v12, %v1373_v11 }
0x1409   : > { %v1384_v7 = vmul.f32 %v1382_v17, %v1378_v8 }
0x144c   : > { %v1387_v14 = vpop.permute.xlu2 %1386 }
0x144d   : > { %v1389_v16 = vmul.f32 %v1387_v14, %v1378_v8 }
0x144f   : > { %1391 = vrot.lane.b32.xlu0 %v1389_v16, %s3523_s18 }
0x14c1   : > { %v1392_v13 = vpop.permute.xlu0 %1391 }
0x14c2   : > { %v1394_v26 = vadd.f32 %v1392_v13, %v1384_v7 }
0x14c4   : > { %3223 = vtanh.f32 %v1394_v26  ;;  %v1452_v50 = vrot.slane %v1394_v26, 1 }
0x14ca   : > { %v3224_v15 = vpop.eup %3223 }
0x14cb   : > { %1397 = vrot.lane.b32.xlu1 %v3224_v15, %s3525_s13 }
0x153d   : > { %v1398_v18 = vpop.permute.xlu1 %1397 }
0x153e   : > { %v3883_v27 = vmul.f32 %v1398_v18, %v1378_v8 }
0x1540   : > { %v1402_v28 = vrot.slane %v3883_v27, 3 }
0x1542   : > { %1403 = vrot.lane.b32.xlu2 %v1402_v28, %s3526_s17 }
0x159c   : > { %v1404_v31 = vpop.permute.xlu2 %1403 }
0x159d   : > { %3027 = vmatmul.msk.f32.vlgmr.msrb.gmra.mxu0 %vm479_vm1, %v1404_v31  ;;  %v991_v31 = vrot.slane %v3868_v22, 1 }
0x161a   : > { %v1424_v32 = vpop.f32.mrf.mxu0 }
0x161b   : > { %v1428_v33 = vrot.slane %v1424_v32, 6  ;;  %v993_v32 = vadd.f32 %v991_v31, %v3721_v30  ;;  %v1616_v31 = vld [vmem:[#allocation2 + $0x8] sm:$0xff] }
0x161c   : > { %1663 = vmatpush.msra.mxu0 %v1616_v31 }
0x161d   : > { %v1430_v34 = vadd.f32 %v1428_v33, %v3782_v29  ;;  %v994_v22 = vsub.f32 0.0, %v993_v32 }
0x161f   : > { %3225 = vtanh.f32 %v1430_v34  ;;  %v1431_v36 = vsub.f32 0.0, %v1430_v34 }
0x1621   : > { %v1432_v20 = vmul.f32 1.442695, %v1431_v36 }
0x1623   : > { %3227 = vpow2.f32 %v1432_v20 }
0x1625   : > { %v3226_v35 = vpop.eup %3225 }
0x1626   : > { %1456 = vrot.lane.b32.xlu0 %v3226_v35, %s3524_s12 }
0x1629   : > { %v3228_v21 = vpop.eup %3227 }
0x162a   : > { %v1434_v37 = vadd.f32 1.0, %v3228_v21 }
0x162c   : > { %3229 = vrcp.f32 %v1434_v37  ;;  %v1446_v43 = vand.u32 2147483648, %v1434_v37  ;;  %vm1440_vm13 = vweird.f32 %v1434_v37  ;;  %v1444_v44 = vand.u32 2147483647, %v1434_v37 }
0x162e   : > { %v1447_v46 = vor.u32 1.1754944e-38, %v1446_v43  ;;  %vm1445_vm2 = vcmp.eq.f32.partialorder %v1444_v44, 8.507059e+37 }
0x1632   : > { %v3230_v38 = vpop.eup %3229 }
0x1633   : > { %v1436_v39 = vmul.f32 %v3230_v38, %v1434_v37  ;;  %vm1441_vm11 = vweird.f32 %v3230_v38  ;;  %v995_v37 = vmul.f32 1.442695, %v994_v22 }
0x1634   : > { %vm1442_vm15 = vmor %vm1440_vm13, %vm1441_vm11 }
0x1635   : > { %v1437_v40 = vsub.f32 1.0, %v1436_v39 }
0x1637   : > { %v1438_v41 = vmul.f32 %v3230_v38, %v1437_v40 }
0x1639   : > { %v1439_v42 = vadd.f32 %v3230_v38, %v1438_v41 }
0x163b   : > { %v1443_v45 = vsel %vm1442_vm15, %v3230_v38, %v1439_v42 }
0x163c   : > { %v1448_v48 = vsel %vm1445_vm2, %v1447_v46, %v1443_v45 }
0x163d   : > { %v1454_v51 = vmul.f32 %v1452_v50, %v1448_v48 }
0x1698   : > { %v1457_v47 = vpop.permute.xlu0 %1456 }
0x1699   : > { %v1459_v49 = vmul.f32 %v1457_v47, %v1448_v48 }
0x169b   : > { %1461 = vrot.lane.b32.xlu1 %v1459_v49, %s3523_s18 }
0x170d   : > { %v1462_v52 = vpop.permute.xlu1 %1461 }
0x170e   : > { %v1464_v53 = vadd.f32 %v1462_v52, %v1454_v51 }
0x1710   : > { %3231 = vtanh.f32 %v1464_v53  ;;  %v1522_v26 = vrot.slane %v1464_v53, 1 }
0x1716   : > { %v3232_v56 = vpop.eup %3231 }
0x1717   : > { %1467 = vrot.lane.b32.xlu2 %v3232_v56, %s3525_s13 }
0x1771   : > { %v1468_v57 = vpop.permute.xlu2 %1467 }
0x1772   : > { %v3892_v58 = vmul.f32 %v1468_v57, %v1448_v48 }
0x1774   : > { %v1472_v59 = vrot.slane %v3892_v58, 2 }
0x1776   : > { %1473 = vrot.lane.b32.xlu0 %v1472_v59, %s3526_s17 }
0x17e8   : > { %v1474_v60 = vpop.permute.xlu0 %1473 }
0x17e9   : > { %3028 = vmatmul.msk.f32.vlgmr.msra.gmra.mxu1 %vm479_vm1, %v1474_v60 }
0x1866   : > { %v1494_v55 = vpop.f32.mrf.mxu1 }
0x1867   : > { %v1498_v61 = vrot.slane %v1494_v55, 7 }
0x1869   : > { %v1500_v62 = vadd.f32 %v1498_v61, %v3782_v29 }
0x186b   : > { %3233 = vtanh.f32 %v1500_v62  ;;  %v1501_v0 = vsub.f32 0.0, %v1500_v62 }
0x186d   : > { %v1502_v1 = vmul.f32 1.442695, %v1501_v0 }
0x186f   : > { %3235 = vpow2.f32 %v1502_v1 }
0x1871   : > { %v3234_v63 = vpop.eup %3233 }
0x1872   : > { %1526 = vrot.lane.b32.xlu1 %v3234_v63, %s3524_s12 }
0x1875   : > { %v3236_v2 = vpop.eup %3235 }
0x1876   : > { %v1504_v3 = vadd.f32 1.0, %v3236_v2 }
0x1878   : > { %3237 = vrcp.f32 %v1504_v3  ;;  %v1516_v12 = vand.u32 2147483648, %v1504_v3  ;;  %vm1510_vm6 = vweird.f32 %v1504_v3  ;;  %v1514_v14 = vand.u32 2147483647, %v1504_v3 }
0x187a   : > { %v1517_v16 = vor.u32 1.1754944e-38, %v1516_v12  ;;  %vm1515_vm9 = vcmp.eq.f32.partialorder %v1514_v14, 8.507059e+37 }
0x187e   : > { %v3238_v4 = vpop.eup %3237 }
0x187f   : > { %v1506_v5 = vmul.f32 %v3238_v4, %v1504_v3  ;;  %vm1511_vm5 = vweird.f32 %v3238_v4 }
0x1880   : > { %vm1512_vm7 = vmor %vm1510_vm6, %vm1511_vm5 }
0x1881   : > { %v1507_v6 = vsub.f32 1.0, %v1506_v5 }
0x1883   : > { %v1508_v10 = vmul.f32 %v3238_v4, %v1507_v6 }
0x1885   : > { %v1509_v11 = vadd.f32 %v3238_v4, %v1508_v10  ;;  %v1015_v10 = vrot.slane %v3849_v9, 7 }
0x1887   : > { %v1513_v8 = vsel %vm1512_vm7, %v3238_v4, %v1509_v11 }
0x1888   : > { %v1518_v7 = vsel %vm1515_vm9, %v1517_v16, %v1513_v8  ;;  %vm1045_vm9 = vcmask 1046528  }
0x1889   : > { %v1524_v15 = vmul.f32 %v1522_v26, %v1518_v7 }
0x18e4   : > { %v1527_v17 = vpop.permute.xlu1 %1526 }
0x18e5   : > { %v1529_v13 = vmul.f32 %v1527_v17, %v1518_v7 }
0x18e7   : > { %1531 = vrot.lane.b32.xlu2 %v1529_v13, %s3523_s18 }
0x1941   : > { %v1532_v18 = vpop.permute.xlu2 %1531 }
0x1942   : > { %v3900_v28 = vadd.f32 %v1532_v18, %v1524_v15 }
0x1944   : > { %3239 = vtanh.f32 %v3900_v28  ;;  %v1589_v16 = vrot.slane %v3900_v28, 1  ;;  %v1618_v28 = vld [vmem:[#allocation2 + $0x18] sm:$0xff] }
0x1945   : > { %3241 = vtanh.f32 %v993_v32  ;;  %v1615_v32 = vld [vmem:[#allocation2] sm:$0xff]  ;;  %1638 = vmatpush.msrb.mxu3 %v1618_v28 }
0x1946   : > { %3243 = vpow2.f32 %v995_v37  ;;  %1664 = vmatpush.msra.mxu0 %v1615_v32 }
0x194a   : > { %v3240_v33 = vpop.eup %3239 }
0x194b   : > { %1537 = vrot.lane.b32.xlu0 %v3240_v33, %s3525_s13  ;;  %v3242_v34 = vpop.eup %3241  ;;  %v1617_v33 = vld [vmem:[#allocation2 + $0x10] sm:$0xff] }
0x194c   : > { %v3244_v30 = vpop.eup %3243  ;;  %1639 = vmatpush.msrb.mxu3 %v1617_v33 }
0x194d   : > { %v997_v38 = vadd.f32 1.0, %v3244_v30 }
0x194f   : > { %3245 = vrcp.f32 %v997_v38  ;;  %v1009_v47 = vand.u32 2147483648, %v997_v38  ;;  %vm1003_vm11 = vweird.f32 %v997_v38  ;;  %v1007_v48 = vand.u32 2147483647, %v997_v38 }
0x1951   : > { %v1010_v51 = vor.u32 1.1754944e-38, %v1009_v47  ;;  %vm1008_vm15 = vcmp.eq.f32.partialorder %v1007_v48, 8.507059e+37 }
0x1953   : > { %1019 = vrot.lane.b32.xlu0 %v3242_v34, %s3524_s12 }
0x1955   : > { %v3246_v39 = vpop.eup %3245 }
0x1956   : > { %v999_v40 = vmul.f32 %v3246_v39, %v997_v38  ;;  %vm1004_vm10 = vweird.f32 %v3246_v39 }
0x1957   : > { %vm1005_vm13 = vmor %vm1003_vm11, %vm1004_vm10 }
0x1958   : > { %v1000_v41 = vsub.f32 1.0, %v999_v40 }
0x195a   : > { %v1001_v44 = vmul.f32 %v3246_v39, %v1000_v41 }
0x195c   : > { %v1002_v45 = vadd.f32 %v3246_v39, %v1001_v44 }
0x195e   : > { %v1006_v49 = vsel %vm1005_vm13, %v3246_v39, %v1002_v45 }
0x195f   : > { %v1011_v52 = vsel %vm1008_vm15, %v1010_v51, %v1006_v49 }
0x1960   : > { %v1017_v11 = vmul.f32 %v1015_v10, %v1011_v52 }
0x19bd   : > { %v1538_v35 = vpop.permute.xlu0 %1537 }
0x19be   : > { %v3907_v36 = vmul.f32 %v1538_v35, %v1518_v7 }
0x19c0   : > { %v1542_v20 = vrot.slane %v3907_v36, 1 }
0x19c2   : > { %1543 = vrot.lane.b32.xlu1 %v1542_v20, %s3526_s17 }
0x19c5   : > { %v1020_v50 = vpop.permute.xlu0 %1019 }
0x19c6   : > { %v1022_v53 = vmul.f32 %v1020_v50, %v1011_v52 }
0x1a34   : > { %v1544_v21 = vpop.permute.xlu1 %1543 }
0x1a35   : > { %3029 = vmatmul.msk.f32.vlgmr.msra.gmra.mxu2 %vm479_vm1, %v1544_v21 }
0x1ab8   : > { %v1564_v42 = vpop.f32.mrf.mxu2 }
0x1ab9   : > { %v1567_v43 = vadd.f32 %v1564_v42, %v3782_v29 }
0x1abb   : > { %3247 = vtanh.f32 %v1567_v43  ;;  %v1568_v29 = vsub.f32 0.0, %v1567_v43 }
0x1abd   : > { %v1569_v56 = vmul.f32 1.442695, %v1568_v29 }
0x1abf   : > { %3249 = vpow2.f32 %v1569_v56 }
0x1ac1   : > { %v3248_v46 = vpop.eup %3247 }
0x1ac2   : > { %1593 = vrot.lane.b32.xlu2 %v3248_v46, %s3524_s12 }
0x1ac5   : > { %v3250_v57 = vpop.eup %3249 }
0x1ac6   : > { %v1571_v59 = vadd.f32 1.0, %v3250_v57 }
0x1ac8   : > { %3251 = vrcp.f32 %v1571_v59  ;;  %v1583_v0 = vand.u32 2147483648, %v1571_v59  ;;  %vm1577_vm5 = vweird.f32 %v1571_v59  ;;  %v1581_v1 = vand.u32 2147483647, %v1571_v59 }
0x1aca   : > { %1024 = vrot.lane.b32.xlu2 %v1022_v53, %s3523_s18  ;;  %v1584_v3 = vor.u32 1.1754944e-38, %v1583_v0  ;;  %vm1582_vm7 = vcmp.eq.f32.partialorder %v1581_v1, 8.507059e+37 }
0x1ace   : > { %v3252_v60 = vpop.eup %3251 }
0x1acf   : > { %v1573_v55 = vmul.f32 %v3252_v60, %v1571_v59  ;;  %vm1578_vm2 = vweird.f32 %v3252_v60 }
0x1ad0   : > { %vm1579_vm6 = vmor %vm1577_vm5, %vm1578_vm2 }
0x1ad1   : > { %v1574_v61 = vsub.f32 1.0, %v1573_v55 }
0x1ad3   : > { %v1575_v62 = vmul.f32 %v3252_v60, %v1574_v61 }
0x1ad5   : > { %v1576_v63 = vadd.f32 %v3252_v60, %v1575_v62 }
0x1ad7   : > { %v1580_v2 = vsel %vm1579_vm6, %v3252_v60, %v1576_v63 }
0x1ad8   : > { %v1585_v5 = vsel %vm1582_vm7, %v1584_v3, %v1580_v2 }
0x1ad9   : > { %v1591_v17 = vmul.f32 %v1589_v16, %v1585_v5 }
0x1b1c   : > { %v1594_v4 = vpop.permute.xlu2 %1593 }
0x1b1d   : > { %v1596_v6 = vmul.f32 %v1594_v4, %v1585_v5 }
0x1b1f   : > { %1598 = vrot.lane.b32.xlu1 %v1596_v6, %s3523_s18 }
0x1b24   : > { %v1025_v12 = vpop.permute.xlu2 %1024 }
0x1b25   : > { %v1027_v14 = vadd.f32 %v1025_v12, %v1017_v11 }
0x1b27   : > { %3253 = vtanh.f32 %v1027_v14 }
0x1b2d   : > { %v3254_v8 = vpop.eup %3253 }
0x1b2e   : > { %1030 = vrot.lane.b32.xlu1 %v3254_v8, %s3525_s13 }
0x1b91   : > { %v1599_v7 = vpop.permute.xlu1 %1598 }
0x1b92   : > { %v1601_v13 = vadd.f32 %v1599_v7, %v1591_v17 }
0x1b94   : > { %3255 = vtanh.f32 %v1601_v13 }
0x1b9a   : > { %v3256_v26 = vpop.eup %3255 }
0x1b9b   : > { %1604 = vrot.lane.b32.xlu0 %v3256_v26, %s3525_s13 }
0x1ba0   : > { %v1031_v15 = vpop.permute.xlu1 %1030 }
0x1ba1   : > { %v1033_v18 = vmul.f32 %v1031_v15, %v1011_v52 }
0x1ba3   : > { %v1046_v9 = vsel %vm1045_vm9, %v3857_v25, %v1033_v18 }
0x1ba4   : > { %1645 = vrot.lane.b32.xlu0 %v1046_v9, %s3526_s17 }
0x1c0d   : > { %v1605_v34 = vpop.permute.xlu0 %1604 }
0x1c0e   : > { %v1607_v35 = vmul.f32 %v1605_v34, %v1585_v5 }
0x1c10   : > { %v1608_v20 = vsel %vm1034_vm3, %v1607_v35, %v3907_v36 }
0x1c11   : > { %v1609_v21 = vsel %vm389_vm0, %v1608_v20, %v3892_v58  ;;  %v1676_v58 = vld [vmem:[#allocation5 + $0x20] sm:$0xff] }
0x1c12   : > { %v1610_v25 = vsel %vm1037_vm8, %v1609_v21, %v3883_v27  ;;  %v1677_v27 = vld [vmem:[#allocation5 + $0x28] sm:$0xff] }
0x1c13   : > { %v1611_v22 = vsel %vm1039_vm4, %v1610_v25, %v3874_v54  ;;  %1697 = vmatpush.msrb.mxu1 %v1677_v27  ;;  %v1678_v54 = vld [vmem:[%s3681_s10 + $0x2] sm:$0x1]  ;;  %1764 = vmatpush.msrb.mxu2 %v1677_v27 }
0x1c14   : > { %v1612_v37 = vsel %vm1041_vm14, %v1611_v22, %v3860_v19  ;;  %1834 = vmatpush.msra.mxu3 %v1677_v27  ;;  %1904 = vmatpush.msrb.mxu0 %v1677_v27  ;;  %v3127_v19 = vld [vmem:[%s4189_s7 + $0x2] ss:$0 sm:$0xff] }
0x1c15   : > { %v1613_v30 = vsel %vm1043_vm12, %v1612_v37, %v3834_v24  ;;  %1698 = vmatpush.msrb.mxu1 %v1676_v58  ;;  %1765 = vmatpush.msrb.mxu2 %v1676_v58  ;;  %v1679_v24 = vld [vmem:[%s3708_s20 + $0x2] sm:$0x1] }
0x1c16   : > { %v3935_v38 = vpop.permute.xlu0 %1645  ;;  %v1614_v36 = vsel %vm1045_vm9, %v1613_v30, %v3805_v23  ;;  %3033 = vmatmul.msk.f32.vlgmr.msrb.gmra.mxu1 %vm479_vm1, %v1678_v54  ;;  %1835 = vmatpush.msra.mxu3 %v1676_v58 }
0x1c17   : > { %1620 = vrot.lane.b32.xlu2 %v1614_v36, %s3526_s17  ;;  %3031 = vmatmul.msk.f32.vlgmr.msra.gmra.mxu0 %vm479_vm1, %v3935_v38 }
0x1c18   : > { %1905 = vmatpush.msrb.mxu0 %v1676_v58  ;;  %1974 = vmatpush.msra.mxu1 %v1677_v27 }
0x1c19   : > { %2044 = vmatpush.msra.mxu2 %v1677_v27 }
0x1c1a   : > { %2184 = vmatpush.msra.mxu0 %v1677_v27  ;;  %1975 = vmatpush.msra.mxu1 %v1676_v58 }
0x1c1b   : > { %2045 = vmatpush.msra.mxu2 %v1676_v58 }
0x1c1c   : > { %2185 = vmatpush.msra.mxu0 %v1676_v58 }
0x1c1f   : > { %1725 = vrot.lane.b32.xlu2 %v1679_v24, %s3523_s18 }
0x1c71   : > { %v3944_v23 = vpop.permute.xlu2 %1620 }
0x1c72   : > { %3030 = vmatmul.msk.f32.vlgmr.msrb.gmra.mxu3 %vm479_vm1, %v3944_v23 }
0x1c73   : > { %2114 = vmatpush.msrb.mxu3 %v1677_v27 }
0x1c75   : > { %2115 = vmatpush.msrb.mxu3 %v1676_v58 }
0x1c79   : > { %v1726_v63 = vpop.permute.xlu2 %1725 }
0x1c93   : > { %v1700_v42 = vpop.f32.mrf.mxu1 }
0x1c94   : > { %v1666_v39 = vpop.f32.mrf.mxu0 }
0x1cf5   : > { %v1641_v40 = vpop.f32.mrf.mxu3 }
0x1cf6   : > { %v1667_v41 = vadd.f32 %v1666_v39, %v1641_v40 }
0x1cf8   : > { %v3953_v43 = vadd.f32 %v3127_v19, %v1667_v41 }
0x1cfa   : > { %v1703_v44 = vadd.f32 %v1700_v42, %v3953_v43 }
0x1cfc   : > { %3257 = vtanh.f32 %v1703_v44  ;;  %v1704_v46 = vsub.f32 0.0, %v1703_v44 }
0x1cfe   : > { %v1705_v47 = vmul.f32 1.442695, %v1704_v46 }
0x1d00   : > { %3259 = vpow2.f32 %v1705_v47 }
0x1d02   : > { %v3258_v45 = vpop.eup %3257 }
0x1d03   : > { %1730 = vrot.lane.b32.xlu1 %v3258_v45, %s3524_s12 }
0x1d06   : > { %v3260_v48 = vpop.eup %3259 }
0x1d07   : > { %v1707_v49 = vadd.f32 1.0, %v3260_v48 }
0x1d09   : > { %3261 = vrcp.f32 %v1707_v49  ;;  %v1719_v56 = vand.u32 2147483648, %v1707_v49  ;;  %vm1713_vm11 = vweird.f32 %v1707_v49  ;;  %v1717_v57 = vand.u32 2147483647, %v1707_v49 }
0x1d0b   : > { %v1720_v60 = vor.u32 1.1754944e-38, %v1719_v56  ;;  %vm1718_vm15 = vcmp.eq.f32.partialorder %v1717_v57, 8.507059e+37 }
0x1d0f   : > { %v3262_v50 = vpop.eup %3261 }
0x1d10   : > { %v1709_v51 = vmul.f32 %v3262_v50, %v1707_v49  ;;  %vm1714_vm10 = vweird.f32 %v3262_v50 }
0x1d11   : > { %vm1715_vm13 = vmor %vm1713_vm11, %vm1714_vm10 }
0x1d12   : > { %v1710_v52 = vsub.f32 1.0, %v1709_v51 }
0x1d14   : > { %v1711_v53 = vmul.f32 %v3262_v50, %v1710_v52 }
0x1d16   : > { %v1712_v29 = vadd.f32 %v3262_v50, %v1711_v53 }
0x1d18   : > { %v1716_v59 = vsel %vm1715_vm13, %v3262_v50, %v1712_v29 }
0x1d19   : > { %v1721_v55 = vsel %vm1718_vm15, %v1720_v60, %v1716_v59 }
0x1d1a   : > { %v1728_v0 = vmul.f32 %v1726_v63, %v1721_v55 }
0x1d75   : > { %v1731_v61 = vpop.permute.xlu1 %1730 }
0x1d76   : > { %v1733_v62 = vmul.f32 %v1731_v61, %v1721_v55 }
0x1d78   : > { %1735 = vrot.lane.b32.xlu0 %v1733_v62, %s3523_s18 }
0x1dea   : > { %v1736_v1 = vpop.permute.xlu0 %1735 }
0x1deb   : > { %v1738_v2 = vadd.f32 %v1736_v1, %v1728_v0 }
0x1ded   : > { %3263 = vtanh.f32 %v1738_v2  ;;  %v1795_v21 = vrot.slane %v1738_v2, 7 }
0x1df3   : > { %v3264_v3 = vpop.eup %3263 }
0x1df4   : > { %1741 = vrot.lane.b32.xlu1 %v3264_v3, %s3525_s13 }
0x1e66   : > { %v1742_v4 = vpop.permute.xlu1 %1741 }
0x1e67   : > { %v3959_v5 = vmul.f32 %v1742_v4, %v1721_v55 }
0x1e69   : > { %1746 = vrot.lane.b32.xlu2 %v3959_v5, %s3526_s17 }
0x1ec3   : > { %v1747_v6 = vpop.permute.xlu2 %1746 }
0x1ec4   : > { %3034 = vmatmul.msk.f32.vlgmr.msrb.gmra.mxu2 %vm479_vm1, %v1747_v6 }
0x1f47   : > { %v1767_v10 = vpop.f32.mrf.mxu2 }
0x1f48   : > { %v1771_v11 = vrot.slane %v1767_v10, 7 }
0x1f4a   : > { %v1773_v12 = vadd.f32 %v1771_v11, %v3953_v43 }
0x1f4c   : > { %3265 = vtanh.f32 %v1773_v12  ;;  %v1774_v8 = vsub.f32 0.0, %v1773_v12 }
0x1f4e   : > { %v1775_v16 = vmul.f32 1.442695, %v1774_v8 }
0x1f50   : > { %3267 = vpow2.f32 %v1775_v16 }
0x1f52   : > { %v3266_v14 = vpop.eup %3265 }
0x1f53   : > { %1799 = vrot.lane.b32.xlu0 %v3266_v14, %s3524_s12 }
0x1f56   : > { %v3268_v17 = vpop.eup %3267 }
0x1f57   : > { %v1777_v7 = vadd.f32 1.0, %v3268_v17 }
0x1f59   : > { %3269 = vrcp.f32 %v1777_v7  ;;  %v1789_v31 = vand.u32 2147483648, %v1777_v7  ;;  %vm1783_vm5 = vweird.f32 %v1777_v7  ;;  %v1787_v32 = vand.u32 2147483647, %v1777_v7 }
0x1f5b   : > { %v1790_v33 = vor.u32 1.1754944e-38, %v1789_v31  ;;  %vm1788_vm7 = vcmp.eq.f32.partialorder %v1787_v32, 8.507059e+37 }
0x1f5f   : > { %v3270_v13 = vpop.eup %3269 }
0x1f60   : > { %v1779_v26 = vmul.f32 %v3270_v13, %v1777_v7  ;;  %vm1784_vm2 = vweird.f32 %v3270_v13 }
0x1f61   : > { %vm1785_vm6 = vmor %vm1783_vm5, %vm1784_vm2 }
0x1f62   : > { %v1780_v15 = vsub.f32 1.0, %v1779_v26 }
0x1f64   : > { %v1781_v18 = vmul.f32 %v3270_v13, %v1780_v15 }
0x1f66   : > { %v1782_v9 = vadd.f32 %v3270_v13, %v1781_v18 }
0x1f68   : > { %v1786_v28 = vsel %vm1785_vm6, %v3270_v13, %v1782_v9 }
0x1f69   : > { %v1791_v35 = vsel %vm1788_vm7, %v1790_v33, %v1786_v28 }
0x1f6a   : > { %v1797_v25 = vmul.f32 %v1795_v21, %v1791_v35 }
0x1fc5   : > { %v1800_v34 = vpop.permute.xlu0 %1799 }
0x1fc6   : > { %v1802_v20 = vmul.f32 %v1800_v34, %v1791_v35 }
0x1fc8   : > { %1804 = vrot.lane.b32.xlu1 %v1802_v20, %s3523_s18 }
0x203a   : > { %v1805_v22 = vpop.permute.xlu1 %1804 }
0x203b   : > { %v1807_v37 = vadd.f32 %v1805_v22, %v1797_v25 }
0x203d   : > { %3271 = vtanh.f32 %v1807_v37  ;;  %v1865_v60 = vrot.slane %v1807_v37, 7 }
0x2043   : > { %v3272_v30 = vpop.eup %3271 }
0x2044   : > { %1810 = vrot.lane.b32.xlu2 %v3272_v30, %s3525_s13 }
0x209e   : > { %v1811_v36 = vpop.permute.xlu2 %1810 }
0x209f   : > { %v1813_v27 = vmul.f32 %v1811_v36, %v1791_v35 }
0x20a1   : > { %v1815_v58 = vrot.slane %v1813_v27, 1  ;;  %v2234_v2 = vsel %vm1034_vm3, %v3959_v5, %v1813_v27 }
0x20a3   : > { %1816 = vrot.lane.b32.xlu0 %v1815_v58, %s3526_s17 }
0x2115   : > { %v1817_v54 = vpop.permute.xlu0 %1816 }
0x2116   : > { %3035 = vmatmul.msk.f32.vlgmr.msra.gmra.mxu3 %vm479_vm1, %v1817_v54  ;;  %v2245_v54 = vld [vmem:[#allocation2 + $0x38] sm:$0xff] }
0x2117   : > { %2260 = vmatpush.msrb.mxu1 %v2245_v54 }
0x2199   : > { %v1837_v24 = vpop.f32.mrf.mxu3 }
0x219a   : > { %v1841_v19 = vrot.slane %v1837_v24, 6  ;;  %v2244_v24 = vld [vmem:[#allocation2 + $0x30] sm:$0xff] }
0x219b   : > { %2261 = vmatpush.msrb.mxu1 %v2244_v24  ;;  %v4008_v24 = vld [vmem:[#allocation5 + $0x38] sm:$0xff] }
0x219c   : > { %v1843_v39 = vadd.f32 %v1841_v19, %v3953_v43  ;;  %2314 = vmatpush.msra.mxu3 %v4008_v24 }
0x219e   : > { %3273 = vtanh.f32 %v1843_v39  ;;  %v1844_v41 = vsub.f32 0.0, %v1843_v39 }
0x21a0   : > { %v1845_v42 = vmul.f32 1.442695, %v1844_v41 }
0x21a2   : > { %3275 = vpow2.f32 %v1845_v42 }
0x21a4   : > { %v3274_v40 = vpop.eup %3273 }
0x21a5   : > { %1869 = vrot.lane.b32.xlu1 %v3274_v40, %s3524_s12 }
0x21a8   : > { %v3276_v44 = vpop.eup %3275 }
0x21a9   : > { %v1847_v45 = vadd.f32 1.0, %v3276_v44 }
0x21ab   : > { %3277 = vrcp.f32 %v1847_v45  ;;  %v1859_v51 = vand.u32 2147483648, %v1847_v45  ;;  %vm1853_vm11 = vweird.f32 %v1847_v45  ;;  %v1857_v52 = vand.u32 2147483647, %v1847_v45 }
0x21ad   : > { %v1860_v29 = vor.u32 1.1754944e-38, %v1859_v51  ;;  %vm1858_vm15 = vcmp.eq.f32.partialorder %v1857_v52, 8.507059e+37 }
0x21b1   : > { %v3278_v46 = vpop.eup %3277 }
0x21b2   : > { %v1849_v47 = vmul.f32 %v3278_v46, %v1847_v45  ;;  %vm1854_vm10 = vweird.f32 %v3278_v46 }
0x21b3   : > { %vm1855_vm13 = vmor %vm1853_vm11, %vm1854_vm10 }
0x21b4   : > { %v1850_v48 = vsub.f32 1.0, %v1849_v47 }
0x21b6   : > { %v1851_v49 = vmul.f32 %v3278_v46, %v1850_v48 }
0x21b8   : > { %v1852_v50 = vadd.f32 %v3278_v46, %v1851_v49 }
0x21ba   : > { %v1856_v53 = vsel %vm1855_vm13, %v3278_v46, %v1852_v50 }
0x21bb   : > { %v1861_v57 = vsel %vm1858_vm15, %v1860_v29, %v1856_v53 }
0x21bc   : > { %v1867_v55 = vmul.f32 %v1865_v60, %v1861_v57 }
0x2217   : > { %v1870_v56 = vpop.permute.xlu1 %1869 }
0x2218   : > { %v1872_v59 = vmul.f32 %v1870_v56, %v1861_v57 }
0x221a   : > { %1874 = vrot.lane.b32.xlu2 %v1872_v59, %s3523_s18 }
0x2274   : > { %v1875_v61 = vpop.permute.xlu2 %1874 }
0x2275   : > { %v1877_v62 = vadd.f32 %v1875_v61, %v1867_v55 }
0x2277   : > { %3279 = vtanh.f32 %v1877_v62  ;;  %v1935_v20 = vrot.slane %v1877_v62, 7 }
0x227d   : > { %v3280_v63 = vpop.eup %3279 }
0x227e   : > { %1880 = vrot.lane.b32.xlu0 %v3280_v63, %s3525_s13 }
0x22f0   : > { %v1881_v0 = vpop.permute.xlu0 %1880 }
0x22f1   : > { %v1883_v1 = vmul.f32 %v1881_v0, %v1861_v57 }
0x22f3   : > { %v1885_v3 = vrot.slane %v1883_v1, 2  ;;  %v2235_v4 = vsel %vm389_vm0, %v2234_v2, %v1883_v1 }
0x22f5   : > { %1886 = vrot.lane.b32.xlu1 %v1885_v3, %s3526_s17 }
0x2367   : > { %v1887_v6 = vpop.permute.xlu1 %1886 }
0x2368   : > { %3036 = vmatmul.msk.f32.vlgmr.msrb.gmra.mxu0 %vm479_vm1, %v1887_v6  ;;  %v2243_v6 = vld [vmem:[#allocation2 + $0x28] sm:$0xff] }
0x2369   : > { %2280 = vmatpush.msrb.mxu2 %v2243_v6  ;;  %2386 = vmatpush.msrb.mxu0 %v4008_v24 }
0x23e5   : > { %v1907_v10 = vpop.f32.mrf.mxu0 }
0x23e6   : > { %v1911_v11 = vrot.slane %v1907_v10, 5  ;;  %v2242_v10 = vld [vmem:[#allocation2 + $0x20] sm:$0xff] }
0x23e7   : > { %2281 = vmatpush.msrb.mxu2 %v2242_v10 }
0x23e8   : > { %v1913_v12 = vadd.f32 %v1911_v11, %v3953_v43 }
0x23ea   : > { %3281 = vtanh.f32 %v1913_v12  ;;  %v1914_v8 = vsub.f32 0.0, %v1913_v12 }
0x23ec   : > { %v1915_v16 = vmul.f32 1.442695, %v1914_v8 }
0x23ee   : > { %3283 = vpow2.f32 %v1915_v16 }
0x23f0   : > { %v3282_v14 = vpop.eup %3281 }
0x23f1   : > { %1939 = vrot.lane.b32.xlu2 %v3282_v14, %s3524_s12 }
0x23f4   : > { %v3284_v5 = vpop.eup %3283 }
0x23f5   : > { %v1917_v17 = vadd.f32 1.0, %v3284_v5 }
0x23f7   : > { %3285 = vrcp.f32 %v1917_v17  ;;  %v1929_v9 = vand.u32 2147483648, %v1917_v17  ;;  %vm1923_vm5 = vweird.f32 %v1917_v17  ;;  %v1927_v31 = vand.u32 2147483647, %v1917_v17 }
0x23f9   : > { %v1930_v28 = vor.u32 1.1754944e-38, %v1929_v9  ;;  %vm1928_vm7 = vcmp.eq.f32.partialorder %v1927_v31, 8.507059e+37 }
0x23fd   : > { %v3286_v7 = vpop.eup %3285 }
0x23fe   : > { %v1919_v13 = vmul.f32 %v3286_v7, %v1917_v17  ;;  %vm1924_vm2 = vweird.f32 %v3286_v7 }
0x23ff   : > { %vm1925_vm6 = vmor %vm1923_vm5, %vm1924_vm2 }
0x2400   : > { %v1920_v26 = vsub.f32 1.0, %v1919_v13 }
0x2402   : > { %v1921_v15 = vmul.f32 %v3286_v7, %v1920_v26 }
0x2404   : > { %v1922_v18 = vadd.f32 %v3286_v7, %v1921_v15 }
0x2406   : > { %v1926_v32 = vsel %vm1925_vm6, %v3286_v7, %v1922_v18 }
0x2407   : > { %v1931_v34 = vsel %vm1928_vm7, %v1930_v28, %v1926_v32 }
0x2408   : > { %v1937_v21 = vmul.f32 %v1935_v20, %v1931_v34 }
0x244b   : > { %v1940_v33 = vpop.permute.xlu2 %1939 }
0x244c   : > { %v1942_v35 = vmul.f32 %v1940_v33, %v1931_v34 }
0x244e   : > { %1944 = vrot.lane.b32.xlu0 %v1942_v35, %s3523_s18 }
0x24c0   : > { %v1945_v25 = vpop.permute.xlu0 %1944 }
0x24c1   : > { %v1947_v22 = vadd.f32 %v1945_v25, %v1937_v21 }
0x24c3   : > { %3287 = vtanh.f32 %v1947_v22  ;;  %v2005_v55 = vrot.slane %v1947_v22, 7 }
0x24c9   : > { %v3288_v37 = vpop.eup %3287 }
0x24ca   : > { %1950 = vrot.lane.b32.xlu1 %v3288_v37, %s3525_s13 }
0x253c   : > { %v1951_v30 = vpop.permute.xlu1 %1950 }
0x253d   : > { %v1953_v36 = vmul.f32 %v1951_v30, %v1931_v34 }
0x253f   : > { %v1955_v27 = vrot.slane %v1953_v36, 3  ;;  %v2236_v58 = vsel %vm1037_vm8, %v2235_v4, %v1953_v36 }
0x2541   : > { %1956 = vrot.lane.b32.xlu2 %v1955_v27, %s3526_s17 }
0x259b   : > { %v1957_v19 = vpop.permute.xlu2 %1956 }
0x259c   : > { %3037 = vmatmul.msk.f32.vlgmr.msra.gmra.mxu1 %vm479_vm1, %v1957_v19  ;;  %v4010_v19 = vld [vmem:[#allocation5 + $0x30] sm:$0xff] }
0x259d   : > { %2456 = vmatpush.msra.mxu1 %v4008_v24  ;;  %2315 = vmatpush.msra.mxu3 %v4010_v19 }
0x259e   : > { %2387 = vmatpush.msrb.mxu0 %v4010_v19 }
0x259f   : > { %2457 = vmatpush.msra.mxu1 %v4010_v19 }
0x25a4   : > { %3041 = vmatmul.msk.f32.vlgmr.msrb.gmra.mxu1 %vm479_vm1, %v3944_v23 }
0x25a5   : > { %2736 = vmatpush.msrb.mxu1 %v4008_v24 }
0x25a7   : > { %2737 = vmatpush.msrb.mxu1 %v4010_v19 }
0x2619   : > { %v1977_v39 = vpop.f32.mrf.mxu1 }
0x261a   : > { %v1981_v40 = vrot.slane %v1977_v39, 4 }
0x261c   : > { %v1983_v41 = vadd.f32 %v1981_v40, %v3953_v43  ;;  %v2295_v40 = vld [vmem:[%s3681_s10 + $0x3] sm:$0x1]  ;;  %s354_s10 = sand.u32 1, %s3507_s28  }
0x261d   : > { %s2872_s24 = scalar_lea.sflag [#allocation4], %s354_s10 }
0x261e   : > { %3289 = vtanh.f32 %v1983_v41  ;;  %v1984_v44 = vsub.f32 0.0, %v1983_v41 }
0x2620   : > { %v1985_v45 = vmul.f32 1.442695, %v1984_v44 }
0x2622   : > { %3291 = vpow2.f32 %v1985_v45 }
0x2624   : > { %v3290_v42 = vpop.eup %3289 }
0x2625   : > { %2009 = vrot.lane.b32.xlu0 %v3290_v42, %s3524_s12 }
0x2628   : > { %v3292_v46 = vpop.eup %3291 }
0x2629   : > { %v1987_v47 = vadd.f32 1.0, %v3292_v46  ;;  %v2263_v46 = vpop.f32.mrf.mxu1 }
0x262b   : > { %3293 = vrcp.f32 %v1987_v47  ;;  %v1999_v23 = vand.u32 2147483648, %v1987_v47  ;;  %vm1993_vm11 = vweird.f32 %v1987_v47  ;;  %v1997_v53 = vand.u32 2147483647, %v1987_v47 }
0x262d   : > { %v2000_v56 = vor.u32 1.1754944e-38, %v1999_v23  ;;  %vm1998_vm15 = vcmp.eq.f32.partialorder %v1997_v53, 8.507059e+37  ;;  %v2296_v53 = vld [vmem:[%s3708_s20 + $0x3] sm:$0x1]  ;;  %s3000_s20 = sshll.u32 %s354_s10, 3 }
0x2631   : > { %v3294_v48 = vpop.eup %3293 }
0x2632   : > { %v1989_v49 = vmul.f32 %v3294_v48, %v1987_v47  ;;  %vm1994_vm10 = vweird.f32 %v3294_v48 }
0x2633   : > { %vm1995_vm13 = vmor %vm1993_vm11, %vm1994_vm10 }
0x2634   : > { %v1990_v50 = vsub.f32 1.0, %v1989_v49 }
0x2636   : > { %v1991_v51 = vmul.f32 %v3294_v48, %v1990_v50 }
0x2638   : > { %v1992_v52 = vadd.f32 %v3294_v48, %v1991_v51 }
0x263a   : > { %v1996_v29 = vsel %vm1995_vm13, %v3294_v48, %v1992_v52  ;;  %v3128_v48 = vld [vmem:[%s4189_s7 + $0x3] ss:$0 sm:$0xff] }
0x263b   : > { %v2001_v59 = vsel %vm1998_vm15, %v2000_v56, %v1996_v29  ;;  %v2345_v29 = vrot.slane %v2296_v53, 1 }
0x263c   : > { %v2007_v61 = vmul.f32 %v2005_v55, %v2001_v59 }
0x2697   : > { %v2010_v57 = vpop.permute.xlu0 %2009 }
0x2698   : > { %v2012_v60 = vmul.f32 %v2010_v57, %v2001_v59 }
0x269a   : > { %2014 = vrot.lane.b32.xlu1 %v2012_v60, %s3523_s18 }
0x270c   : > { %v2015_v62 = vpop.permute.xlu1 %2014 }
0x270d   : > { %v2017_v63 = vadd.f32 %v2015_v62, %v2007_v61 }
0x270f   : > { %3295 = vtanh.f32 %v2017_v63  ;;  %v2075_v21 = vrot.slane %v2017_v63, 7 }
0x2715   : > { %v3296_v0 = vpop.eup %3295 }
0x2716   : > { %2020 = vrot.lane.b32.xlu2 %v3296_v0, %s3525_s13 }
0x2770   : > { %v2021_v1 = vpop.permute.xlu2 %2020 }
0x2771   : > { %v2023_v2 = vmul.f32 %v2021_v1, %v2001_v59 }
0x2773   : > { %v2025_v3 = vrot.slane %v2023_v2, 4  ;;  %v2237_v4 = vsel %vm1039_vm4, %v2236_v58, %v2023_v2 }
0x2775   : > { %2026 = vrot.lane.b32.xlu0 %v2025_v3, %s3526_s17 }
0x27e7   : > { %v2027_v11 = vpop.permute.xlu0 %2026 }
0x27e8   : > { %3038 = vmatmul.msk.f32.vlgmr.msra.gmra.mxu2 %vm479_vm1, %v2027_v11 }
0x27e9   : > { %2526 = vmatpush.msra.mxu2 %v4008_v24 }
0x27eb   : > { %2527 = vmatpush.msra.mxu2 %v4010_v19 }
0x27f0   : > { %3042 = vmatmul.msk.f32.vlgmr.msrb.gmra.mxu2 %vm479_vm1, %v3935_v38 }
0x27f1   : > { %2806 = vmatpush.msrb.mxu2 %v4008_v24 }
0x27f3   : > { %2807 = vmatpush.msrb.mxu2 %v4010_v19 }
0x286b   : > { %v2047_v12 = vpop.f32.mrf.mxu2 }
0x286c   : > { %v2051_v14 = vrot.slane %v2047_v12, 3 }
0x286e   : > { %v2053_v8 = vadd.f32 %v2051_v14, %v3953_v43 }
0x2870   : > { %3297 = vtanh.f32 %v2053_v8  ;;  %v2054_v5 = vsub.f32 0.0, %v2053_v8 }
0x2872   : > { %v2055_v17 = vmul.f32 1.442695, %v2054_v5 }
0x2873   : > { %v2283_v44 = vpop.f32.mrf.mxu2 }
0x2874   : > { %3299 = vpow2.f32 %v2055_v17  ;;  %v2284_v47 = vadd.f32 %v2283_v44, %v2263_v46 }
0x2876   : > { %v3298_v16 = vpop.eup %3297  ;;  %v4033_v50 = vadd.f32 %v3128_v48, %v2284_v47 }
0x2877   : > { %2079 = vrot.lane.b32.xlu1 %v3298_v16, %s3524_s12 }
0x287a   : > { %v3300_v7 = vpop.eup %3299 }
0x287b   : > { %v2057_v13 = vadd.f32 1.0, %v3300_v7 }
0x287d   : > { %3301 = vrcp.f32 %v2057_v13  ;;  %v2069_v38 = vand.u32 2147483648, %v2057_v13  ;;  %vm2063_vm5 = vweird.f32 %v2057_v13  ;;  %v2067_v32 = vand.u32 2147483647, %v2057_v13 }
0x287f   : > { %v2070_v33 = vor.u32 1.1754944e-38, %v2069_v38  ;;  %vm2068_vm7 = vcmp.eq.f32.partialorder %v2067_v32, 8.507059e+37 }
0x2883   : > { %v3302_v26 = vpop.eup %3301 }
0x2884   : > { %v2059_v15 = vmul.f32 %v3302_v26, %v2057_v13  ;;  %vm2064_vm2 = vweird.f32 %v3302_v26 }
0x2885   : > { %vm2065_vm6 = vmor %vm2063_vm5, %vm2064_vm2 }
0x2886   : > { %v2060_v18 = vsub.f32 1.0, %v2059_v15 }
0x2888   : > { %v2061_v9 = vmul.f32 %v3302_v26, %v2060_v18 }
0x288a   : > { %v2062_v31 = vadd.f32 %v3302_v26, %v2061_v9 }
0x288c   : > { %v2066_v28 = vsel %vm2065_vm6, %v3302_v26, %v2062_v31 }
0x288d   : > { %v2071_v35 = vsel %vm2068_vm7, %v2070_v33, %v2066_v28 }
0x288e   : > { %v2077_v25 = vmul.f32 %v2075_v21, %v2071_v35 }
0x28e9   : > { %v2080_v34 = vpop.permute.xlu1 %2079 }
0x28ea   : > { %v2082_v20 = vmul.f32 %v2080_v34, %v2071_v35 }
0x28ec   : > { %2084 = vrot.lane.b32.xlu2 %v2082_v20, %s3523_s18 }
0x2946   : > { %v2085_v22 = vpop.permute.xlu2 %2084 }
0x2947   : > { %v4000_v37 = vadd.f32 %v2085_v22, %v2077_v25 }
0x2949   : > { %3303 = vtanh.f32 %v4000_v37  ;;  %v2145_v34 = vrot.slane %v4000_v37, 7 }
0x294f   : > { %v3304_v30 = vpop.eup %3303 }
0x2950   : > { %2090 = vrot.lane.b32.xlu0 %v3304_v30, %s3525_s13 }
0x29c2   : > { %v2091_v36 = vpop.permute.xlu0 %2090 }
0x29c3   : > { %v2093_v27 = vmul.f32 %v2091_v36, %v2071_v35 }
0x29c5   : > { %v2095_v58 = vrot.slane %v2093_v27, 5  ;;  %v4005_v54 = vsel %vm1041_vm14, %v2237_v4, %v2093_v27 }
0x29c7   : > { %2096 = vrot.lane.b32.xlu1 %v2095_v58, %s3526_s17 }
0x2a39   : > { %v2097_v39 = vpop.permute.xlu1 %2096 }
0x2a3a   : > { %3039 = vmatmul.msk.f32.vlgmr.msrb.gmra.mxu3 %vm479_vm1, %v2097_v39 }
0x2a3b   : > { %2596 = vmatpush.msrb.mxu3 %v4008_v24 }
0x2a3d   : > { %2597 = vmatpush.msrb.mxu3 %v4010_v19 }
0x2a42   : > { %3044 = vmatmul.msk.f32.vlgmr.msra.gmra.mxu3 %vm479_vm1, %v2295_v40 }
0x2abd   : > { %v2117_v41 = vpop.f32.mrf.mxu3 }
0x2abe   : > { %v2121_v42 = vrot.slane %v2117_v41, 2 }
0x2ac0   : > { %v2123_v45 = vadd.f32 %v2121_v42, %v3953_v43 }
0x2ac2   : > { %3305 = vtanh.f32 %v2123_v45  ;;  %v2124_v57 = vsub.f32 0.0, %v2123_v45 }
0x2ac4   : > { %v2125_v59 = vmul.f32 1.442695, %v2124_v57 }
0x2ac5   : > { %v2317_v49 = vpop.f32.mrf.mxu3 }
0x2ac6   : > { %v2321_v51 = vrot.slane %v2317_v49, 1 }
0x2ac8   : > { %v3306_v52 = vpop.eup %3305  ;;  %v2323_v23 = vadd.f32 %v2321_v51, %v4033_v50 }
0x2ac9   : > { %2149 = vrot.lane.b32.xlu2 %v3306_v52, %s3524_s12 }
0x2aca   : > { %3307 = vtanh.f32 %v2323_v23  ;;  %v2324_v63 = vsub.f32 0.0, %v2323_v23 }
0x2acb   : > { %3309 = vpow2.f32 %v2125_v59 }
0x2acc   : > { %v2325_v1 = vmul.f32 1.442695, %v2324_v63 }
0x2ad0   : > { %v3308_v56 = vpop.eup %3307 }
0x2ad1   : > { %2351 = vrot.lane.b32.xlu0 %v3308_v56, %s3524_s12  ;;  %2346 = vrot.lane.b32.xlu2 %v2345_v29, %s3523_s18  ;;  %v3310_v60 = vpop.eup %3309 }
0x2ad2   : > { %v2127_v55 = vadd.f32 1.0, %v3310_v60 }
0x2ad4   : > { %3311 = vrcp.f32 %v2127_v55  ;;  %v2139_v4 = vand.u32 2147483648, %v2127_v55  ;;  %vm2133_vm11 = vweird.f32 %v2127_v55  ;;  %v2137_v6 = vand.u32 2147483647, %v2127_v55 }
0x2ad5   : > { %3313 = vpow2.f32 %v2325_v1 }
0x2ad6   : > { %v2140_v12 = vor.u32 1.1754944e-38, %v2139_v4  ;;  %vm2138_vm15 = vcmp.eq.f32.partialorder %v2137_v6, 8.507059e+37 }
0x2ada   : > { %v3312_v61 = vpop.eup %3311 }
0x2adb   : > { %v2129_v62 = vmul.f32 %v3312_v61, %v2127_v55  ;;  %vm2134_vm10 = vweird.f32 %v3312_v61  ;;  %v3314_v10 = vpop.eup %3313 }
0x2adc   : > { %vm2135_vm13 = vmor %vm2133_vm11, %vm2134_vm10  ;;  %v2327_v14 = vadd.f32 1.0, %v3314_v10 }
0x2add   : > { %v2130_v0 = vsub.f32 1.0, %v2129_v62 }
0x2ade   : > { %3315 = vrcp.f32 %v2327_v14  ;;  %v2339_v18 = vand.u32 2147483648, %v2327_v14  ;;  %vm2333_vm5 = vweird.f32 %v2327_v14  ;;  %v2337_v9 = vand.u32 2147483647, %v2327_v14 }
0x2adf   : > { %v2131_v2 = vmul.f32 %v3312_v61, %v2130_v0 }
0x2ae0   : > { %v2340_v38 = vor.u32 1.1754944e-38, %v2339_v18  ;;  %vm2338_vm7 = vcmp.eq.f32.partialorder %v2337_v9, 8.507059e+37 }
0x2ae1   : > { %v2132_v3 = vadd.f32 %v3312_v61, %v2131_v2 }
0x2ae3   : > { %v2136_v11 = vsel %vm2135_vm13, %v3312_v61, %v2132_v3 }
0x2ae4   : > { %v2141_v16 = vsel %vm2138_vm15, %v2140_v12, %v2136_v11  ;;  %v3316_v17 = vpop.eup %3315 }
0x2ae5   : > { %v2329_v7 = vmul.f32 %v3316_v17, %v2327_v14  ;;  %vm2334_vm2 = vweird.f32 %v3316_v17  ;;  %v2147_v35 = vmul.f32 %v2145_v34, %v2141_v16 }
0x2ae6   : > { %vm2335_vm6 = vmor %vm2333_vm5, %vm2334_vm2 }
0x2ae7   : > { %v2330_v13 = vsub.f32 1.0, %v2329_v7 }
0x2ae9   : > { %v2331_v26 = vmul.f32 %v3316_v17, %v2330_v13 }
0x2aeb   : > { %v2332_v15 = vadd.f32 %v3316_v17, %v2331_v26 }
0x2aed   : > { %v2336_v31 = vsel %vm2335_vm6, %v3316_v17, %v2332_v15 }
0x2aee   : > { %v2341_v32 = vsel %vm2338_vm7, %v2340_v38, %v2336_v31 }
0x2b23   : > { %v2150_v8 = vpop.permute.xlu2 %2149 }
0x2b24   : > { %v2152_v5 = vmul.f32 %v2150_v8, %v2141_v16 }
0x2b26   : > { %2154 = vrot.lane.b32.xlu1 %v2152_v5, %s3523_s18 }
0x2b2b   : > { %v2347_v22 = vpop.permute.xlu2 %2346 }
0x2b2c   : > { %v2349_v30 = vmul.f32 %v2347_v22, %v2341_v32 }
0x2b43   : > { %v2352_v28 = vpop.permute.xlu0 %2351 }
0x2b44   : > { %v2354_v33 = vmul.f32 %v2352_v28, %v2341_v32 }
0x2b46   : > { %2356 = vrot.lane.b32.xlu0 %v2354_v33, %s3523_s18 }
0x2b98   : > { %v2155_v20 = vpop.permute.xlu1 %2154 }
0x2b99   : > { %v4043_v21 = vadd.f32 %v2155_v20, %v2147_v35 }
0x2b9b   : > { %3317 = vtanh.f32 %v4043_v21 }
0x2ba1   : > { %v3318_v25 = vpop.eup %3317 }
0x2ba2   : > { %2160 = vrot.lane.b32.xlu1 %v3318_v25, %s3525_s13 }
0x2bb8   : > { %v2357_v36 = vpop.permute.xlu0 %2356 }
0x2bb9   : > { %v2359_v27 = vadd.f32 %v2357_v36, %v2349_v30 }
0x2bbb   : > { %3319 = vtanh.f32 %v2359_v27  ;;  %v2417_v3 = vrot.slane %v2359_v27, 1 }
0x2bc1   : > { %v3320_v58 = vpop.eup %3319 }
0x2bc2   : > { %2362 = vrot.lane.b32.xlu2 %v3320_v58, %s3525_s13 }
0x2c14   : > { %v2161_v39 = vpop.permute.xlu1 %2160 }
0x2c15   : > { %v2163_v40 = vmul.f32 %v2161_v39, %v2141_v16 }
0x2c17   : > { %v2165_v37 = vrot.slane %v2163_v40, 6  ;;  %v4050_v41 = vsel %vm1043_vm12, %v4005_v54, %v2163_v40 }
0x2c19   : > { %2166 = vrot.lane.b32.xlu0 %v2165_v37, %s3526_s17 }
0x2c1c   : > { %v2363_v42 = vpop.permute.xlu2 %2362 }
0x2c1d   : > { %v4053_v44 = vmul.f32 %v2363_v42, %v2341_v32 }
0x2c1f   : > { %v2367_v45 = vrot.slane %v4053_v44, 7 }
0x2c21   : > { %2368 = vrot.lane.b32.xlu1 %v2367_v45, %s3526_s17 }
0x2c8b   : > { %v2167_v46 = vpop.permute.xlu0 %2166 }
0x2c8c   : > { %3040 = vmatmul.msk.f32.vlgmr.msra.gmra.mxu0 %vm479_vm1, %v2167_v46 }
0x2c8d   : > { %2666 = vmatpush.msra.mxu0 %v4008_v24 }
0x2c8f   : > { %2667 = vmatpush.msra.mxu0 %v4010_v19 }
0x2c93   : > { %v2369_v47 = vpop.permute.xlu1 %2368 }
0x2c94   : > { %3045 = vmatmul.msk.f32.vlgmr.msrb.gmra.mxu0 %vm479_vm1, %v2369_v47 }
0x2d09   : > { %v4061_v54 = vpop.f32.mrf.mxu0 }
0x2d11   : > { %v2389_v48 = vpop.f32.mrf.mxu0 }
0x2d12   : > { %v2393_v49 = vrot.slane %v2389_v48, 2 }
0x2d14   : > { %v2395_v51 = vadd.f32 %v2393_v49, %v4033_v50 }
0x2d16   : > { %3321 = vtanh.f32 %v2395_v51  ;;  %v2396_v23 = vsub.f32 0.0, %v2395_v51 }
0x2d18   : > { %v2397_v53 = vmul.f32 1.442695, %v2396_v23 }
0x2d1a   : > { %3323 = vpow2.f32 %v2397_v53 }
0x2d1c   : > { %v3322_v52 = vpop.eup %3321 }
0x2d1d   : > { %2421 = vrot.lane.b32.xlu2 %v3322_v52, %s3524_s12 }
0x2d20   : > { %v3324_v29 = vpop.eup %3323 }
0x2d21   : > { %v2399_v24 = vadd.f32 1.0, %v3324_v29 }
0x2d23   : > { %3325 = vrcp.f32 %v2399_v24  ;;  %v2411_v55 = vand.u32 2147483648, %v2399_v24  ;;  %vm2405_vm11 = vweird.f32 %v2399_v24  ;;  %v2409_v61 = vand.u32 2147483647, %v2399_v24 }
0x2d25   : > { %v2412_v63 = vor.u32 1.1754944e-38, %v2411_v55  ;;  %vm2410_vm15 = vcmp.eq.f32.partialorder %v2409_v61, 8.507059e+37 }
0x2d29   : > { %v3326_v19 = vpop.eup %3325 }
0x2d2a   : > { %v2401_v56 = vmul.f32 %v3326_v19, %v2399_v24  ;;  %vm2406_vm10 = vweird.f32 %v3326_v19 }
0x2d2b   : > { %vm2407_vm13 = vmor %vm2405_vm11, %vm2406_vm10 }
0x2d2c   : > { %v2402_v57 = vsub.f32 1.0, %v2401_v56 }
0x2d2e   : > { %v2403_v59 = vmul.f32 %v3326_v19, %v2402_v57 }
0x2d30   : > { %v2404_v60 = vadd.f32 %v3326_v19, %v2403_v59 }
0x2d32   : > { %v2408_v62 = vsel %vm2407_vm13, %v3326_v19, %v2404_v60 }
0x2d33   : > { %v2413_v1 = vsel %vm2410_vm15, %v2412_v63, %v2408_v62 }
0x2d34   : > { %v2419_v4 = vmul.f32 %v2417_v3, %v2413_v1 }
0x2d77   : > { %v2422_v0 = vpop.permute.xlu2 %2421 }
0x2d78   : > { %v2424_v2 = vmul.f32 %v2422_v0, %v2413_v1 }
0x2d7a   : > { %2426 = vrot.lane.b32.xlu0 %v2424_v2, %s3523_s18 }
0x2dec   : > { %v2427_v6 = vpop.permute.xlu0 %2426 }
0x2ded   : > { %v2429_v10 = vadd.f32 %v2427_v6, %v2419_v4 }
0x2def   : > { %3327 = vtanh.f32 %v2429_v10  ;;  %v2487_v27 = vrot.slane %v2429_v10, 1 }
0x2df5   : > { %v3328_v11 = vpop.eup %3327 }
0x2df6   : > { %2432 = vrot.lane.b32.xlu1 %v3328_v11, %s3525_s13 }
0x2e68   : > { %v2433_v12 = vpop.permute.xlu1 %2432 }
0x2e69   : > { %v4067_v14 = vmul.f32 %v2433_v12, %v2413_v1 }
0x2e6b   : > { %v2437_v8 = vrot.slane %v4067_v14, 6 }
0x2e6d   : > { %2438 = vrot.lane.b32.xlu2 %v2437_v8, %s3526_s17 }
0x2ec7   : > { %v2439_v16 = vpop.permute.xlu2 %2438 }
0x2ec8   : > { %3046 = vmatmul.msk.f32.vlgmr.msra.gmra.mxu1 %vm479_vm1, %v2439_v16 }
0x2f45   : > { %v2459_v5 = vpop.f32.mrf.mxu1 }
0x2f46   : > { %v2463_v17 = vrot.slane %v2459_v5, 3 }
0x2f48   : > { %v2465_v7 = vadd.f32 %v2463_v17, %v4033_v50 }
0x2f4a   : > { %3329 = vtanh.f32 %v2465_v7  ;;  %v2466_v26 = vsub.f32 0.0, %v2465_v7 }
0x2f4c   : > { %v2467_v15 = vmul.f32 1.442695, %v2466_v26 }
0x2f4e   : > { %3331 = vpow2.f32 %v2467_v15 }
0x2f50   : > { %v3330_v13 = vpop.eup %3329 }
0x2f51   : > { %2491 = vrot.lane.b32.xlu0 %v3330_v13, %s3524_s12 }
0x2f54   : > { %v3332_v18 = vpop.eup %3331 }
0x2f55   : > { %v2469_v9 = vadd.f32 1.0, %v3332_v18 }
0x2f57   : > { %3333 = vrcp.f32 %v2469_v9  ;;  %v2481_v34 = vand.u32 2147483648, %v2469_v9  ;;  %vm2475_vm5 = vweird.f32 %v2469_v9  ;;  %v2479_v35 = vand.u32 2147483647, %v2469_v9 }
0x2f59   : > { %v2482_v25 = vor.u32 1.1754944e-38, %v2481_v34  ;;  %vm2480_vm7 = vcmp.eq.f32.partialorder %v2479_v35, 8.507059e+37 }
0x2f5d   : > { %v3334_v31 = vpop.eup %3333 }
0x2f5e   : > { %v2471_v38 = vmul.f32 %v3334_v31, %v2469_v9  ;;  %vm2476_vm2 = vweird.f32 %v3334_v31 }
0x2f5f   : > { %vm2477_vm6 = vmor %vm2475_vm5, %vm2476_vm2 }
0x2f60   : > { %v2472_v32 = vsub.f32 1.0, %v2471_v38 }
0x2f62   : > { %v2473_v28 = vmul.f32 %v3334_v31, %v2472_v32 }
0x2f64   : > { %v2474_v33 = vadd.f32 %v3334_v31, %v2473_v28 }
0x2f66   : > { %v2478_v20 = vsel %vm2477_vm6, %v3334_v31, %v2474_v33 }
0x2f67   : > { %v2483_v30 = vsel %vm2480_vm7, %v2482_v25, %v2478_v20 }
0x2f68   : > { %v2489_v58 = vmul.f32 %v2487_v27, %v2483_v30 }
0x2fc3   : > { %v2492_v22 = vpop.permute.xlu0 %2491 }
0x2fc4   : > { %v2494_v36 = vmul.f32 %v2492_v22, %v2483_v30 }
0x2fc6   : > { %2496 = vrot.lane.b32.xlu1 %v2494_v36, %s3523_s18 }
0x3038   : > { %v2497_v39 = vpop.permute.xlu1 %2496 }
0x3039   : > { %v2499_v40 = vadd.f32 %v2497_v39, %v2489_v58 }
0x303b   : > { %3335 = vtanh.f32 %v2499_v40  ;;  %v2557_v3 = vrot.slane %v2499_v40, 1 }
0x3041   : > { %v3336_v37 = vpop.eup %3335 }
0x3042   : > { %2502 = vrot.lane.b32.xlu2 %v3336_v37, %s3525_s13 }
0x309c   : > { %v2503_v42 = vpop.permute.xlu2 %2502 }
0x309d   : > { %v4076_v45 = vmul.f32 %v2503_v42, %v2483_v30 }
0x309f   : > { %v2507_v46 = vrot.slane %v4076_v45, 5 }
0x30a1   : > { %2508 = vrot.lane.b32.xlu0 %v2507_v46, %s3526_s17 }
0x3113   : > { %v2509_v47 = vpop.permute.xlu0 %2508 }
0x3114   : > { %3047 = vmatmul.msk.f32.vlgmr.msra.gmra.mxu2 %vm479_vm1, %v2509_v47 }
0x3197   : > { %v2529_v48 = vpop.f32.mrf.mxu2 }
0x3198   : > { %v2533_v49 = vrot.slane %v2529_v48, 4 }
0x319a   : > { %v2535_v51 = vadd.f32 %v2533_v49, %v4033_v50 }
0x319c   : > { %3337 = vtanh.f32 %v2535_v51  ;;  %v2536_v23 = vsub.f32 0.0, %v2535_v51 }
0x319e   : > { %v2537_v53 = vmul.f32 1.442695, %v2536_v23 }
0x31a0   : > { %3339 = vpow2.f32 %v2537_v53 }
0x31a2   : > { %v3338_v52 = vpop.eup %3337 }
0x31a3   : > { %2561 = vrot.lane.b32.xlu1 %v3338_v52, %s3524_s12 }
0x31a6   : > { %v3340_v29 = vpop.eup %3339 }
0x31a7   : > { %v2539_v24 = vadd.f32 1.0, %v3340_v29 }
0x31a9   : > { %3341 = vrcp.f32 %v2539_v24  ;;  %v2551_v55 = vand.u32 2147483648, %v2539_v24  ;;  %vm2545_vm11 = vweird.f32 %v2539_v24  ;;  %v2549_v61 = vand.u32 2147483647, %v2539_v24 }
0x31ab   : > { %v2552_v63 = vor.u32 1.1754944e-38, %v2551_v55  ;;  %vm2550_vm15 = vcmp.eq.f32.partialorder %v2549_v61, 8.507059e+37 }
0x31af   : > { %v3342_v19 = vpop.eup %3341 }
0x31b0   : > { %v2541_v56 = vmul.f32 %v3342_v19, %v2539_v24  ;;  %vm2546_vm10 = vweird.f32 %v3342_v19 }
0x31b1   : > { %vm2547_vm13 = vmor %vm2545_vm11, %vm2546_vm10 }
0x31b2   : > { %v2542_v57 = vsub.f32 1.0, %v2541_v56 }
0x31b4   : > { %v2543_v59 = vmul.f32 %v3342_v19, %v2542_v57 }
0x31b6   : > { %v2544_v60 = vadd.f32 %v3342_v19, %v2543_v59 }
0x31b8   : > { %v2548_v62 = vsel %vm2547_vm13, %v3342_v19, %v2544_v60 }
0x31b9   : > { %v2553_v1 = vsel %vm2550_vm15, %v2552_v63, %v2548_v62 }
0x31ba   : > { %v2559_v4 = vmul.f32 %v2557_v3, %v2553_v1 }
0x3215   : > { %v2562_v0 = vpop.permute.xlu1 %2561 }
0x3216   : > { %v2564_v2 = vmul.f32 %v2562_v0, %v2553_v1 }
0x3218   : > { %2566 = vrot.lane.b32.xlu2 %v2564_v2, %s3523_s18 }
0x3272   : > { %v2567_v6 = vpop.permute.xlu2 %2566 }
0x3273   : > { %v2569_v10 = vadd.f32 %v2567_v6, %v2559_v4 }
0x3275   : > { %3343 = vtanh.f32 %v2569_v10  ;;  %v2627_v58 = vrot.slane %v2569_v10, 1 }
0x327b   : > { %v3344_v11 = vpop.eup %3343 }
0x327c   : > { %2572 = vrot.lane.b32.xlu0 %v3344_v11, %s3525_s13 }
0x32ee   : > { %v2573_v12 = vpop.permute.xlu0 %2572 }
0x32ef   : > { %v4085_v8 = vmul.f32 %v2573_v12, %v2553_v1 }
0x32f1   : > { %v2577_v16 = vrot.slane %v4085_v8, 4 }
0x32f3   : > { %2578 = vrot.lane.b32.xlu1 %v2577_v16, %s3526_s17 }
0x3365   : > { %v2579_v5 = vpop.permute.xlu1 %2578 }
0x3366   : > { %3048 = vmatmul.msk.f32.vlgmr.msrb.gmra.mxu3 %vm479_vm1, %v2579_v5 }
0x33e9   : > { %v2599_v17 = vpop.f32.mrf.mxu3 }
0x33ea   : > { %v2603_v7 = vrot.slane %v2599_v17, 5 }
0x33ec   : > { %v2605_v13 = vadd.f32 %v2603_v7, %v4033_v50 }
0x33ee   : > { %3345 = vtanh.f32 %v2605_v13  ;;  %v2606_v15 = vsub.f32 0.0, %v2605_v13 }
0x33f0   : > { %v2607_v18 = vmul.f32 1.442695, %v2606_v15 }
0x33f2   : > { %3347 = vpow2.f32 %v2607_v18 }
0x33f4   : > { %v3346_v26 = vpop.eup %3345 }
0x33f5   : > { %2631 = vrot.lane.b32.xlu2 %v3346_v26, %s3524_s12 }
0x33f8   : > { %v3348_v9 = vpop.eup %3347 }
0x33f9   : > { %v2609_v31 = vadd.f32 1.0, %v3348_v9 }
0x33fb   : > { %3349 = vrcp.f32 %v2609_v31  ;;  %v2621_v35 = vand.u32 2147483648, %v2609_v31  ;;  %vm2615_vm5 = vweird.f32 %v2609_v31  ;;  %v2619_v20 = vand.u32 2147483647, %v2609_v31 }
0x33fd   : > { %v2622_v22 = vor.u32 1.1754944e-38, %v2621_v35  ;;  %vm2620_vm7 = vcmp.eq.f32.partialorder %v2619_v20, 8.507059e+37 }
0x3401   : > { %v3350_v38 = vpop.eup %3349 }
0x3402   : > { %v2611_v32 = vmul.f32 %v3350_v38, %v2609_v31  ;;  %vm2616_vm2 = vweird.f32 %v3350_v38 }
0x3403   : > { %vm2617_vm6 = vmor %vm2615_vm5, %vm2616_vm2 }
0x3404   : > { %v2612_v28 = vsub.f32 1.0, %v2611_v32 }
0x3406   : > { %v2613_v33 = vmul.f32 %v3350_v38, %v2612_v28 }
0x3408   : > { %v2614_v34 = vadd.f32 %v3350_v38, %v2613_v33 }
0x340a   : > { %v2618_v25 = vsel %vm2617_vm6, %v3350_v38, %v2614_v34 }
0x340b   : > { %v2623_v36 = vsel %vm2620_vm7, %v2622_v22, %v2618_v25 }
0x340c   : > { %v2629_v39 = vmul.f32 %v2627_v58, %v2623_v36 }
0x344f   : > { %v2632_v30 = vpop.permute.xlu2 %2631 }
0x3450   : > { %v2634_v27 = vmul.f32 %v2632_v30, %v2623_v36 }
0x3452   : > { %2636 = vrot.lane.b32.xlu0 %v2634_v27, %s3523_s18 }
0x34c4   : > { %v2637_v40 = vpop.permute.xlu0 %2636 }
0x34c5   : > { %v2639_v37 = vadd.f32 %v2637_v40, %v2629_v39 }
0x34c7   : > { %3351 = vtanh.f32 %v2639_v37  ;;  %v2697_v6 = vrot.slane %v2639_v37, 1 }
0x34cd   : > { %v3352_v42 = vpop.eup %3351 }
0x34ce   : > { %2642 = vrot.lane.b32.xlu1 %v3352_v42, %s3525_s13 }
0x3540   : > { %v2643_v46 = vpop.permute.xlu1 %2642 }
0x3541   : > { %v4094_v47 = vmul.f32 %v2643_v46, %v2623_v36 }
0x3543   : > { %v2647_v48 = vrot.slane %v4094_v47, 3 }
0x3545   : > { %2648 = vrot.lane.b32.xlu2 %v2647_v48, %s3526_s17 }
0x359f   : > { %v2649_v49 = vpop.permute.xlu2 %2648 }
0x35a0   : > { %3049 = vmatmul.msk.f32.vlgmr.msra.gmra.mxu0 %vm479_vm1, %v2649_v49  ;;  %v2191_v49 = vrot.slane %v4061_v54, 1 }
0x361d   : > { %v2669_v51 = vpop.f32.mrf.mxu0 }
0x361e   : > { %v2673_v52 = vrot.slane %v2669_v51, 6  ;;  %v2193_v51 = vadd.f32 %v2191_v49, %v3953_v43 }
0x3620   : > { %v2675_v23 = vadd.f32 %v2673_v52, %v4033_v50  ;;  %v2194_v54 = vsub.f32 0.0, %v2193_v51 }
0x3622   : > { %3353 = vtanh.f32 %v2675_v23  ;;  %v2676_v29 = vsub.f32 0.0, %v2675_v23 }
0x3624   : > { %v2677_v24 = vmul.f32 1.442695, %v2676_v29 }
0x3626   : > { %3355 = vpow2.f32 %v2677_v24 }
0x3628   : > { %v3354_v53 = vpop.eup %3353 }
0x3629   : > { %2701 = vrot.lane.b32.xlu0 %v3354_v53, %s3524_s12 }
0x362c   : > { %v3356_v19 = vpop.eup %3355 }
0x362d   : > { %v2679_v56 = vadd.f32 1.0, %v3356_v19 }
0x362f   : > { %3357 = vrcp.f32 %v2679_v56  ;;  %v2691_v62 = vand.u32 2147483648, %v2679_v56  ;;  %vm2685_vm11 = vweird.f32 %v2679_v56  ;;  %v2689_v63 = vand.u32 2147483647, %v2679_v56 }
0x3631   : > { %v2692_v1 = vor.u32 1.1754944e-38, %v2691_v62  ;;  %vm2690_vm15 = vcmp.eq.f32.partialorder %v2689_v63, 8.507059e+37 }
0x3635   : > { %v3358_v57 = vpop.eup %3357 }
0x3636   : > { %v2681_v59 = vmul.f32 %v3358_v57, %v2679_v56  ;;  %vm2686_vm10 = vweird.f32 %v3358_v57  ;;  %v2195_v56 = vmul.f32 1.442695, %v2194_v54 }
0x3637   : > { %vm2687_vm13 = vmor %vm2685_vm11, %vm2686_vm10 }
0x3638   : > { %v2682_v60 = vsub.f32 1.0, %v2681_v59 }
0x363a   : > { %v2683_v55 = vmul.f32 %v3358_v57, %v2682_v60 }
0x363c   : > { %v2684_v61 = vadd.f32 %v3358_v57, %v2683_v55 }
0x363e   : > { %v2688_v0 = vsel %vm2687_vm13, %v3358_v57, %v2684_v61 }
0x363f   : > { %v2693_v3 = vsel %vm2690_vm15, %v2692_v1, %v2688_v0 }
0x3640   : > { %v2699_v10 = vmul.f32 %v2697_v6, %v2693_v3 }
0x369b   : > { %v2702_v2 = vpop.permute.xlu0 %2701 }
0x369c   : > { %v2704_v4 = vmul.f32 %v2702_v2, %v2693_v3 }
0x369e   : > { %2706 = vrot.lane.b32.xlu1 %v2704_v4, %s3523_s18 }
0x3710   : > { %v2707_v11 = vpop.permute.xlu1 %2706 }
0x3711   : > { %v2709_v12 = vadd.f32 %v2707_v11, %v2699_v10 }
0x3713   : > { %3359 = vtanh.f32 %v2709_v12  ;;  %v2767_v37 = vrot.slane %v2709_v12, 1 }
0x3719   : > { %v3360_v16 = vpop.eup %3359 }
0x371a   : > { %2712 = vrot.lane.b32.xlu2 %v3360_v16, %s3525_s13 }
0x3774   : > { %v2713_v5 = vpop.permute.xlu2 %2712 }
0x3775   : > { %v4103_v17 = vmul.f32 %v2713_v5, %v2693_v3 }
0x3777   : > { %v2717_v7 = vrot.slane %v4103_v17, 2 }
0x3779   : > { %2718 = vrot.lane.b32.xlu0 %v2717_v7, %s3526_s17 }
0x37eb   : > { %v2719_v13 = vpop.permute.xlu0 %2718 }
0x37ec   : > { %3050 = vmatmul.msk.f32.vlgmr.msrb.gmra.mxu1 %vm479_vm1, %v2719_v13 }
0x3869   : > { %v2739_v26 = vpop.f32.mrf.mxu1 }
0x386a   : > { %v2743_v15 = vrot.slane %v2739_v26, 7 }
0x386c   : > { %v2745_v18 = vadd.f32 %v2743_v15, %v4033_v50 }
0x386e   : > { %3361 = vtanh.f32 %v2745_v18  ;;  %v2746_v31 = vsub.f32 0.0, %v2745_v18 }
0x3870   : > { %v2747_v38 = vmul.f32 1.442695, %v2746_v31 }
0x3872   : > { %3363 = vpow2.f32 %v2747_v38 }
0x3874   : > { %v3362_v9 = vpop.eup %3361 }
0x3875   : > { %2771 = vrot.lane.b32.xlu1 %v3362_v9, %s3524_s12 }
0x3878   : > { %v3364_v32 = vpop.eup %3363 }
0x3879   : > { %v2749_v28 = vadd.f32 1.0, %v3364_v32 }
0x387b   : > { %3365 = vrcp.f32 %v2749_v28  ;;  %v2761_v22 = vand.u32 2147483648, %v2749_v28  ;;  %vm2755_vm5 = vweird.f32 %v2749_v28  ;;  %v2759_v30 = vand.u32 2147483647, %v2749_v28 }
0x387d   : > { %v2762_v27 = vor.u32 1.1754944e-38, %v2761_v22  ;;  %vm2760_vm7 = vcmp.eq.f32.partialorder %v2759_v30, 8.507059e+37 }
0x3881   : > { %v3366_v33 = vpop.eup %3365 }
0x3882   : > { %v2751_v34 = vmul.f32 %v3366_v33, %v2749_v28  ;;  %vm2756_vm2 = vweird.f32 %v3366_v33 }
0x3883   : > { %vm2757_vm6 = vmor %vm2755_vm5, %vm2756_vm2 }
0x3884   : > { %v2752_v35 = vsub.f32 1.0, %v2751_v34 }
0x3886   : > { %v2753_v20 = vmul.f32 %v3366_v33, %v2752_v35 }
0x3888   : > { %v2754_v25 = vadd.f32 %v3366_v33, %v2753_v20  ;;  %v2215_v20 = vrot.slane %v4043_v21, 7 }
0x388a   : > { %v2758_v36 = vsel %vm2757_vm6, %v3366_v33, %v2754_v25 }
0x388b   : > { %v2763_v39 = vsel %vm2760_vm7, %v2762_v27, %v2758_v36 }
0x388c   : > { %v2769_v42 = vmul.f32 %v2767_v37, %v2763_v39 }
0x38e7   : > { %v2772_v58 = vpop.permute.xlu1 %2771 }
0x38e8   : > { %v2774_v40 = vmul.f32 %v2772_v58, %v2763_v39 }
0x38ea   : > { %2776 = vrot.lane.b32.xlu2 %v2774_v40, %s3523_s18 }
0x3944   : > { %v2777_v46 = vpop.permute.xlu2 %2776 }
0x3945   : > { %v4111_v48 = vadd.f32 %v2777_v46, %v2769_v42 }
0x3947   : > { %3367 = vtanh.f32 %v4111_v48  ;;  %v2834_v27 = vrot.slane %v4111_v48, 1 }
0x3948   : > { %3369 = vtanh.f32 %v2193_v51 }
0x3949   : > { %3371 = vpow2.f32 %v2195_v56 }
0x394d   : > { %v3368_v52 = vpop.eup %3367 }
0x394e   : > { %2782 = vrot.lane.b32.xlu0 %v3368_v52, %s3525_s13  ;;  %v3370_v23 = vpop.eup %3369 }
0x394f   : > { %v3372_v43 = vpop.eup %3371 }
0x3950   : > { %v2197_v57 = vadd.f32 1.0, %v3372_v43 }
0x3952   : > { %3373 = vrcp.f32 %v2197_v57  ;;  %v2209_v2 = vand.u32 2147483648, %v2197_v57  ;;  %vm2203_vm11 = vweird.f32 %v2197_v57  ;;  %v2207_v3 = vand.u32 2147483647, %v2197_v57 }
0x3954   : > { %v2210_v6 = vor.u32 1.1754944e-38, %v2209_v2  ;;  %vm2208_vm15 = vcmp.eq.f32.partialorder %v2207_v3, 8.507059e+37 }
0x3956   : > { %2219 = vrot.lane.b32.xlu0 %v3370_v23, %s3524_s12 }
0x3958   : > { %v3374_v59 = vpop.eup %3373 }
0x3959   : > { %v2199_v60 = vmul.f32 %v3374_v59, %v2197_v57  ;;  %vm2204_vm10 = vweird.f32 %v3374_v59 }
0x395a   : > { %vm2205_vm13 = vmor %vm2203_vm11, %vm2204_vm10 }
0x395b   : > { %v2200_v55 = vsub.f32 1.0, %v2199_v60 }
0x395d   : > { %v2201_v63 = vmul.f32 %v3374_v59, %v2200_v55 }
0x395f   : > { %v2202_v0 = vadd.f32 %v3374_v59, %v2201_v63 }
0x3961   : > { %v2206_v4 = vsel %vm2205_vm13, %v3374_v59, %v2202_v0 }
0x3962   : > { %v2211_v11 = vsel %vm2208_vm15, %v2210_v6, %v2206_v4 }
0x3963   : > { %v2217_v25 = vmul.f32 %v2215_v20, %v2211_v11 }
0x39c0   : > { %v2783_v53 = vpop.permute.xlu0 %2782 }
0x39c1   : > { %v4118_v29 = vmul.f32 %v2783_v53, %v2763_v39 }
0x39c3   : > { %v2787_v24 = vrot.slane %v4118_v29, 1 }
0x39c5   : > { %2788 = vrot.lane.b32.xlu1 %v2787_v24, %s3526_s17 }
0x39c8   : > { %v2220_v10 = vpop.permute.xlu0 %2219 }
0x39c9   : > { %v2222_v12 = vmul.f32 %v2220_v10, %v2211_v11 }
0x3a37   : > { %v2789_v19 = vpop.permute.xlu1 %2788 }
0x3a38   : > { %3051 = vmatmul.msk.f32.vlgmr.msrb.gmra.mxu2 %vm479_vm1, %v2789_v19 }
0x3abb   : > { %v2809_v61 = vpop.f32.mrf.mxu2 }
0x3abc   : > { %v2812_v62 = vadd.f32 %v2809_v61, %v4033_v50 }
0x3abe   : > { %3375 = vtanh.f32 %v2812_v62  ;;  %v2813_v50 = vsub.f32 0.0, %v2812_v62 }
0x3ac0   : > { %v2814_v16 = vmul.f32 1.442695, %v2813_v50 }
0x3ac2   : > { %3377 = vpow2.f32 %v2814_v16 }
0x3ac4   : > { %v3376_v1 = vpop.eup %3375 }
0x3ac5   : > { %2838 = vrot.lane.b32.xlu2 %v3376_v1, %s3524_s12 }
0x3ac8   : > { %v3378_v5 = vpop.eup %3377 }
0x3ac9   : > { %v2816_v7 = vadd.f32 1.0, %v3378_v5 }
0x3acb   : > { %3379 = vrcp.f32 %v2816_v7  ;;  %v2828_v31 = vand.u32 2147483648, %v2816_v7  ;;  %vm2822_vm5 = vweird.f32 %v2816_v7  ;;  %v2826_v38 = vand.u32 2147483647, %v2816_v7 }
0x3acd   : > { %2224 = vrot.lane.b32.xlu2 %v2222_v12, %s3523_s18  ;;  %v2829_v28 = vor.u32 1.1754944e-38, %v2828_v31  ;;  %vm2827_vm7 = vcmp.eq.f32.partialorder %v2826_v38, 8.507059e+37 }
0x3ad1   : > { %v3380_v13 = vpop.eup %3379 }
0x3ad2   : > { %v2818_v26 = vmul.f32 %v3380_v13, %v2816_v7  ;;  %vm2823_vm2 = vweird.f32 %v3380_v13 }
0x3ad3   : > { %vm2824_vm6 = vmor %vm2822_vm5, %vm2823_vm2 }
0x3ad4   : > { %v2819_v15 = vsub.f32 1.0, %v2818_v26 }
0x3ad6   : > { %v2820_v18 = vmul.f32 %v3380_v13, %v2819_v15 }
0x3ad8   : > { %v2821_v9 = vadd.f32 %v3380_v13, %v2820_v18 }
0x3ada   : > { %v2825_v32 = vsel %vm2824_vm6, %v3380_v13, %v2821_v9 }
0x3adb   : > { %v2830_v34 = vsel %vm2827_vm7, %v2829_v28, %v2825_v32 }
0x3adc   : > { %v2836_v58 = vmul.f32 %v2834_v27, %v2830_v34 }
0x3b1f   : > { %v2839_v33 = vpop.permute.xlu2 %2838 }
0x3b20   : > { %v2841_v35 = vmul.f32 %v2839_v33, %v2830_v34 }
0x3b22   : > { %2843 = vrot.lane.b32.xlu1 %v2841_v35, %s3523_s18  ;;  %s356_s18 = scalar_lea.vmem [#allocation7], %s3000_s20  ;;  %s3465_s20 = scalar_lea.hbm %s4190_s8, 16 }
0x3b23   : > { %s2884_s21 = sshll.u32 %s356_s18, 4  ;;  %p3467_p4 = scmp.lt.s32.totalorder %s3465_s20, %s3461_s22  ;;  %s2885_s21 = int_to_ptr.vmem [resolvable:$true] %s2884_s21 }
0x3b25   : > { %p3468_p7 = por %p3467_p4, %p3466_p3 }
0x3b27   : > { %v2225_v22 = vpop.permute.xlu2 %2224  ;;  %p3469_p8 = pnand %p3468_p7, %p3464_p2 }
0x3b28   : > { %v2227_v30 = vadd.f32 %v2225_v22, %v2217_v25 }
0x3b2a   : > { %3381 = vtanh.f32 %v2227_v30 }
0x3b30   : > { %v3382_v36 = vpop.eup %3381 }
0x3b31   : > { %2230 = vrot.lane.b32.xlu1 %v3382_v36, %s3525_s13 }
0x3b94   : > { %v2844_v39 = vpop.permute.xlu1 %2843 }
0x3b95   : > { %v2846_v40 = vadd.f32 %v2844_v39, %v2836_v58 }
0x3b97   : > { %3383 = vtanh.f32 %v2846_v40 }
0x3b9d   : > { %v3384_v37 = vpop.eup %3383 }
0x3b9e   : > { %2849 = vrot.lane.b32.xlu0 %v3384_v37, %s3525_s13 }
0x3ba3   : > { %v2231_v42 = vpop.permute.xlu1 %2230 }
0x3ba4   : > { %v2233_v46 = vmul.f32 %v2231_v42, %v2211_v11 }
0x3ba6   : > { %v2240_v21 = vsel %vm1045_vm9, %v4050_v41, %v2233_v46 }
0x3ba7   : > { %2861 = vrot.lane.b32.xlu2 %v2240_v21, %s3526_s17 }
0x3c01   : > { %v2862_v49 = vpop.permute.xlu2 %2861 }
0x3c02   : > { %2864 = vst.msk [vmem:[%s356_s18] sm:$0xff] %vm479_vm1, %v2862_v49 }
0x3c10   : > { %v2850_v48 = vpop.permute.xlu0 %2849 }
0x3c11   : > { %v2852_v51 = vmul.f32 %v2850_v48, %v2830_v34 }
0x3c13   : > { %v2853_v52 = vsel %vm1034_vm3, %v2852_v51, %v4118_v29 }
0x3c14   : > { %v2854_v23 = vsel %vm389_vm0, %v2853_v52, %v4103_v17  ;;  %vm2869_vm0 = vcmask 261248  }
0x3c15   : > { %v2855_v41 = vsel %vm1037_vm8, %v2854_v23, %v4094_v47 }
0x3c16   : > { %v2856_v53 = vsel %vm1039_vm4, %v2855_v41, %v4085_v8 }
0x3c17   : > { %v2857_v24 = vsel %vm1041_vm14, %v2856_v53, %v4076_v45 }
0x3c18   : > { %v2858_v19 = vsel %vm1043_vm12, %v2857_v24, %v4067_v14 }
0x3c19   : > { %v2859_v54 = vsel %vm1045_vm9, %v2858_v19, %v4053_v44 }
0x3c1a   : > { %2866 = vrot.lane.b32.xlu0 %v2859_v54, %s3524_s12 }
0x3c8c   : > { %v2867_v45 = vpop.permute.xlu0 %2866 }
0x3c8d   : > { %2870 = vst.msk [vmem:[%s356_s18] sm:$0xff] %vm2869_vm0, %v2867_v45 }
0x3c8e   : > { %3472 = shalt.err (!%p3469_p8)
}
0x3c8f   : > { %3064 = dma.vmem_to_hbm [thread:$0]  (%p3610_p5), %s2885_s21, 128, %s2887_s23, %s2872_s24  }
0x3c90 PF: > { %p3081_p9 = scmp.ge.s32.totalorder %s3515_s30, 2  ;;  %s2898_s10 = sand.u32 1, %s3503_s27  }
0x3c91   : > { %s2899_s18 = scalar_lea.sflag [#allocation4], %s2898_s10 }
0x3c92   : > { %p3074_p10 = pnand %p3081_p9, %p3614_p6 }
0x3c94   : > { %p3075_p11 = pneg %p3074_p10 }
0x3c96   : > { %3498 = dma.done.wait (%p3075_p11), %s2899_s18, 128  }
0x3c97   : > { %3500 = vsyncadd (%p3075_p11), %s2899_s18, 4294967168  ;;  %p20_p12 = scmp.ge.s32.totalorder %s3597_s11, 4   ;;  %s4194_s27 = smov %s3507_s28 }
0x3c98   : > { %s4195_s28 = smov %s3511_s29  ;;  %s4196_s29 = smov %s3608_s14 }
0x3c99   : > { %s4197_s30 = smov %s3597_s11  ;;  %22 = sbr.rel (!%p20_p12) target bundleno = 5 (0x5), region = 110 }
0x3c9e   :  { %2905 = vsyncpa [#allocation3], 1 }
0x3c9f   :  { %2907 = vsyncpa [#allocation3 + $0x1], 1 }
0x3ca0   :  { %2908 = vsyncpa [#allocation6], 1 }
0x3ca1   :  { %2909 = vsyncpa [#allocation4], 1 }
0x3ca2   :  { %2911 = vsyncpa [#allocation4 + $0x1], 1 }

</bundles_post_ra>
